<compile_context>
chip_gen: v6e
topology: v6e:2x2x1
jax: 0.10.0
libtpu: 0.0.40
codegen_flags: <defaults>
</compile_context>

<pallas_src>
import jax
import jax.numpy as jnp
from jax.experimental import pallas as pl
from jax.experimental.pallas import tpu as pltpu

BT = 8  # images processed per grid step


# ----------------------------------------------------------------------------
# Fused forward kernel: only 2-D MXU matmuls + elementwise max/add.
# ----------------------------------------------------------------------------
def _fused_forward_kernel(x_ref, rx_ref, g1_ref, b1_ref, sw1_ref, ph1_ref,
                          rs_ref, g2_ref, b2_ref, sw2_ref, ph2_ref,
                          wf1_ref, bf1_ref, wf2_ref, bf2_ref, out_ref):
    def mm(a, b):
        return jnp.dot(a, b, preferred_element_type=jnp.float32)

    x2d = x_ref[...]                                          # [BT*28, 28]

    # Conv1 + bias + ReLU: rows = b*24+y, lanes = x*4+cout  -> [BT*24, 96]
    acc1 = mm(mm(rx_ref[0], x2d), g1_ref[0])
    for i in range(1, 5):
        acc1 = acc1 + mm(mm(rx_ref[i], x2d), g1_ref[i])
    c1 = jnp.maximum(acc1 + b1_ref[...], 0.0)

    # Pool1 (2x2 max): even/odd column selectors, then even/odd row selectors.
    mw1 = jnp.maximum(mm(c1, sw1_ref[0]), mm(c1, sw1_ref[1]))   # [BT*24, 48]
    p1 = jnp.maximum(mm(ph1_ref[0], mw1), mm(ph1_ref[1], mw1))  # [BT*12, 48]

    # Conv2 + bias + ReLU: rows = b*8+y, lanes = x*16+cout  -> [BT*8, 128]
    acc2 = mm(mm(rs_ref[0], p1), g2_ref[0])
    for i in range(1, 5):
        acc2 = acc2 + mm(mm(rs_ref[i], p1), g2_ref[i])
    c2 = jnp.maximum(acc2 + b2_ref[...], 0.0)

    # Pool2, x-direction -> [BT*8, 64]
    mw2 = jnp.maximum(mm(c2, sw2_ref[0]), mm(c2, sw2_ref[1]))

    # Pool2 y-direction fused with the FC1 per-row gather; FC1 + ReLU -> [BT, 128]
    z1 = bf1_ref[...]
    for y in range(4):
        p2y = jnp.maximum(mm(ph2_ref[2 * y], mw2), mm(ph2_ref[2 * y + 1], mw2))
        z1 = z1 + mm(p2y, wf1_ref[y])
    z1 = jnp.maximum(z1, 0.0)

    # FC2 (26 real outputs zero-padded to 128 lanes -> unmasked store).
    out_ref[...] = (mm(z1, wf2_ref[...]) + bf2_ref[...]).astype(out_ref.dtype)


# ----------------------------------------------------------------------------
# One-time parameter lowering (weight-side layout work; nothing per-batch).
# ----------------------------------------------------------------------------
def _one_hot_rows(bt, per_out, per_in, fn):
    """0/1 matrix [bt*per_out, bt*per_in]: out row (b, yo) picks in row (b, fn(yo))."""
    ro = jnp.arange(bt * per_out)
    ri = jnp.arange(bt * per_in)
    bo, yo = ro // per_out, ro % per_out
    bi, yi = ri // per_in, ri % per_in
    return ((bo[:, None] == bi[None, :]) &
            (yi[None, :] == fn(yo)[:, None])).astype(jnp.float32)


def _one_hot_lanes(n_pos_in, n_chan, parity):
    """0/1 matrix [n_pos_in*n_chan, (n_pos_in//2)*n_chan]: lane (x,c) -> (x',c), x=2x'+parity."""
    li = jnp.arange(n_pos_in * n_chan)
    lo = jnp.arange((n_pos_in // 2) * n_chan)
    xi, ci = li // n_chan, li % n_chan
    xo, co = lo // n_chan, lo % n_chan
    return ((ci[:, None] == co[None, :]) &
            (xi[:, None] == 2 * xo[None, :] + parity)).astype(jnp.float32)


def _conv_row_matrices(w, w_in, w_out):
    """w: [cout, cin, 5, 5] -> G[5, w_in*cin, w_out*cout] with
    G[i][xin*cin + c, x*cout + d] = w[d, c, i, xin - x] for 0 <= xin-x < 5."""
    cout, cin = int(w.shape[0]), int(w.shape[1])
    l = jnp.arange(w_in * cin)
    xin, c = l // cin, l % cin
    xo = jnp.arange(w_out)
    j = xin[:, None] - xo[None, :]                       # [w_in*cin, w_out]
    valid = (j >= 0) & (j < 5)
    wt = jnp.transpose(w, (2, 3, 1, 0))                  # [i, j, c, d]
    g = wt[:, jnp.clip(j, 0, 4), c[:, None], :]          # [5, w_in*cin, w_out, cout]
    g = jnp.where(valid[None, :, :, None], g, 0.0)
    return g.reshape(5, w_in * cin, w_out * cout)


def prepare_params(params, bt=BT):
    f32 = jnp.float32
    w1 = params["w1"].astype(f32)    # [4, 1, 5, 5]
    b1 = params["b1"].astype(f32)
    w2 = params["w2"].astype(f32)    # [16, 4, 5, 5]
    b2 = params["b2"].astype(f32)
    wf1 = params["wf1"].astype(f32)  # [128, 256]
    bf1 = params["bf1"].astype(f32)
    wf2 = params["wf2"].astype(f32)  # [26, 128]
    bf2 = params["bf2"].astype(f32)

    # Conv1: input row-slab selectors (from the [bt*28, 28] tile) + lowered weights.
    rx = jnp.stack([_one_hot_rows(bt, 24, 28, lambda yo, i=i: yo + i)
                    for i in range(5)])                              # [5, bt*24, bt*28]
    g1 = _conv_row_matrices(w1, 28, 24)                              # [5, 28, 96]
    b1t = jnp.tile(b1, 24).reshape(1, 96)

    # Pool1 selectors.
    sw1 = jnp.stack([_one_hot_lanes(24, 4, p) for p in range(2)])    # [2, 96, 48]
    ph1 = jnp.stack([_one_hot_rows(bt, 12, 24, lambda yo, p=p: 2 * yo + p)
                     for p in range(2)])                             # [2, bt*12, bt*24]

    # Conv2: row-slab selectors + lowered weights.
    rs = jnp.stack([_one_hot_rows(bt, 8, 12, lambda yo, i=i: yo + i)
                    for i in range(5)])                              # [5, bt*8, bt*12]
    g2 = _conv_row_matrices(w2, 12, 8)                               # [5, 48, 128]
    b2t = jnp.tile(b2, 8).reshape(1, 128)

    # Pool2 selectors (y-direction fused with FC1 per-row gather).
    sw2 = jnp.stack([_one_hot_lanes(8, 16, p) for p in range(2)])    # [2, 128, 64]
    ph2 = jnp.stack([_one_hot_rows(bt, 1, 8, lambda yo, v=2 * yy + pp: yo * 0 + v)
                     for yy in range(4) for pp in range(2)])         # [8, bt, bt*8]

    # FC1: permute input columns from PyTorch NCHW-flatten order (d*16+y*4+x)
    # to the kernel's (y, x*16+d) layout, split per pooled row y.
    wf1p = jnp.transpose(wf1.reshape(128, 16, 4, 4), (2, 3, 1, 0)).reshape(4, 64, 128)
    bf1r = bf1.reshape(1, 128)

    # FC2: transpose once + zero-pad the 26 outputs to 128 lanes.
    wf2p = jnp.zeros((128, 128), f32).at[:, :26].set(wf2.T)
    bf2p = jnp.zeros((1, 128), f32).at[0, :26].set(bf2)

    return (rx, g1, b1t, sw1, ph1, rs, g2, b2t, sw2, ph2, wf1p, bf1r, wf2p, bf2p)


# ----------------------------------------------------------------------------
# Forward pass: single pallas_call over batch tiles.
# ----------------------------------------------------------------------------
@jax.jit
def version1_forward(prepped, x_nchw):
    bt = BT
    consts = tuple(prepped)
    n = x_nchw.shape[0]
    assert x_nchw.shape[1:] == (1, 28, 28), x_nchw.shape
    n_pad = ((n + bt - 1) // bt) * bt

    x = x_nchw[:, 0, :, :].astype(jnp.float32)            # [N, 28, 28]
    if n_pad != n:
        x = jnp.pad(x, ((0, n_pad - n), (0, 0), (0, 0)))
    x2d = x.reshape(n_pad * 28, 28)                        # layout-free reshape

    grid = (n_pad // bt,)

    def whole(a):
        return pl.BlockSpec(a.shape, lambda i: (0,) * a.ndim)

    in_specs = ([pl.BlockSpec((bt * 28, 28), lambda i: (i, 0))]
                + [whole(a) for a in consts])
    out_specs = pl.BlockSpec((bt, 128), lambda i: (i, 0))

    const_bytes = sum(int(a.size) * 4 for a in consts)
    flops_step = 2 * (
        5 * ((bt * 24) * (bt * 28) * 28 + (bt * 24) * 28 * 96)        # conv1
        + 2 * (bt * 24) * 96 * 48 + 2 * (bt * 12) * (bt * 24) * 48    # pool1
        + 5 * ((bt * 8) * (bt * 12) * 48 + (bt * 8) * 48 * 128)       # conv2
        + 2 * (bt * 8) * 128 * 64                                     # pool2 x
        + 8 * bt * (bt * 8) * 64 + 4 * bt * 64 * 128                  # pool2 y + fc1
        + bt * 128 * 128)                                             # fc2
    cost = pl.CostEstimate(
        flops=int(flops_step) * grid[0],
        transcendentals=0,
        bytes_accessed=int(x2d.size) * 4 + const_bytes + n_pad * 128 * 4)

    out = pl.pallas_call(
        _fused_forward_kernel,
        out_shape=jax.ShapeDtypeStruct((n_pad, 128), jnp.float32),
        grid=grid,
        in_specs=in_specs,
        out_specs=out_specs,
        compiler_params=pltpu.CompilerParams(
            dimension_semantics=("parallel",),
            vmem_limit_bytes=32 * 1024 * 1024),
        cost_estimate=cost,
    )(x2d, *consts)
    return out[:n, :26]


# ----------------------------------------------------------------------------
# Parameters (deterministic synthetic init, PyTorch-shaped) + pure-JAX reference.
# ----------------------------------------------------------------------------
def init_params(key):
    ks = jax.random.split(key, 8)
    scale = 0.1
    return {
        "w1": scale * jax.random.normal(ks[0], (4, 1, 5, 5), jnp.float32),
        "b1": scale * jax.random.normal(ks[1], (4,), jnp.float32),
        "w2": scale * jax.random.normal(ks[2], (16, 4, 5, 5), jnp.float32),
        "b2": scale * jax.random.normal(ks[3], (16,), jnp.float32),
        "wf1": scale * jax.random.normal(ks[4], (128, 256), jnp.float32),
        "bf1": scale * jax.random.normal(ks[5], (128,), jnp.float32),
        "wf2": scale * jax.random.normal(ks[6], (26, 128), jnp.float32),
        "bf2": scale * jax.random.normal(ks[7], (26,), jnp.float32),
    }


def reference_forward(params, x_nchw):
    x = x_nchw.astype(jnp.float32)

    def conv(x, w, b):
        y = jax.lax.conv_general_dilated(
            x, w, (1, 1), "VALID", dimension_numbers=("NCHW", "OIHW", "NCHW"))
        return y + b[None, :, None, None]

    def pool(x):
        return jax.lax.reduce_window(
            x, -jnp.inf, jax.lax.max, (1, 1, 2, 2), (1, 1, 2, 2), "VALID")

    x = jax.nn.relu(conv(x, params["w1"], params["b1"]))
    x = jax.nn.relu(pool(x))
    x = jax.nn.relu(conv(x, params["w2"], params["b2"]))
    x = jax.nn.relu(pool(x))
    x = x.reshape(x.shape[0], 256)
    x = jax.nn.relu(x @ params["wf1"].T + params["bf1"])
    return x @ params["wf2"].T + params["bf2"]


if __name__ == "__main__":
    key = jax.random.PRNGKey(0)
    pkey, xkey = jax.random.split(key)
    params = init_params(pkey)

    # Input implied by forward(): 1-channel 28x28 images (28->24->12->8->4).
    x = jax.random.normal(xkey, (2, 1, 28, 28), jnp.float32)

    prepped = prepare_params(params)      # one-time weight lowering
    out = version1_forward(prepped, x)
    out = jax.block_until_ready(out)
    assert out.shape == (2, 26), out.shape

    ref = reference_forward(params, x)
    err = float(jnp.max(jnp.abs(out - ref)))
    assert err < 5e-3, f"mismatch vs reference: {err}"

    print("KERNEL_OK")
</pallas_src>

<mosaic_0001>
module attributes {stable_mosaic.version = 11 : i64} {
  func.func @_fused_forward_kernel(%arg0: i32, %arg1: memref<224x28xf32, #tpu.memory_space<vmem>>, %arg2: memref<5x192x224xf32, #tpu.memory_space<vmem>>, %arg3: memref<5x28x96xf32, #tpu.memory_space<vmem>>, %arg4: memref<1x96xf32, #tpu.memory_space<vmem>>, %arg5: memref<2x96x48xf32, #tpu.memory_space<vmem>>, %arg6: memref<2x96x192xf32, #tpu.memory_space<vmem>>, %arg7: memref<5x64x96xf32, #tpu.memory_space<vmem>>, %arg8: memref<5x48x128xf32, #tpu.memory_space<vmem>>, %arg9: memref<1x128xf32, #tpu.memory_space<vmem>>, %arg10: memref<2x128x64xf32, #tpu.memory_space<vmem>>, %arg11: memref<8x8x64xf32, #tpu.memory_space<vmem>>, %arg12: memref<4x64x128xf32, #tpu.memory_space<vmem>>, %arg13: memref<1x128xf32, #tpu.memory_space<vmem>>, %arg14: memref<128x128xf32, #tpu.memory_space<vmem>>, %arg15: memref<1x128xf32, #tpu.memory_space<vmem>>, %arg16: memref<8x128xf32, #tpu.memory_space<vmem>>) attributes {dimension_semantics = [#tpu.dimension_semantics<parallel>], iteration_bounds = array<i64: 1>, scalar_prefetch = 0 : i64, scratch_operands = 0 : i64, tpu.core_type = #tpu.core_type<tc>, window_params = [{transform_indices = @transform_0, window_bounds = array<i64: 224, 28>}, {pipeline_mode = #tpu.pipeline_mode<synchronous>, transform_indices = @transform_1, window_bounds = array<i64: 5, 192, 224>}, {pipeline_mode = #tpu.pipeline_mode<synchronous>, transform_indices = @transform_2, window_bounds = array<i64: 5, 28, 96>}, {pipeline_mode = #tpu.pipeline_mode<synchronous>, transform_indices = @transform_3, window_bounds = array<i64: 1, 96>}, {pipeline_mode = #tpu.pipeline_mode<synchronous>, transform_indices = @transform_4, window_bounds = array<i64: 2, 96, 48>}, {pipeline_mode = #tpu.pipeline_mode<synchronous>, transform_indices = @transform_5, window_bounds = array<i64: 2, 96, 192>}, {pipeline_mode = #tpu.pipeline_mode<synchronous>, transform_indices = @transform_6, window_bounds = array<i64: 5, 64, 96>}, {pipeline_mode = #tpu.pipeline_mode<synchronous>, transform_indices = @transform_7, window_bounds = array<i64: 5, 48, 128>}, {pipeline_mode = #tpu.pipeline_mode<synchronous>, transform_indices = @transform_8, window_bounds = array<i64: 1, 128>}, {pipeline_mode = #tpu.pipeline_mode<synchronous>, transform_indices = @transform_9, window_bounds = array<i64: 2, 128, 64>}, {pipeline_mode = #tpu.pipeline_mode<synchronous>, transform_indices = @transform_10, window_bounds = array<i64: 8, 8, 64>}, {pipeline_mode = #tpu.pipeline_mode<synchronous>, transform_indices = @transform_11, window_bounds = array<i64: 4, 64, 128>}, {pipeline_mode = #tpu.pipeline_mode<synchronous>, transform_indices = @transform_12, window_bounds = array<i64: 1, 128>}, {pipeline_mode = #tpu.pipeline_mode<synchronous>, transform_indices = @transform_13, window_bounds = array<i64: 128, 128>}, {pipeline_mode = #tpu.pipeline_mode<synchronous>, transform_indices = @transform_14, window_bounds = array<i64: 1, 128>}, {transform_indices = @transform_15, window_bounds = array<i64: 8, 128>}]} {
    %c0 = arith.constant 0 : index
    %c0_0 = arith.constant 0 : index
    %0 = vector.load %arg1[%c0, %c0_0] : memref<224x28xf32, #tpu.memory_space<vmem>>, vector<224x28xf32>
    %c0_1 = arith.constant 0 : index
    %c0_2 = arith.constant 0 : index
    %c0_3 = arith.constant 0 : index
    %1 = vector.load %arg2[%c0_1, %c0_2, %c0_3] : memref<5x192x224xf32, #tpu.memory_space<vmem>>, vector<1x192x224xf32>
    %2 = vector.shape_cast %1 : vector<1x192x224xf32> to vector<192x224xf32>
    %cst = arith.constant dense<0.000000e+00> : vector<192x28xf32>
    %3 = tpu.matmul %2, %0, %cst {dimension_numbers = #tpu.dot_dimension_numbers<[1], [0], [0], [1], [0, 0, 1, 1], [], []>} : vector<192x224xf32>, vector<224x28xf32>, vector<192x28xf32> -> vector<192x28xf32>
    %c0_4 = arith.constant 0 : index
    %c0_5 = arith.constant 0 : index
    %c0_6 = arith.constant 0 : index
    %4 = vector.load %arg3[%c0_4, %c0_5, %c0_6] : memref<5x28x96xf32, #tpu.memory_space<vmem>>, vector<1x28x96xf32>
    %5 = vector.shape_cast %4 : vector<1x28x96xf32> to vector<28x96xf32>
    %cst_7 = arith.constant dense<0.000000e+00> : vector<192x96xf32>
    %6 = tpu.matmul %3, %5, %cst_7 {dimension_numbers = #tpu.dot_dimension_numbers<[1], [0], [0], [1], [0, 0, 1, 1], [], []>} : vector<192x28xf32>, vector<28x96xf32>, vector<192x96xf32> -> vector<192x96xf32>
    %c1 = arith.constant 1 : index
    %c0_8 = arith.constant 0 : index
    %c0_9 = arith.constant 0 : index
    %7 = vector.load %arg2[%c1, %c0_8, %c0_9] : memref<5x192x224xf32, #tpu.memory_space<vmem>>, vector<1x192x224xf32>
    %8 = vector.shape_cast %7 : vector<1x192x224xf32> to vector<192x224xf32>
    %cst_10 = arith.constant dense<0.000000e+00> : vector<192x28xf32>
    %9 = tpu.matmul %8, %0, %cst_10 {dimension_numbers = #tpu.dot_dimension_numbers<[1], [0], [0], [1], [0, 0, 1, 1], [], []>} : vector<192x224xf32>, vector<224x28xf32>, vector<192x28xf32> -> vector<192x28xf32>
    %c1_11 = arith.constant 1 : index
    %c0_12 = arith.constant 0 : index
    %c0_13 = arith.constant 0 : index
    %10 = vector.load %arg3[%c1_11, %c0_12, %c0_13] : memref<5x28x96xf32, #tpu.memory_space<vmem>>, vector<1x28x96xf32>
    %11 = vector.shape_cast %10 : vector<1x28x96xf32> to vector<28x96xf32>
    %cst_14 = arith.constant dense<0.000000e+00> : vector<192x96xf32>
    %12 = tpu.matmul %9, %11, %cst_14 {dimension_numbers = #tpu.dot_dimension_numbers<[1], [0], [0], [1], [0, 0, 1, 1], [], []>} : vector<192x28xf32>, vector<28x96xf32>, vector<192x96xf32> -> vector<192x96xf32>
    %13 = arith.addf %6, %12 : vector<192x96xf32>
    %c2 = arith.constant 2 : index
    %c0_15 = arith.constant 0 : index
    %c0_16 = arith.constant 0 : index
    %14 = vector.load %arg2[%c2, %c0_15, %c0_16] : memref<5x192x224xf32, #tpu.memory_space<vmem>>, vector<1x192x224xf32>
    %15 = vector.shape_cast %14 : vector<1x192x224xf32> to vector<192x224xf32>
    %cst_17 = arith.constant dense<0.000000e+00> : vector<192x28xf32>
    %16 = tpu.matmul %15, %0, %cst_17 {dimension_numbers = #tpu.dot_dimension_numbers<[1], [0], [0], [1], [0, 0, 1, 1], [], []>} : vector<192x224xf32>, vector<224x28xf32>, vector<192x28xf32> -> vector<192x28xf32>
    %c2_18 = arith.constant 2 : index
    %c0_19 = arith.constant 0 : index
    %c0_20 = arith.constant 0 : index
    %17 = vector.load %arg3[%c2_18, %c0_19, %c0_20] : memref<5x28x96xf32, #tpu.memory_space<vmem>>, vector<1x28x96xf32>
    %18 = vector.shape_cast %17 : vector<1x28x96xf32> to vector<28x96xf32>
    %cst_21 = arith.constant dense<0.000000e+00> : vector<192x96xf32>
    %19 = tpu.matmul %16, %18, %cst_21 {dimension_numbers = #tpu.dot_dimension_numbers<[1], [0], [0], [1], [0, 0, 1, 1], [], []>} : vector<192x28xf32>, vector<28x96xf32>, vector<192x96xf32> -> vector<192x96xf32>
    %20 = arith.addf %13, %19 : vector<192x96xf32>
    %c3 = arith.constant 3 : index
    %c0_22 = arith.constant 0 : index
    %c0_23 = arith.constant 0 : index
    %21 = vector.load %arg2[%c3, %c0_22, %c0_23] : memref<5x192x224xf32, #tpu.memory_space<vmem>>, vector<1x192x224xf32>
    %22 = vector.shape_cast %21 : vector<1x192x224xf32> to vector<192x224xf32>
    %cst_24 = arith.constant dense<0.000000e+00> : vector<192x28xf32>
    %23 = tpu.matmul %22, %0, %cst_24 {dimension_numbers = #tpu.dot_dimension_numbers<[1], [0], [0], [1], [0, 0, 1, 1], [], []>} : vector<192x224xf32>, vector<224x28xf32>, vector<192x28xf32> -> vector<192x28xf32>
    %c3_25 = arith.constant 3 : index
    %c0_26 = arith.constant 0 : index
    %c0_27 = arith.constant 0 : index
    %24 = vector.load %arg3[%c3_25, %c0_26, %c0_27] : memref<5x28x96xf32, #tpu.memory_space<vmem>>, vector<1x28x96xf32>
    %25 = vector.shape_cast %24 : vector<1x28x96xf32> to vector<28x96xf32>
    %cst_28 = arith.constant dense<0.000000e+00> : vector<192x96xf32>
    %26 = tpu.matmul %23, %25, %cst_28 {dimension_numbers = #tpu.dot_dimension_numbers<[1], [0], [0], [1], [0, 0, 1, 1], [], []>} : vector<192x28xf32>, vector<28x96xf32>, vector<192x96xf32> -> vector<192x96xf32>
    %27 = arith.addf %20, %26 : vector<192x96xf32>
    %c4 = arith.constant 4 : index
    %c0_29 = arith.constant 0 : index
    %c0_30 = arith.constant 0 : index
    %28 = vector.load %arg2[%c4, %c0_29, %c0_30] : memref<5x192x224xf32, #tpu.memory_space<vmem>>, vector<1x192x224xf32>
    %29 = vector.shape_cast %28 : vector<1x192x224xf32> to vector<192x224xf32>
    %cst_31 = arith.constant dense<0.000000e+00> : vector<192x28xf32>
    %30 = tpu.matmul %29, %0, %cst_31 {dimension_numbers = #tpu.dot_dimension_numbers<[1], [0], [0], [1], [0, 0, 1, 1], [], []>} : vector<192x224xf32>, vector<224x28xf32>, vector<192x28xf32> -> vector<192x28xf32>
    %c4_32 = arith.constant 4 : index
    %c0_33 = arith.constant 0 : index
    %c0_34 = arith.constant 0 : index
    %31 = vector.load %arg3[%c4_32, %c0_33, %c0_34] : memref<5x28x96xf32, #tpu.memory_space<vmem>>, vector<1x28x96xf32>
    %32 = vector.shape_cast %31 : vector<1x28x96xf32> to vector<28x96xf32>
    %cst_35 = arith.constant dense<0.000000e+00> : vector<192x96xf32>
    %33 = tpu.matmul %30, %32, %cst_35 {dimension_numbers = #tpu.dot_dimension_numbers<[1], [0], [0], [1], [0, 0, 1, 1], [], []>} : vector<192x28xf32>, vector<28x96xf32>, vector<192x96xf32> -> vector<192x96xf32>
    %34 = arith.addf %27, %33 : vector<192x96xf32>
    %c0_36 = arith.constant 0 : index
    %c0_37 = arith.constant 0 : index
    %35 = vector.load %arg4[%c0_36, %c0_37] : memref<1x96xf32, #tpu.memory_space<vmem>>, vector<1x96xf32>
    %36 = vector.broadcast %35 : vector<1x96xf32> to vector<192x96xf32>
    %37 = arith.addf %34, %36 : vector<192x96xf32>
    %cst_38 = arith.constant 0.000000e+00 : f32
    %38 = vector.broadcast %cst_38 : f32 to vector<192x96xf32>
    %39 = arith.maximumf %37, %38 : vector<192x96xf32>
    %c0_39 = arith.constant 0 : index
    %c0_40 = arith.constant 0 : index
    %c0_41 = arith.constant 0 : index
    %40 = vector.load %arg5[%c0_39, %c0_40, %c0_41] : memref<2x96x48xf32, #tpu.memory_space<vmem>>, vector<1x96x48xf32>
    %41 = vector.shape_cast %40 : vector<1x96x48xf32> to vector<96x48xf32>
    %cst_42 = arith.constant dense<0.000000e+00> : vector<192x48xf32>
    %42 = tpu.matmul %39, %41, %cst_42 {dimension_numbers = #tpu.dot_dimension_numbers<[1], [0], [0], [1], [0, 0, 1, 1], [], []>} : vector<192x96xf32>, vector<96x48xf32>, vector<192x48xf32> -> vector<192x48xf32>
    %c1_43 = arith.constant 1 : index
    %c0_44 = arith.constant 0 : index
    %c0_45 = arith.constant 0 : index
    %43 = vector.load %arg5[%c1_43, %c0_44, %c0_45] : memref<2x96x48xf32, #tpu.memory_space<vmem>>, vector<1x96x48xf32>
    %44 = vector.shape_cast %43 : vector<1x96x48xf32> to vector<96x48xf32>
    %cst_46 = arith.constant dense<0.000000e+00> : vector<192x48xf32>
    %45 = tpu.matmul %39, %44, %cst_46 {dimension_numbers = #tpu.dot_dimension_numbers<[1], [0], [0], [1], [0, 0, 1, 1], [], []>} : vector<192x96xf32>, vector<96x48xf32>, vector<192x48xf32> -> vector<192x48xf32>
    %46 = arith.maximumf %42, %45 : vector<192x48xf32>
    %c0_47 = arith.constant 0 : index
    %c0_48 = arith.constant 0 : index
    %c0_49 = arith.constant 0 : index
    %47 = vector.load %arg6[%c0_47, %c0_48, %c0_49] : memref<2x96x192xf32, #tpu.memory_space<vmem>>, vector<1x96x192xf32>
    %48 = vector.shape_cast %47 : vector<1x96x192xf32> to vector<96x192xf32>
    %cst_50 = arith.constant dense<0.000000e+00> : vector<96x48xf32>
    %49 = tpu.matmul %48, %46, %cst_50 {dimension_numbers = #tpu.dot_dimension_numbers<[1], [0], [0], [1], [0, 0, 1, 1], [], []>} : vector<96x192xf32>, vector<192x48xf32>, vector<96x48xf32> -> vector<96x48xf32>
    %c1_51 = arith.constant 1 : index
    %c0_52 = arith.constant 0 : index
    %c0_53 = arith.constant 0 : index
    %50 = vector.load %arg6[%c1_51, %c0_52, %c0_53] : memref<2x96x192xf32, #tpu.memory_space<vmem>>, vector<1x96x192xf32>
    %51 = vector.shape_cast %50 : vector<1x96x192xf32> to vector<96x192xf32>
    %cst_54 = arith.constant dense<0.000000e+00> : vector<96x48xf32>
    %52 = tpu.matmul %51, %46, %cst_54 {dimension_numbers = #tpu.dot_dimension_numbers<[1], [0], [0], [1], [0, 0, 1, 1], [], []>} : vector<96x192xf32>, vector<192x48xf32>, vector<96x48xf32> -> vector<96x48xf32>
    %53 = arith.maximumf %49, %52 : vector<96x48xf32>
    %c0_55 = arith.constant 0 : index
    %c0_56 = arith.constant 0 : index
    %c0_57 = arith.constant 0 : index
    %54 = vector.load %arg7[%c0_55, %c0_56, %c0_57] : memref<5x64x96xf32, #tpu.memory_space<vmem>>, vector<1x64x96xf32>
    %55 = vector.shape_cast %54 : vector<1x64x96xf32> to vector<64x96xf32>
    %cst_58 = arith.constant dense<0.000000e+00> : vector<64x48xf32>
    %56 = tpu.matmul %55, %53, %cst_58 {dimension_numbers = #tpu.dot_dimension_numbers<[1], [0], [0], [1], [0, 0, 1, 1], [], []>} : vector<64x96xf32>, vector<96x48xf32>, vector<64x48xf32> -> vector<64x48xf32>
    %c0_59 = arith.constant 0 : index
    %c0_60 = arith.constant 0 : index
    %c0_61 = arith.constant 0 : index
    %57 = vector.load %arg8[%c0_59, %c0_60, %c0_61] : memref<5x48x128xf32, #tpu.memory_space<vmem>>, vector<1x48x128xf32>
    %58 = vector.shape_cast %57 : vector<1x48x128xf32> to vector<48x128xf32>
    %cst_62 = arith.constant dense<0.000000e+00> : vector<64x128xf32>
    %59 = tpu.matmul %56, %58, %cst_62 {dimension_numbers = #tpu.dot_dimension_numbers<[1], [0], [0], [1], [0, 0, 1, 1], [], []>} : vector<64x48xf32>, vector<48x128xf32>, vector<64x128xf32> -> vector<64x128xf32>
    %c1_63 = arith.constant 1 : index
    %c0_64 = arith.constant 0 : index
    %c0_65 = arith.constant 0 : index
    %60 = vector.load %arg7[%c1_63, %c0_64, %c0_65] : memref<5x64x96xf32, #tpu.memory_space<vmem>>, vector<1x64x96xf32>
    %61 = vector.shape_cast %60 : vector<1x64x96xf32> to vector<64x96xf32>
    %cst_66 = arith.constant dense<0.000000e+00> : vector<64x48xf32>
    %62 = tpu.matmul %61, %53, %cst_66 {dimension_numbers = #tpu.dot_dimension_numbers<[1], [0], [0], [1], [0, 0, 1, 1], [], []>} : vector<64x96xf32>, vector<96x48xf32>, vector<64x48xf32> -> vector<64x48xf32>
    %c1_67 = arith.constant 1 : index
    %c0_68 = arith.constant 0 : index
    %c0_69 = arith.constant 0 : index
    %63 = vector.load %arg8[%c1_67, %c0_68, %c0_69] : memref<5x48x128xf32, #tpu.memory_space<vmem>>, vector<1x48x128xf32>
    %64 = vector.shape_cast %63 : vector<1x48x128xf32> to vector<48x128xf32>
    %cst_70 = arith.constant dense<0.000000e+00> : vector<64x128xf32>
    %65 = tpu.matmul %62, %64, %cst_70 {dimension_numbers = #tpu.dot_dimension_numbers<[1], [0], [0], [1], [0, 0, 1, 1], [], []>} : vector<64x48xf32>, vector<48x128xf32>, vector<64x128xf32> -> vector<64x128xf32>
    %66 = arith.addf %59, %65 : vector<64x128xf32>
    %c2_71 = arith.constant 2 : index
    %c0_72 = arith.constant 0 : index
    %c0_73 = arith.constant 0 : index
    %67 = vector.load %arg7[%c2_71, %c0_72, %c0_73] : memref<5x64x96xf32, #tpu.memory_space<vmem>>, vector<1x64x96xf32>
    %68 = vector.shape_cast %67 : vector<1x64x96xf32> to vector<64x96xf32>
    %cst_74 = arith.constant dense<0.000000e+00> : vector<64x48xf32>
    %69 = tpu.matmul %68, %53, %cst_74 {dimension_numbers = #tpu.dot_dimension_numbers<[1], [0], [0], [1], [0, 0, 1, 1], [], []>} : vector<64x96xf32>, vector<96x48xf32>, vector<64x48xf32> -> vector<64x48xf32>
    %c2_75 = arith.constant 2 : index
    %c0_76 = arith.constant 0 : index
    %c0_77 = arith.constant 0 : index
    %70 = vector.load %arg8[%c2_75, %c0_76, %c0_77] : memref<5x48x128xf32, #tpu.memory_space<vmem>>, vector<1x48x128xf32>
    %71 = vector.shape_cast %70 : vector<1x48x128xf32> to vector<48x128xf32>
    %cst_78 = arith.constant dense<0.000000e+00> : vector<64x128xf32>
    %72 = tpu.matmul %69, %71, %cst_78 {dimension_numbers = #tpu.dot_dimension_numbers<[1], [0], [0], [1], [0, 0, 1, 1], [], []>} : vector<64x48xf32>, vector<48x128xf32>, vector<64x128xf32> -> vector<64x128xf32>
    %73 = arith.addf %66, %72 : vector<64x128xf32>
    %c3_79 = arith.constant 3 : index
    %c0_80 = arith.constant 0 : index
    %c0_81 = arith.constant 0 : index
    %74 = vector.load %arg7[%c3_79, %c0_80, %c0_81] : memref<5x64x96xf32, #tpu.memory_space<vmem>>, vector<1x64x96xf32>
    %75 = vector.shape_cast %74 : vector<1x64x96xf32> to vector<64x96xf32>
    %cst_82 = arith.constant dense<0.000000e+00> : vector<64x48xf32>
    %76 = tpu.matmul %75, %53, %cst_82 {dimension_numbers = #tpu.dot_dimension_numbers<[1], [0], [0], [1], [0, 0, 1, 1], [], []>} : vector<64x96xf32>, vector<96x48xf32>, vector<64x48xf32> -> vector<64x48xf32>
    %c3_83 = arith.constant 3 : index
    %c0_84 = arith.constant 0 : index
    %c0_85 = arith.constant 0 : index
    %77 = vector.load %arg8[%c3_83, %c0_84, %c0_85] : memref<5x48x128xf32, #tpu.memory_space<vmem>>, vector<1x48x128xf32>
    %78 = vector.shape_cast %77 : vector<1x48x128xf32> to vector<48x128xf32>
    %cst_86 = arith.constant dense<0.000000e+00> : vector<64x128xf32>
    %79 = tpu.matmul %76, %78, %cst_86 {dimension_numbers = #tpu.dot_dimension_numbers<[1], [0], [0], [1], [0, 0, 1, 1], [], []>} : vector<64x48xf32>, vector<48x128xf32>, vector<64x128xf32> -> vector<64x128xf32>
    %80 = arith.addf %73, %79 : vector<64x128xf32>
    %c4_87 = arith.constant 4 : index
    %c0_88 = arith.constant 0 : index
    %c0_89 = arith.constant 0 : index
    %81 = vector.load %arg7[%c4_87, %c0_88, %c0_89] : memref<5x64x96xf32, #tpu.memory_space<vmem>>, vector<1x64x96xf32>
    %82 = vector.shape_cast %81 : vector<1x64x96xf32> to vector<64x96xf32>
    %cst_90 = arith.constant dense<0.000000e+00> : vector<64x48xf32>
    %83 = tpu.matmul %82, %53, %cst_90 {dimension_numbers = #tpu.dot_dimension_numbers<[1], [0], [0], [1], [0, 0, 1, 1], [], []>} : vector<64x96xf32>, vector<96x48xf32>, vector<64x48xf32> -> vector<64x48xf32>
    %c4_91 = arith.constant 4 : index
    %c0_92 = arith.constant 0 : index
    %c0_93 = arith.constant 0 : index
    %84 = vector.load %arg8[%c4_91, %c0_92, %c0_93] : memref<5x48x128xf32, #tpu.memory_space<vmem>>, vector<1x48x128xf32>
    %85 = vector.shape_cast %84 : vector<1x48x128xf32> to vector<48x128xf32>
    %cst_94 = arith.constant dense<0.000000e+00> : vector<64x128xf32>
    %86 = tpu.matmul %83, %85, %cst_94 {dimension_numbers = #tpu.dot_dimension_numbers<[1], [0], [0], [1], [0, 0, 1, 1], [], []>} : vector<64x48xf32>, vector<48x128xf32>, vector<64x128xf32> -> vector<64x128xf32>
    %87 = arith.addf %80, %86 : vector<64x128xf32>
    %c0_95 = arith.constant 0 : index
    %c0_96 = arith.constant 0 : index
    %88 = vector.load %arg9[%c0_95, %c0_96] : memref<1x128xf32, #tpu.memory_space<vmem>>, vector<1x128xf32>
    %89 = vector.broadcast %88 : vector<1x128xf32> to vector<64x128xf32>
    %90 = arith.addf %87, %89 : vector<64x128xf32>
    %cst_97 = arith.constant 0.000000e+00 : f32
    %91 = vector.broadcast %cst_97 : f32 to vector<64x128xf32>
    %92 = arith.maximumf %90, %91 : vector<64x128xf32>
    %c0_98 = arith.constant 0 : index
    %c0_99 = arith.constant 0 : index
    %c0_100 = arith.constant 0 : index
    %93 = vector.load %arg10[%c0_98, %c0_99, %c0_100] : memref<2x128x64xf32, #tpu.memory_space<vmem>>, vector<1x128x64xf32>
    %94 = vector.shape_cast %93 : vector<1x128x64xf32> to vector<128x64xf32>
    %cst_101 = arith.constant dense<0.000000e+00> : vector<64x64xf32>
    %95 = tpu.matmul %92, %94, %cst_101 {dimension_numbers = #tpu.dot_dimension_numbers<[1], [0], [0], [1], [0, 0, 1, 1], [], []>} : vector<64x128xf32>, vector<128x64xf32>, vector<64x64xf32> -> vector<64x64xf32>
    %c1_102 = arith.constant 1 : index
    %c0_103 = arith.constant 0 : index
    %c0_104 = arith.constant 0 : index
    %96 = vector.load %arg10[%c1_102, %c0_103, %c0_104] : memref<2x128x64xf32, #tpu.memory_space<vmem>>, vector<1x128x64xf32>
    %97 = vector.shape_cast %96 : vector<1x128x64xf32> to vector<128x64xf32>
    %cst_105 = arith.constant dense<0.000000e+00> : vector<64x64xf32>
    %98 = tpu.matmul %92, %97, %cst_105 {dimension_numbers = #tpu.dot_dimension_numbers<[1], [0], [0], [1], [0, 0, 1, 1], [], []>} : vector<64x128xf32>, vector<128x64xf32>, vector<64x64xf32> -> vector<64x64xf32>
    %99 = arith.maximumf %95, %98 : vector<64x64xf32>
    %c0_106 = arith.constant 0 : index
    %c0_107 = arith.constant 0 : index
    %100 = vector.load %arg13[%c0_106, %c0_107] : memref<1x128xf32, #tpu.memory_space<vmem>>, vector<1x128xf32>
    %c0_108 = arith.constant 0 : index
    %c0_109 = arith.constant 0 : index
    %c0_110 = arith.constant 0 : index
    %101 = vector.load %arg11[%c0_108, %c0_109, %c0_110] : memref<8x8x64xf32, #tpu.memory_space<vmem>>, vector<1x8x64xf32>
    %102 = vector.shape_cast %101 : vector<1x8x64xf32> to vector<8x64xf32>
    %cst_111 = arith.constant dense<0.000000e+00> : vector<8x64xf32>
    %103 = tpu.matmul %102, %99, %cst_111 {dimension_numbers = #tpu.dot_dimension_numbers<[1], [0], [0], [1], [0, 0, 1, 1], [], []>} : vector<8x64xf32>, vector<64x64xf32>, vector<8x64xf32> -> vector<8x64xf32>
    %c1_112 = arith.constant 1 : index
    %c0_113 = arith.constant 0 : index
    %c0_114 = arith.constant 0 : index
    %104 = vector.load %arg11[%c1_112, %c0_113, %c0_114] : memref<8x8x64xf32, #tpu.memory_space<vmem>>, vector<1x8x64xf32>
    %105 = vector.shape_cast %104 : vector<1x8x64xf32> to vector<8x64xf32>
    %cst_115 = arith.constant dense<0.000000e+00> : vector<8x64xf32>
    %106 = tpu.matmul %105, %99, %cst_115 {dimension_numbers = #tpu.dot_dimension_numbers<[1], [0], [0], [1], [0, 0, 1, 1], [], []>} : vector<8x64xf32>, vector<64x64xf32>, vector<8x64xf32> -> vector<8x64xf32>
    %107 = arith.maximumf %103, %106 : vector<8x64xf32>
    %c0_116 = arith.constant 0 : index
    %c0_117 = arith.constant 0 : index
    %c0_118 = arith.constant 0 : index
    %108 = vector.load %arg12[%c0_116, %c0_117, %c0_118] : memref<4x64x128xf32, #tpu.memory_space<vmem>>, vector<1x64x128xf32>
    %109 = vector.shape_cast %108 : vector<1x64x128xf32> to vector<64x128xf32>
    %cst_119 = arith.constant dense<0.000000e+00> : vector<8x128xf32>
    %110 = tpu.matmul %107, %109, %cst_119 {dimension_numbers = #tpu.dot_dimension_numbers<[1], [0], [0], [1], [0, 0, 1, 1], [], []>} : vector<8x64xf32>, vector<64x128xf32>, vector<8x128xf32> -> vector<8x128xf32>
    %111 = vector.broadcast %100 : vector<1x128xf32> to vector<8x128xf32>
    %112 = arith.addf %111, %110 : vector<8x128xf32>
    %c2_120 = arith.constant 2 : index
    %c0_121 = arith.constant 0 : index
    %c0_122 = arith.constant 0 : index
    %113 = vector.load %arg11[%c2_120, %c0_121, %c0_122] : memref<8x8x64xf32, #tpu.memory_space<vmem>>, vector<1x8x64xf32>
    %114 = vector.shape_cast %113 : vector<1x8x64xf32> to vector<8x64xf32>
    %cst_123 = arith.constant dense<0.000000e+00> : vector<8x64xf32>
    %115 = tpu.matmul %114, %99, %cst_123 {dimension_numbers = #tpu.dot_dimension_numbers<[1], [0], [0], [1], [0, 0, 1, 1], [], []>} : vector<8x64xf32>, vector<64x64xf32>, vector<8x64xf32> -> vector<8x64xf32>
    %c3_124 = arith.constant 3 : index
    %c0_125 = arith.constant 0 : index
    %c0_126 = arith.constant 0 : index
    %116 = vector.load %arg11[%c3_124, %c0_125, %c0_126] : memref<8x8x64xf32, #tpu.memory_space<vmem>>, vector<1x8x64xf32>
    %117 = vector.shape_cast %116 : vector<1x8x64xf32> to vector<8x64xf32>
    %cst_127 = arith.constant dense<0.000000e+00> : vector<8x64xf32>
    %118 = tpu.matmul %117, %99, %cst_127 {dimension_numbers = #tpu.dot_dimension_numbers<[1], [0], [0], [1], [0, 0, 1, 1], [], []>} : vector<8x64xf32>, vector<64x64xf32>, vector<8x64xf32> -> vector<8x64xf32>
    %119 = arith.maximumf %115, %118 : vector<8x64xf32>
    %c1_128 = arith.constant 1 : index
    %c0_129 = arith.constant 0 : index
    %c0_130 = arith.constant 0 : index
    %120 = vector.load %arg12[%c1_128, %c0_129, %c0_130] : memref<4x64x128xf32, #tpu.memory_space<vmem>>, vector<1x64x128xf32>
    %121 = vector.shape_cast %120 : vector<1x64x128xf32> to vector<64x128xf32>
    %cst_131 = arith.constant dense<0.000000e+00> : vector<8x128xf32>
    %122 = tpu.matmul %119, %121, %cst_131 {dimension_numbers = #tpu.dot_dimension_numbers<[1], [0], [0], [1], [0, 0, 1, 1], [], []>} : vector<8x64xf32>, vector<64x128xf32>, vector<8x128xf32> -> vector<8x128xf32>
    %123 = arith.addf %112, %122 : vector<8x128xf32>
    %c4_132 = arith.constant 4 : index
    %c0_133 = arith.constant 0 : index
    %c0_134 = arith.constant 0 : index
    %124 = vector.load %arg11[%c4_132, %c0_133, %c0_134] : memref<8x8x64xf32, #tpu.memory_space<vmem>>, vector<1x8x64xf32>
    %125 = vector.shape_cast %124 : vector<1x8x64xf32> to vector<8x64xf32>
    %cst_135 = arith.constant dense<0.000000e+00> : vector<8x64xf32>
    %126 = tpu.matmul %125, %99, %cst_135 {dimension_numbers = #tpu.dot_dimension_numbers<[1], [0], [0], [1], [0, 0, 1, 1], [], []>} : vector<8x64xf32>, vector<64x64xf32>, vector<8x64xf32> -> vector<8x64xf32>
    %c5 = arith.constant 5 : index
    %c0_136 = arith.constant 0 : index
    %c0_137 = arith.constant 0 : index
    %127 = vector.load %arg11[%c5, %c0_136, %c0_137] : memref<8x8x64xf32, #tpu.memory_space<vmem>>, vector<1x8x64xf32>
    %128 = vector.shape_cast %127 : vector<1x8x64xf32> to vector<8x64xf32>
    %cst_138 = arith.constant dense<0.000000e+00> : vector<8x64xf32>
    %129 = tpu.matmul %128, %99, %cst_138 {dimension_numbers = #tpu.dot_dimension_numbers<[1], [0], [0], [1], [0, 0, 1, 1], [], []>} : vector<8x64xf32>, vector<64x64xf32>, vector<8x64xf32> -> vector<8x64xf32>
    %130 = arith.maximumf %126, %129 : vector<8x64xf32>
    %c2_139 = arith.constant 2 : index
    %c0_140 = arith.constant 0 : index
    %c0_141 = arith.constant 0 : index
    %131 = vector.load %arg12[%c2_139, %c0_140, %c0_141] : memref<4x64x128xf32, #tpu.memory_space<vmem>>, vector<1x64x128xf32>
    %132 = vector.shape_cast %131 : vector<1x64x128xf32> to vector<64x128xf32>
    %cst_142 = arith.constant dense<0.000000e+00> : vector<8x128xf32>
    %133 = tpu.matmul %130, %132, %cst_142 {dimension_numbers = #tpu.dot_dimension_numbers<[1], [0], [0], [1], [0, 0, 1, 1], [], []>} : vector<8x64xf32>, vector<64x128xf32>, vector<8x128xf32> -> vector<8x128xf32>
    %134 = arith.addf %123, %133 : vector<8x128xf32>
    %c6 = arith.constant 6 : index
    %c0_143 = arith.constant 0 : index
    %c0_144 = arith.constant 0 : index
    %135 = vector.load %arg11[%c6, %c0_143, %c0_144] : memref<8x8x64xf32, #tpu.memory_space<vmem>>, vector<1x8x64xf32>
    %136 = vector.shape_cast %135 : vector<1x8x64xf32> to vector<8x64xf32>
    %cst_145 = arith.constant dense<0.000000e+00> : vector<8x64xf32>
    %137 = tpu.matmul %136, %99, %cst_145 {dimension_numbers = #tpu.dot_dimension_numbers<[1], [0], [0], [1], [0, 0, 1, 1], [], []>} : vector<8x64xf32>, vector<64x64xf32>, vector<8x64xf32> -> vector<8x64xf32>
    %c7 = arith.constant 7 : index
    %c0_146 = arith.constant 0 : index
    %c0_147 = arith.constant 0 : index
    %138 = vector.load %arg11[%c7, %c0_146, %c0_147] : memref<8x8x64xf32, #tpu.memory_space<vmem>>, vector<1x8x64xf32>
    %139 = vector.shape_cast %138 : vector<1x8x64xf32> to vector<8x64xf32>
    %cst_148 = arith.constant dense<0.000000e+00> : vector<8x64xf32>
    %140 = tpu.matmul %139, %99, %cst_148 {dimension_numbers = #tpu.dot_dimension_numbers<[1], [0], [0], [1], [0, 0, 1, 1], [], []>} : vector<8x64xf32>, vector<64x64xf32>, vector<8x64xf32> -> vector<8x64xf32>
    %141 = arith.maximumf %137, %140 : vector<8x64xf32>
    %c3_149 = arith.constant 3 : index
    %c0_150 = arith.constant 0 : index
    %c0_151 = arith.constant 0 : index
    %142 = vector.load %arg12[%c3_149, %c0_150, %c0_151] : memref<4x64x128xf32, #tpu.memory_space<vmem>>, vector<1x64x128xf32>
    %143 = vector.shape_cast %142 : vector<1x64x128xf32> to vector<64x128xf32>
    %cst_152 = arith.constant dense<0.000000e+00> : vector<8x128xf32>
    %144 = tpu.matmul %141, %143, %cst_152 {dimension_numbers = #tpu.dot_dimension_numbers<[1], [0], [0], [1], [0, 0, 1, 1], [], []>} : vector<8x64xf32>, vector<64x128xf32>, vector<8x128xf32> -> vector<8x128xf32>
    %145 = arith.addf %134, %144 : vector<8x128xf32>
    %cst_153 = arith.constant 0.000000e+00 : f32
    %146 = vector.broadcast %cst_153 : f32 to vector<8x128xf32>
    %147 = arith.maximumf %145, %146 : vector<8x128xf32>
    %c0_154 = arith.constant 0 : index
    %c0_155 = arith.constant 0 : index
    %148 = vector.load %arg14[%c0_154, %c0_155] : memref<128x128xf32, #tpu.memory_space<vmem>>, vector<128x128xf32>
    %cst_156 = arith.constant dense<0.000000e+00> : vector<8x128xf32>
    %149 = tpu.matmul %147, %148, %cst_156 {dimension_numbers = #tpu.dot_dimension_numbers<[1], [0], [0], [1], [0, 0, 1, 1], [], []>} : vector<8x128xf32>, vector<128x128xf32>, vector<8x128xf32> -> vector<8x128xf32>
    %c0_157 = arith.constant 0 : index
    %c0_158 = arith.constant 0 : index
    %150 = vector.load %arg15[%c0_157, %c0_158] : memref<1x128xf32, #tpu.memory_space<vmem>>, vector<1x128xf32>
    %151 = vector.broadcast %150 : vector<1x128xf32> to vector<8x128xf32>
    %152 = arith.addf %149, %151 : vector<8x128xf32>
    %c0_159 = arith.constant 0 : index
    %c0_160 = arith.constant 0 : index
    %153 = vector.load %arg16[%c0_159, %c0_160] : memref<8x128xf32, #tpu.memory_space<vmem>>, vector<8x128xf32>
    tpu.vector_store %arg16[%c0_159, %c0_160], %152 {strides = array<i32>} : memref<8x128xf32, #tpu.memory_space<vmem>>, vector<8x128xf32>,
    return
  }
  func.func @transform_0(%arg0: i32) -> (i32, i32) {
    %c0_i32 = arith.constant 0 : i32
    %c0_i32_0 = arith.constant 0 : i32
    return %arg0, %c0_i32 : i32, i32
  }
  func.func @transform_1(%arg0: i32) -> (i32, i32, i32) {
    %c0_i32 = arith.constant 0 : i32
    %c0_i32_0 = arith.constant 0 : i32
    %c0_i32_1 = arith.constant 0 : i32
    %c0_i32_2 = arith.constant 0 : i32
    return %c0_i32, %c0_i32_0, %c0_i32_1 : i32, i32, i32
  }
  func.func @transform_2(%arg0: i32) -> (i32, i32, i32) {
    %c0_i32 = arith.constant 0 : i32
    %c0_i32_0 = arith.constant 0 : i32
    %c0_i32_1 = arith.constant 0 : i32
    %c0_i32_2 = arith.constant 0 : i32
    return %c0_i32, %c0_i32_0, %c0_i32_1 : i32, i32, i32
  }
  func.func @transform_3(%arg0: i32) -> (i32, i32) {
    %c0_i32 = arith.constant 0 : i32
    %c0_i32_0 = arith.constant 0 : i32
    %c0_i32_1 = arith.constant 0 : i32
    return %c0_i32, %c0_i32_0 : i32, i32
  }
  func.func @transform_4(%arg0: i32) -> (i32, i32, i32) {
    %c0_i32 = arith.constant 0 : i32
    %c0_i32_0 = arith.constant 0 : i32
    %c0_i32_1 = arith.constant 0 : i32
    %c0_i32_2 = arith.constant 0 : i32
    return %c0_i32, %c0_i32_0, %c0_i32_1 : i32, i32, i32
  }
  func.func @transform_5(%arg0: i32) -> (i32, i32, i32) {
    %c0_i32 = arith.constant 0 : i32
    %c0_i32_0 = arith.constant 0 : i32
    %c0_i32_1 = arith.constant 0 : i32
    %c0_i32_2 = arith.constant 0 : i32
    return %c0_i32, %c0_i32_0, %c0_i32_1 : i32, i32, i32
  }
  func.func @transform_6(%arg0: i32) -> (i32, i32, i32) {
    %c0_i32 = arith.constant 0 : i32
    %c0_i32_0 = arith.constant 0 : i32
    %c0_i32_1 = arith.constant 0 : i32
    %c0_i32_2 = arith.constant 0 : i32
    return %c0_i32, %c0_i32_0, %c0_i32_1 : i32, i32, i32
  }
  func.func @transform_7(%arg0: i32) -> (i32, i32, i32) {
    %c0_i32 = arith.constant 0 : i32
    %c0_i32_0 = arith.constant 0 : i32
    %c0_i32_1 = arith.constant 0 : i32
    %c0_i32_2 = arith.constant 0 : i32
    return %c0_i32, %c0_i32_0, %c0_i32_1 : i32, i32, i32
  }
  func.func @transform_8(%arg0: i32) -> (i32, i32) {
    %c0_i32 = arith.constant 0 : i32
    %c0_i32_0 = arith.constant 0 : i32
    %c0_i32_1 = arith.constant 0 : i32
    return %c0_i32, %c0_i32_0 : i32, i32
  }
  func.func @transform_9(%arg0: i32) -> (i32, i32, i32) {
    %c0_i32 = arith.constant 0 : i32
    %c0_i32_0 = arith.constant 0 : i32
    %c0_i32_1 = arith.constant 0 : i32
    %c0_i32_2 = arith.constant 0 : i32
    return %c0_i32, %c0_i32_0, %c0_i32_1 : i32, i32, i32
  }
  func.func @transform_10(%arg0: i32) -> (i32, i32, i32) {
    %c0_i32 = arith.constant 0 : i32
    %c0_i32_0 = arith.constant 0 : i32
    %c0_i32_1 = arith.constant 0 : i32
    %c0_i32_2 = arith.constant 0 : i32
    return %c0_i32, %c0_i32_0, %c0_i32_1 : i32, i32, i32
  }
  func.func @transform_11(%arg0: i32) -> (i32, i32, i32) {
    %c0_i32 = arith.constant 0 : i32
    %c0_i32_0 = arith.constant 0 : i32
    %c0_i32_1 = arith.constant 0 : i32
    %c0_i32_2 = arith.constant 0 : i32
    return %c0_i32, %c0_i32_0, %c0_i32_1 : i32, i32, i32
  }
  func.func @transform_12(%arg0: i32) -> (i32, i32) {
    %c0_i32 = arith.constant 0 : i32
    %c0_i32_0 = arith.constant 0 : i32
    %c0_i32_1 = arith.constant 0 : i32
    return %c0_i32, %c0_i32_0 : i32, i32
  }
  func.func @transform_13(%arg0: i32) -> (i32, i32) {
    %c0_i32 = arith.constant 0 : i32
    %c0_i32_0 = arith.constant 0 : i32
    %c0_i32_1 = arith.constant 0 : i32
    return %c0_i32, %c0_i32_0 : i32, i32
  }
  func.func @transform_14(%arg0: i32) -> (i32, i32) {
    %c0_i32 = arith.constant 0 : i32
    %c0_i32_0 = arith.constant 0 : i32
    %c0_i32_1 = arith.constant 0 : i32
    return %c0_i32, %c0_i32_0 : i32, i32
  }
  func.func @transform_15(%arg0: i32) -> (i32, i32) {
    %c0_i32 = arith.constant 0 : i32
    %c0_i32_0 = arith.constant 0 : i32
    return %arg0, %c0_i32 : i32, i32
  }
}

</mosaic_0001>

<bundles_post_ra>
// kernel: version1_forward.1
= control target key start
LH: loop header
LB: loop body
LE: loop exit
PB: predicated region body
PF: predicated region fallthrough
CT: control target
= control target key end

     0   :  { %20 = vsyncpa [#allocation3], 0  ;;  %s8827_s18 = smov [#allocation2]   ;;  %s11616_s0 = inlined_call_operand.vmem [shape: f32[224,28], index: 0, kind: input, shape index: {}]   ;;  %s11617_s1 = inlined_call_operand.hbm [shape: f32[5,192,224], index: 1, kind: input, shape index: {}]   ;;  %s11618_s2 = inlined_call_operand.vmem [shape: f32[5,28,96], index: 2, kind: input, shape index: {}]   ;;  %s11619_s3 = inlined_call_operand.vmem [shape: f32[1,96], index: 3, kind: input, shape index: {}]   ;;  %s11620_s4 = inlined_call_operand.vmem [shape: f32[2,96,48], index: 4, kind: input, shape index: {}]   ;;  %s11621_s5 = inlined_call_operand.vmem [shape: f32[2,96,192], index: 5, kind: input, shape index: {}]   ;;  %s11622_s6 = inlined_call_operand.vmem [shape: f32[5,64,96], index: 6, kind: input, shape index: {}]   ;;  %s11623_s7 = inlined_call_operand.vmem [shape: f32[5,48,128], index: 7, kind: input, shape index: {}]   ;;  %s11624_s8 = inlined_call_operand.vmem [shape: f32[1,128], index: 8, kind: input, shape index: {}]   ;;  %s11625_s9 = inlined_call_operand.vmem [shape: f32[2,128,64], index: 9, kind: input, shape index: {}]   ;;  %s11626_s10 = inlined_call_operand.vmem [shape: f32[8,8,64], index: 10, kind: input, shape index: {}]   ;;  %s11627_s11 = inlined_call_operand.vmem [shape: f32[4,64,128], index: 11, kind: input, shape index: {}]   ;;  %s11628_s12 = inlined_call_operand.vmem [shape: f32[1,128], index: 12, kind: input, shape index: {}]   ;;  %s11629_s13 = inlined_call_operand.vmem [shape: f32[128,128], index: 13, kind: input, shape index: {}]   ;;  %s11630_s14 = inlined_call_operand.vmem [shape: f32[1,128], index: 14, kind: input, shape index: {}]   ;;  %s11631_s15 = inlined_call_operand.vmem [shape: f32[8,128], index: 15, kind: output, shape index: {}]  }
   0x1   :  { %s28_s19 = sshll.u32 %s8827_s18, 4  ;;  %s29_s19 = int_to_ptr.vmem [resolvable:$true] %s28_s19 }
   0x2   :  { %s8813_s20 = scalar_lea.vmem %s29_s19, 30720  ;;  %p8818_p1 = scmp.lt.s32.totalorder %s29_s19, %s29_s19 }
   0x3   :  { %p8814_p0 = scmp.ne.s32.totalorder %s29_s19, %s8813_s20  ;;  %p8819_p2 = scmp.lt.s32.totalorder %s8813_s20, %s8813_s20 }
   0x5   :  { %p8820_p3 = por %p8819_p2, %p8818_p1 }
   0x7   :  { %p8821_p4 = pnand %p8820_p3, %p8814_p0 }
   0x9   :  { %8824 = shalt.err (!%p8821_p4)
}
   0xa   :  { %s8828_s21 = smov 256   ;;  %s8829_s22 = smov 16  }
   0xb   :  { %34 = dma.hbm_to_vmem [thread:$0]  %s11617_s1, 30720, %s29_s19, [#allocation3], %s8828_s21, %s8828_s21, %s8829_s22  }
   0xc   :  { %8825 = dma.done.wait [#allocation3], 30720  }
   0xd   :  { %8826 = vsyncadd [#allocation3], 4294936576  ;;  %v11632_v0 = vmov 0.0   ;;  %v8920_v1 = vld [vmem:[%s11616_s0 + $0x78] sm:$0xff]  ;;  %v8925_v2 = vld [vmem:[%s11616_s0 + $0x70] sm:$0xff]  ;;  %vm140_vm0 = vcmask 785408  }
   0xe   :  { %213 = vmatprep.subr.mxu0 %v11632_v0  ;;  %523 = vmatprep.subr.mxu1 %v11632_v0  ;;  %v8934_v3 = vld [vmem:[%s11616_s0 + $0x68] sm:$0xff]  ;;  %v8943_v4 = vld [vmem:[%s11616_s0 + $0x60] sm:$0xff]  ;;  %v8952_v5 = vld [vmem:[%s11616_s0 + $0x58] sm:$0xff]  ;;  %vm786_vm1 = vcmask 1043456   ;;  %vm713_vm2 = vcmask 228352   ;;  %vm3590_vm3 = vcmask 523264  }
   0xf   :  { %214 = vmatpush1.msra.mxu0 %v8920_v1  ;;  %524 = vmatpush1.msra.mxu1 %v8920_v1  ;;  %v8961_v6 = vld [vmem:[%s11616_s0 + $0x50] sm:$0xff]  ;;  %v8970_v7 = vld [vmem:[%s11616_s0 + $0x48] sm:$0xff]  ;;  %v8979_v8 = vld [vmem:[%s11616_s0 + $0x40] sm:$0xff]  ;;  %vm4238_vm4 = vcmask 392192   ;;  %vm8831_vm5 = vmmov 0  }
  0x10   :  { %215 = vmatprep.subr.mxu0 %v11632_v0  ;;  %525 = vmatprep.subr.mxu1 %v11632_v0  ;;  %v8988_v9 = vld [vmem:[%s11616_s0 + $0x38] sm:$0xff]  ;;  %v8997_v10 = vld [vmem:[%s11616_s0 + $0x30] sm:$0xff]  ;;  %v9006_v11 = vld [vmem:[%s11616_s0 + $0x28] sm:$0xff] }
  0x11   :  { %216 = vmatpush1.msra.mxu0 %v8925_v2  ;;  %526 = vmatpush1.msra.mxu1 %v8925_v2  ;;  %v9015_v12 = vld [vmem:[%s11616_s0 + $0x20] sm:$0xff]  ;;  %v9024_v13 = vld [vmem:[%s11616_s0 + $0x18] sm:$0xff]  ;;  %v9033_v14 = vld [vmem:[%s11616_s0 + $0x10] sm:$0xff] }
  0x12   :  { %217 = vmatprep.subr.mxu0 %v11632_v0  ;;  %527 = vmatprep.subr.mxu1 %v11632_v0  ;;  %v9042_v15 = vld [vmem:[%s11616_s0 + $0x8] sm:$0xff]  ;;  %v9051_v16 = vld [vmem:[%s11616_s0] sm:$0xff]  ;;  %v9060_v17 = vld [vmem:[%s11616_s0 + $0xd8] sm:$0xff] }
  0x13   :  { %218 = vmatpush1.msra.mxu0 %v8934_v3  ;;  %528 = vmatpush1.msra.mxu1 %v8934_v3  ;;  %v9069_v18 = vld [vmem:[%s11616_s0 + $0xd0] sm:$0xff]  ;;  %v9078_v19 = vld [vmem:[%s11616_s0 + $0xc8] sm:$0xff]  ;;  %v9087_v20 = vld [vmem:[%s11616_s0 + $0xc0] sm:$0xff] }
  0x14   :  { %219 = vmatprep.subr.mxu0 %v11632_v0  ;;  %529 = vmatprep.subr.mxu1 %v11632_v0  ;;  %v9096_v21 = vld [vmem:[%s11616_s0 + $0xb8] sm:$0xff]  ;;  %v9105_v22 = vld [vmem:[%s11616_s0 + $0xb0] sm:$0xff]  ;;  %v9114_v23 = vld [vmem:[%s11616_s0 + $0xa8] sm:$0xff] }
  0x15   :  { %220 = vmatpush1.msra.mxu0 %v8943_v4  ;;  %530 = vmatpush1.msra.mxu1 %v8943_v4  ;;  %v9123_v24 = vld [vmem:[%s11616_s0 + $0xa0] sm:$0xff]  ;;  %v9132_v25 = vld [vmem:[%s11616_s0 + $0x98] sm:$0xff]  ;;  %v9141_v26 = vld [vmem:[%s11616_s0 + $0x90] sm:$0xff] }
  0x16   :  { %221 = vmatprep.subr.mxu0 %v11632_v0  ;;  %531 = vmatprep.subr.mxu1 %v11632_v0  ;;  %v9150_v27 = vld [vmem:[%s11616_s0 + $0x88] sm:$0xff]  ;;  %v9159_v28 = vld [vmem:[%s11616_s0 + $0x80] sm:$0xff]  ;;  %v95_v33 = vld [vmem:[#allocation2 + $0x18] sm:$0xff] }
  0x17   :  { %222 = vmatpush1.msra.mxu0 %v8952_v5  ;;  %532 = vmatpush1.msra.mxu1 %v8952_v5  ;;  %v93_v29 = vld [vmem:[#allocation2 + $0x8] sm:$0xff]  ;;  %v92_v31 = vld [vmem:[#allocation2] sm:$0xff]  ;;  %v406_v34 = vld [vmem:[#allocation2 + $0x198] sm:$0xff] }
  0x18   :  { %223 = vmatprep.subr.mxu0 %v11632_v0  ;;  %533 = vmatprep.subr.mxu1 %v11632_v0  ;;  %v404_v30 = vld [vmem:[#allocation2 + $0x188] sm:$0xff]  ;;  %v403_v32 = vld [vmem:[#allocation2 + $0x180] sm:$0xff]  ;;  %v6709_v35 = vld [vmem:[%s11618_s2 + $0x38] sm:$0xf] }
  0x19   :  { %224 = vmatpush1.msra.mxu0 %v8961_v6  ;;  %534 = vmatpush1.msra.mxu1 %v8961_v6  ;;  %v401_v36 = vld [vmem:[%s11618_s2 + $0x18] sm:$0xf]  ;;  %v94_v37 = vld [vmem:[#allocation2 + $0x10] sm:$0xff]  ;;  %v97_v39 = vld [vmem:[#allocation2 + $0x28] sm:$0xff] }
  0x1a   :  { %225 = vmatprep.subr.mxu0 %v11632_v0  ;;  %535 = vmatprep.subr.mxu1 %v11632_v0  ;;  %v405_v38 = vld [vmem:[#allocation2 + $0x190] sm:$0xff]  ;;  %v408_v40 = vld [vmem:[#allocation2 + $0x1a8] sm:$0xff]  ;;  %v96_v43 = vld [vmem:[#allocation2 + $0x20] sm:$0xff] }
  0x1b   :  { %226 = vmatpush1.msra.mxu0 %v8970_v7  ;;  %536 = vmatpush1.msra.mxu1 %v8970_v7  ;;  %v6708_v41 = vld [vmem:[%s11618_s2 + $0x30] sm:$0xff]  ;;  %v407_v44 = vld [vmem:[#allocation2 + $0x1a0] sm:$0xff]  ;;  %v99_v45 = vld [vmem:[#allocation2 + $0x38] sm:$0xff] }
  0x1c   :  { %227 = vmatprep.subr.mxu0 %v11632_v0  ;;  %537 = vmatprep.subr.mxu1 %v11632_v0  ;;  %v400_v42 = vld [vmem:[%s11618_s2 + $0x10] sm:$0xff]  ;;  %v410_v46 = vld [vmem:[#allocation2 + $0x1b8] sm:$0xff]  ;;  %v101_v49 = vld [vmem:[#allocation2 + $0x48] sm:$0xff] }
  0x1d   :  { %228 = vmatpush1.msra.mxu0 %v8979_v8  ;;  %538 = vmatpush1.msra.mxu1 %v8979_v8  ;;  %v98_v47 = vld [vmem:[#allocation2 + $0x30] sm:$0xff]  ;;  %v412_v50 = vld [vmem:[#allocation2 + $0x1c8] sm:$0xff]  ;;  %v100_v51 = vld [vmem:[#allocation2 + $0x40] sm:$0xff] }
  0x1e   :  { %229 = vmatprep.subr.mxu0 %v11632_v0  ;;  %539 = vmatprep.subr.mxu1 %v11632_v0  ;;  %v409_v48 = vld [vmem:[#allocation2 + $0x1b0] sm:$0xff]  ;;  %v411_v52 = vld [vmem:[#allocation2 + $0x1c0] sm:$0xff]  ;;  %v103_v53 = vld [vmem:[#allocation2 + $0x58] sm:$0xff] }
  0x1f   :  { %230 = vmatpush1.msra.mxu0 %v8988_v9  ;;  %540 = vmatpush1.msra.mxu1 %v8988_v9  ;;  %v414_v54 = vld [vmem:[#allocation2 + $0x1d8] sm:$0xff]  ;;  %v102_v55 = vld [vmem:[#allocation2 + $0x50] sm:$0xff]  ;;  %v105_v57 = vld [vmem:[#allocation2 + $0x68] sm:$0xff] }
  0x20   :  { %231 = vmatprep.subr.mxu0 %v11632_v0  ;;  %541 = vmatprep.subr.mxu1 %v11632_v0  ;;  %v413_v56 = vld [vmem:[#allocation2 + $0x1d0] sm:$0xff]  ;;  %v416_v58 = vld [vmem:[#allocation2 + $0x1e8] sm:$0xff]  ;;  %v104_v59 = vld [vmem:[#allocation2 + $0x60] sm:$0xff] }
  0x21   :  { %232 = vmatpush1.msra.mxu0 %v8997_v10  ;;  %542 = vmatpush1.msra.mxu1 %v8997_v10  ;;  %v415_v60 = vld [vmem:[#allocation2 + $0x1e0] sm:$0xff]  ;;  %v107_v61 = vld [vmem:[#allocation2 + $0x78] sm:$0xff]  ;;  %v106_v63 = vld [vmem:[#allocation2 + $0x70] sm:$0xff] }
  0x22   :  { %233 = vmatprep.subr.mxu0 %v11632_v0  ;;  %543 = vmatprep.subr.mxu1 %v11632_v0  ;;  %v418_v62 = vld [vmem:[#allocation2 + $0x1f8] sm:$0xff] }
  0x23   :  { %234 = vmatpush1.msra.mxu0 %v9006_v11  ;;  %544 = vmatpush1.msra.mxu1 %v9006_v11 }
  0x24   :  { %235 = vmatprep.subr.mxu0 %v11632_v0  ;;  %545 = vmatprep.subr.mxu1 %v11632_v0 }
  0x25   :  { %236 = vmatpush1.msra.mxu0 %v9015_v12  ;;  %546 = vmatpush1.msra.mxu1 %v9015_v12 }
  0x26   :  { %237 = vmatprep.subr.mxu0 %v11632_v0  ;;  %547 = vmatprep.subr.mxu1 %v11632_v0 }
  0x27   :  { %238 = vmatpush1.msra.mxu0 %v9024_v13  ;;  %548 = vmatpush1.msra.mxu1 %v9024_v13 }
  0x28   :  { %239 = vmatprep.subr.mxu0 %v11632_v0  ;;  %549 = vmatprep.subr.mxu1 %v11632_v0 }
  0x29   :  { %240 = vmatpush1.msra.mxu0 %v9033_v14  ;;  %550 = vmatpush1.msra.mxu1 %v9033_v14 }
  0x2a   :  { %241 = vmatprep.subr.mxu0 %v11632_v0  ;;  %551 = vmatprep.subr.mxu1 %v11632_v0 }
  0x2b   :  { %242 = vmatpush1.msra.mxu0 %v9042_v15  ;;  %552 = vmatpush1.msra.mxu1 %v9042_v15 }
  0x2c   :  { %243 = vmatprep.subr.mxu0 %v11632_v0  ;;  %553 = vmatprep.subr.mxu1 %v11632_v0 }
  0x2d   :  { %244 = vmatpush1.msra.mxu0 %v9051_v16  ;;  %554 = vmatpush1.msra.mxu1 %v9051_v16 }
  0x2e   :  { %253 = vmatprep.subr.mxu0 %v11632_v0  ;;  %563 = vmatprep.subr.mxu1 %v11632_v0 }
  0x2f   :  { %254 = vmatpush2.msra.mxu0 %v9060_v17  ;;  %564 = vmatpush2.msra.mxu1 %v9060_v17 }
  0x30   :  { %255 = vmatprep.subr.mxu0 %v11632_v0  ;;  %565 = vmatprep.subr.mxu1 %v11632_v0 }
  0x31   :  { %256 = vmatpush2.msra.mxu0 %v9069_v18  ;;  %566 = vmatpush2.msra.mxu1 %v9069_v18 }
  0x32   :  { %257 = vmatprep.subr.mxu0 %v11632_v0  ;;  %567 = vmatprep.subr.mxu1 %v11632_v0 }
  0x33   :  { %258 = vmatpush2.msra.mxu0 %v9078_v19  ;;  %568 = vmatpush2.msra.mxu1 %v9078_v19 }
  0x34   :  { %259 = vmatprep.subr.mxu0 %v11632_v0  ;;  %569 = vmatprep.subr.mxu1 %v11632_v0 }
  0x35   :  { %260 = vmatpush2.msra.mxu0 %v9087_v20  ;;  %570 = vmatpush2.msra.mxu1 %v9087_v20 }
  0x36   :  { %261 = vmatprep.subr.mxu0 %v11632_v0  ;;  %571 = vmatprep.subr.mxu1 %v11632_v0 }
  0x37   :  { %262 = vmatpush2.msra.mxu0 %v9096_v21  ;;  %572 = vmatpush2.msra.mxu1 %v9096_v21 }
  0x38   :  { %263 = vmatprep.subr.mxu0 %v11632_v0  ;;  %573 = vmatprep.subr.mxu1 %v11632_v0 }
  0x39   :  { %264 = vmatpush2.msra.mxu0 %v9105_v22  ;;  %574 = vmatpush2.msra.mxu1 %v9105_v22 }
  0x3a   :  { %265 = vmatprep.subr.mxu0 %v11632_v0  ;;  %575 = vmatprep.subr.mxu1 %v11632_v0 }
  0x3b   :  { %266 = vmatpush2.msra.mxu0 %v9114_v23  ;;  %576 = vmatpush2.msra.mxu1 %v9114_v23 }
  0x3c   :  { %267 = vmatprep.subr.mxu0 %v11632_v0  ;;  %577 = vmatprep.subr.mxu1 %v11632_v0 }
  0x3d   :  { %268 = vmatpush2.msra.mxu0 %v9123_v24  ;;  %578 = vmatpush2.msra.mxu1 %v9123_v24 }
  0x3e   :  { %269 = vmatprep.subr.mxu0 %v11632_v0  ;;  %579 = vmatprep.subr.mxu1 %v11632_v0 }
  0x3f   :  { %270 = vmatpush2.msra.mxu0 %v9132_v25  ;;  %580 = vmatpush2.msra.mxu1 %v9132_v25 }
  0x40   :  { %271 = vmatprep.subr.mxu0 %v11632_v0  ;;  %581 = vmatprep.subr.mxu1 %v11632_v0 }
  0x41   :  { %272 = vmatpush2.msra.mxu0 %v9141_v26  ;;  %582 = vmatpush2.msra.mxu1 %v9141_v26 }
  0x42   :  { %273 = vmatprep.subr.mxu0 %v11632_v0  ;;  %583 = vmatprep.subr.mxu1 %v11632_v0 }
  0x43   :  { %274 = vmatpush2.msra.mxu0 %v9150_v27  ;;  %584 = vmatpush2.msra.mxu1 %v9150_v27 }
  0x44   :  { %275 = vmatprep.subr.mxu0 %v11632_v0  ;;  %585 = vmatprep.subr.mxu1 %v11632_v0 }
  0x45   :  { %276 = vmatpush2.msra.mxu0 %v9159_v28  ;;  %6658 = vmatprep.mubr.msk.f32.mxu0 %vm140_vm0, %v93_v29  ;;  %v417_v29 = vld [vmem:[#allocation2 + $0x1f0] sm:$0xff] }
  0x46   :  { %586 = vmatpush2.msra.mxu1 %v9159_v28  ;;  %6682 = vmatprep.mubr.msk.f32.mxu1 %vm140_vm0, %v404_v30  ;;  %v109_v30 = vld [vmem:[#allocation2 + $0x88] sm:$0xff] }
  0x47   :  { %278 = vmatmul.mubr.f32.vlgmr.msra.gmra.mxu0 %v92_v31  ;;  %588 = vmatmul.mubr.f32.vlgmr.msra.gmra.mxu1 %v403_v32  ;;  %v420_v31 = vld [vmem:[#allocation2 + $0x208] sm:$0xff]  ;;  %v108_v32 = vld [vmem:[#allocation2 + $0x80] sm:$0xff] }
  0x48   :  { %6659 = vmatprep.mubr.msk.f32.mxu0 %vm140_vm0, %v95_v33  ;;  %6683 = vmatprep.mubr.msk.f32.mxu1 %vm140_vm0, %v406_v34  ;;  %v419_v33 = vld [vmem:[#allocation2 + $0x200] sm:$0xff]  ;;  %v111_v34 = vld [vmem:[#allocation2 + $0x98] sm:$0xff] }
  0x49   :  { %7781 = vmatprep.subr.msk.mxu0 %vm786_vm1, %v6709_v35  ;;  %7825 = vmatprep.subr.msk.mxu1 %vm786_vm1, %v401_v36 }
  0x4a   :  { %7782 = vmatpush3.msk.msra.mxu0 %vm786_vm1, %v6709_v35  ;;  %7826 = vmatpush3.msk.msra.mxu1 %vm786_vm1, %v401_v36  ;;  %v422_v35 = vld [vmem:[#allocation2 + $0x218] sm:$0xff]  ;;  %v110_v36 = vld [vmem:[#allocation2 + $0x90] sm:$0xff] }
  0x4b   :  { %283 = vmatmul.mubr.f32.gmra.mxu0 %v94_v37  ;;  %593 = vmatmul.mubr.f32.gmra.mxu1 %v405_v38  ;;  %v421_v37 = vld [vmem:[#allocation2 + $0x210] sm:$0xff]  ;;  %v113_v38 = vld [vmem:[#allocation2 + $0xa8] sm:$0xff] }
  0x4c   :  { %6660 = vmatprep.mubr.msk.f32.mxu0 %vm140_vm0, %v97_v39  ;;  %6684 = vmatprep.mubr.msk.f32.mxu1 %vm140_vm0, %v408_v40  ;;  %v424_v39 = vld [vmem:[#allocation2 + $0x228] sm:$0xff]  ;;  %v112_v40 = vld [vmem:[#allocation2 + $0xa0] sm:$0xff] }
  0x4d   :  { %7783 = vmatprep.subr.mxu0 %v6708_v41  ;;  %7827 = vmatprep.subr.mxu1 %v400_v42 }
  0x4e   :  { %7784 = vmatpush3.msra.mxu0 %v6708_v41  ;;  %7828 = vmatpush3.msra.mxu1 %v400_v42  ;;  %v423_v41 = vld [vmem:[#allocation2 + $0x220] sm:$0xff]  ;;  %v115_v42 = vld [vmem:[#allocation2 + $0xb8] sm:$0xff] }
  0x4f   :  { %288 = vmatmul.mubr.f32.gmra.mxu0 %v96_v43  ;;  %598 = vmatmul.mubr.f32.gmra.mxu1 %v407_v44  ;;  %v426_v43 = vld [vmem:[#allocation2 + $0x238] sm:$0xff]  ;;  %v114_v44 = vld [vmem:[#allocation2 + $0xb0] sm:$0xff] }
  0x50   :  { %6661 = vmatprep.mubr.msk.f32.mxu0 %vm140_vm0, %v99_v45  ;;  %6685 = vmatprep.mubr.msk.f32.mxu1 %vm140_vm0, %v410_v46  ;;  %v425_v45 = vld [vmem:[#allocation2 + $0x230] sm:$0xff]  ;;  %v117_v46 = vld [vmem:[#allocation2 + $0xc8] sm:$0xff] }
  0x53   :  { %293 = vmatmul.mubr.f32.gmra.mxu0 %v98_v47  ;;  %603 = vmatmul.mubr.f32.gmra.mxu1 %v409_v48  ;;  %v428_v47 = vld [vmem:[#allocation2 + $0x248] sm:$0xff]  ;;  %v116_v48 = vld [vmem:[#allocation2 + $0xc0] sm:$0xff] }
  0x54   :  { %6662 = vmatprep.mubr.msk.f32.mxu0 %vm140_vm0, %v101_v49  ;;  %6686 = vmatprep.mubr.msk.f32.mxu1 %vm140_vm0, %v412_v50  ;;  %v427_v49 = vld [vmem:[#allocation2 + $0x240] sm:$0xff]  ;;  %v119_v50 = vld [vmem:[#allocation2 + $0xd8] sm:$0xff] }
  0x57   :  { %298 = vmatmul.mubr.f32.gmra.mxu0 %v100_v51  ;;  %608 = vmatmul.mubr.f32.gmra.mxu1 %v411_v52  ;;  %v430_v51 = vld [vmem:[#allocation2 + $0x258] sm:$0xff]  ;;  %v118_v52 = vld [vmem:[#allocation2 + $0xd0] sm:$0xff] }
  0x58   :  { %6663 = vmatprep.mubr.msk.f32.mxu0 %vm140_vm0, %v103_v53  ;;  %6687 = vmatprep.mubr.msk.f32.mxu1 %vm140_vm0, %v414_v54  ;;  %v429_v53 = vld [vmem:[#allocation2 + $0x250] sm:$0xff]  ;;  %v121_v54 = vld [vmem:[#allocation2 + $0xe8] sm:$0xff] }
  0x5b   :  { %303 = vmatmul.mubr.f32.gmra.mxu0 %v102_v55  ;;  %613 = vmatmul.mubr.f32.gmra.mxu1 %v413_v56  ;;  %v432_v55 = vld [vmem:[#allocation2 + $0x268] sm:$0xff]  ;;  %v120_v56 = vld [vmem:[#allocation2 + $0xe0] sm:$0xff] }
  0x5c   :  { %6664 = vmatprep.mubr.msk.f32.mxu0 %vm140_vm0, %v105_v57  ;;  %6688 = vmatprep.mubr.msk.f32.mxu1 %vm140_vm0, %v416_v58  ;;  %v431_v57 = vld [vmem:[#allocation2 + $0x260] sm:$0xff]  ;;  %v123_v58 = vld [vmem:[#allocation2 + $0xf8] sm:$0xff] }
  0x5f   :  { %308 = vmatmul.mubr.f32.gmra.mxu0 %v104_v59  ;;  %618 = vmatmul.mubr.f32.gmra.mxu1 %v415_v60  ;;  %v434_v59 = vld [vmem:[#allocation2 + $0x278] sm:$0xff]  ;;  %v122_v60 = vld [vmem:[#allocation2 + $0xf0] sm:$0xff] }
  0x60   :  { %6665 = vmatprep.mubr.msk.f32.mxu0 %vm140_vm0, %v107_v61  ;;  %6689 = vmatprep.mubr.msk.f32.mxu1 %vm140_vm0, %v418_v62  ;;  %v433_v61 = vld [vmem:[#allocation2 + $0x270] sm:$0xff]  ;;  %v125_v62 = vld [vmem:[#allocation2 + $0x108] sm:$0xff] }
  0x63   :  { %313 = vmatmul.mubr.f32.gmra.mxu0 %v106_v63  ;;  %623 = vmatmul.mubr.f32.gmra.mxu1 %v417_v29  ;;  %v436_v63 = vld [vmem:[#allocation2 + $0x288] sm:$0xff]  ;;  %v124_v29 = vld [vmem:[#allocation2 + $0x100] sm:$0xff] }
  0x64   :  { %6666 = vmatprep.mubr.msk.f32.mxu0 %vm140_vm0, %v109_v30  ;;  %6690 = vmatprep.mubr.msk.f32.mxu1 %vm140_vm0, %v420_v31  ;;  %v435_v30 = vld [vmem:[#allocation2 + $0x280] sm:$0xff]  ;;  %v127_v31 = vld [vmem:[#allocation2 + $0x118] sm:$0xff] }
  0x67   :  { %318 = vmatmul.mubr.f32.gmra.mxu0 %v108_v32  ;;  %628 = vmatmul.mubr.f32.gmra.mxu1 %v419_v33  ;;  %v438_v32 = vld [vmem:[#allocation2 + $0x298] sm:$0xff]  ;;  %v6707_v33 = vld [vmem:[%s11618_s2 + $0x28] sm:$0xff] }
  0x68   :  { %6667 = vmatprep.mubr.msk.f32.mxu0 %vm140_vm0, %v111_v34  ;;  %6691 = vmatprep.mubr.msk.f32.mxu1 %vm140_vm0, %v422_v35  ;;  %v399_v34 = vld [vmem:[%s11618_s2 + $0x8] sm:$0xff]  ;;  %v126_v35 = vld [vmem:[#allocation2 + $0x110] sm:$0xff] }
  0x69   :  { %7785 = vmatprep.subr.mxu0 %v6707_v33  ;;  %7829 = vmatprep.subr.mxu1 %v399_v34 }
  0x6a   :  { %7786 = vmatpush3.msra.mxu0 %v6707_v33  ;;  %7830 = vmatpush3.msra.mxu1 %v399_v34 }
  0x6b   :  { %323 = vmatmul.mubr.f32.gmra.mxu0 %v110_v36  ;;  %633 = vmatmul.mubr.f32.gmra.mxu1 %v421_v37  ;;  %v437_v36 = vld [vmem:[#allocation2 + $0x290] sm:$0xff]  ;;  %v129_v37 = vld [vmem:[#allocation2 + $0x128] sm:$0xff] }
  0x6c   :  { %6668 = vmatprep.mubr.msk.f32.mxu0 %vm140_vm0, %v113_v38  ;;  %6692 = vmatprep.mubr.msk.f32.mxu1 %vm140_vm0, %v424_v39  ;;  %v440_v38 = vld [vmem:[#allocation2 + $0x2a8] sm:$0xff]  ;;  %v6706_v39 = vld [vmem:[%s11618_s2 + $0x20] sm:$0xff] }
  0x6d   :  { %7787 = vmatprep.subr.mxu0 %v6706_v39 }
  0x6e   :  { %7788 = vmatpush3.msra.mxu0 %v6706_v39 }
  0x6f   :  { %328 = vmatmul.mubr.f32.gmra.mxu0 %v112_v40  ;;  %638 = vmatmul.mubr.f32.gmra.mxu1 %v423_v41  ;;  %v398_v40 = vld [vmem:[%s11618_s2] sm:$0xff] }
  0x70   :  { %6669 = vmatprep.mubr.msk.f32.mxu0 %vm140_vm0, %v115_v42  ;;  %6693 = vmatprep.mubr.msk.f32.mxu1 %vm140_vm0, %v426_v43  ;;  %v128_v41 = vld [vmem:[#allocation2 + $0x120] sm:$0xff]  ;;  %v131_v43 = vld [vmem:[#allocation2 + $0x138] sm:$0xff] }
  0x71   :  { %v439_v42 = vld [vmem:[#allocation2 + $0x2a0] sm:$0xff]  ;;  %7831 = vmatprep.subr.mxu1 %v398_v40  ;;  %1356 = vmatprep.subr.mxu0 %v11632_v0 }
  0x72   :  { %7832 = vmatpush3.msra.mxu1 %v398_v40 }
  0x73   :  { %333 = vmatmul.mubr.f32.gmra.mxu0 %v114_v44  ;;  %643 = vmatmul.mubr.f32.gmra.mxu1 %v425_v45  ;;  %v442_v44 = vld [vmem:[#allocation2 + $0x2b8] sm:$0xff]  ;;  %v130_v45 = vld [vmem:[#allocation2 + $0x130] sm:$0xff] }
  0x74   :  { %6670 = vmatprep.mubr.msk.f32.mxu0 %vm140_vm0, %v117_v46  ;;  %6694 = vmatprep.mubr.msk.f32.mxu1 %vm140_vm0, %v428_v47  ;;  %v441_v46 = vld [vmem:[#allocation2 + $0x2b0] sm:$0xff]  ;;  %v133_v47 = vld [vmem:[#allocation2 + $0x148] sm:$0xff] }
  0x77   :  { %338 = vmatmul.mubr.f32.gmra.mxu0 %v116_v48  ;;  %648 = vmatmul.mubr.f32.gmra.mxu1 %v427_v49  ;;  %v444_v48 = vld [vmem:[#allocation2 + $0x2c8] sm:$0xff]  ;;  %v132_v49 = vld [vmem:[#allocation2 + $0x140] sm:$0xff] }
  0x78   :  { %6671 = vmatprep.mubr.msk.f32.mxu0 %vm140_vm0, %v119_v50  ;;  %6695 = vmatprep.mubr.msk.f32.mxu1 %vm140_vm0, %v430_v51  ;;  %v443_v50 = vld [vmem:[#allocation2 + $0x2c0] sm:$0xff]  ;;  %v135_v51 = vld [vmem:[#allocation2 + $0x158] sm:$0xff] }
  0x7b   :  { %343 = vmatmul.mubr.f32.gmra.mxu0 %v118_v52  ;;  %653 = vmatmul.mubr.f32.gmra.mxu1 %v429_v53  ;;  %v446_v52 = vld [vmem:[#allocation2 + $0x2d8] sm:$0xff]  ;;  %v134_v53 = vld [vmem:[#allocation2 + $0x150] sm:$0xff] }
  0x7c   :  { %6672 = vmatprep.mubr.msk.f32.mxu0 %vm140_vm0, %v121_v54  ;;  %6696 = vmatprep.mubr.msk.f32.mxu1 %vm140_vm0, %v432_v55  ;;  %v445_v54 = vld [vmem:[#allocation2 + $0x2d0] sm:$0xff]  ;;  %v137_v55 = vld [vmem:[#allocation2 + $0x168] sm:$0xff] }
  0x7f   :  { %348 = vmatmul.mubr.f32.gmra.mxu0 %v120_v56  ;;  %658 = vmatmul.mubr.f32.gmra.mxu1 %v431_v57  ;;  %v448_v56 = vld [vmem:[#allocation2 + $0x2e8] sm:$0xff]  ;;  %v136_v57 = vld [vmem:[#allocation2 + $0x160] sm:$0xff] }
  0x80   :  { %6673 = vmatprep.mubr.msk.f32.mxu0 %vm140_vm0, %v123_v58  ;;  %6697 = vmatprep.mubr.msk.f32.mxu1 %vm140_vm0, %v434_v59  ;;  %v447_v58 = vld [vmem:[#allocation2 + $0x2e0] sm:$0xff]  ;;  %v139_v59 = vld [vmem:[#allocation2 + $0x178] sm:$0xff] }
  0x83   :  { %353 = vmatmul.mubr.f32.gmra.mxu0 %v122_v60  ;;  %663 = vmatmul.mubr.f32.gmra.mxu1 %v433_v61  ;;  %v450_v60 = vld [vmem:[#allocation2 + $0x2f8] sm:$0xff]  ;;  %v138_v61 = vld [vmem:[#allocation2 + $0x170] sm:$0xff] }
  0x84   :  { %6674 = vmatprep.mubr.msk.f32.mxu0 %vm140_vm0, %v125_v62  ;;  %6698 = vmatprep.mubr.msk.f32.mxu1 %vm140_vm0, %v436_v63  ;;  %v449_v62 = vld [vmem:[#allocation2 + $0x2f0] sm:$0xff] }
  0x87   :  { %358 = vmatmul.mubr.f32.gmra.mxu0 %v124_v29  ;;  %668 = vmatmul.mubr.f32.gmra.mxu1 %v435_v30 }
  0x88   :  { %6675 = vmatprep.mubr.msk.f32.mxu0 %vm140_vm0, %v127_v31  ;;  %6699 = vmatprep.mubr.msk.f32.mxu1 %vm140_vm0, %v438_v32 }
  0x8b   :  { %363 = vmatmul.mubr.f32.gmra.mxu0 %v126_v35  ;;  %673 = vmatmul.mubr.f32.gmra.mxu1 %v437_v36 }
  0x8c   :  { %6676 = vmatprep.mubr.msk.f32.mxu0 %vm140_vm0, %v129_v37  ;;  %6700 = vmatprep.mubr.msk.f32.mxu1 %vm140_vm0, %v440_v38 }
  0x8f   :  { %368 = vmatmul.mubr.f32.gmra.mxu0 %v128_v41  ;;  %678 = vmatmul.mubr.f32.gmra.mxu1 %v439_v42 }
  0x90   :  { %6677 = vmatprep.mubr.msk.f32.mxu0 %vm140_vm0, %v131_v43  ;;  %6701 = vmatprep.mubr.msk.f32.mxu1 %vm140_vm0, %v442_v44 }
  0x93   :  { %373 = vmatmul.mubr.f32.gmra.mxu0 %v130_v45  ;;  %683 = vmatmul.mubr.f32.gmra.mxu1 %v441_v46 }
  0x94   :  { %6678 = vmatprep.mubr.msk.f32.mxu0 %vm140_vm0, %v133_v47  ;;  %6702 = vmatprep.mubr.msk.f32.mxu1 %vm140_vm0, %v444_v48 }
  0x97   :  { %378 = vmatmul.mubr.f32.gmra.mxu0 %v132_v49  ;;  %688 = vmatmul.mubr.f32.gmra.mxu1 %v443_v50 }
  0x98   :  { %6679 = vmatprep.mubr.msk.f32.mxu0 %vm140_vm0, %v135_v51  ;;  %6703 = vmatprep.mubr.msk.f32.mxu1 %vm140_vm0, %v446_v52 }
  0x9b   :  { %383 = vmatmul.mubr.f32.gmra.mxu0 %v134_v53  ;;  %693 = vmatmul.mubr.f32.gmra.mxu1 %v445_v54 }
  0x9c   :  { %6680 = vmatprep.mubr.msk.f32.mxu0 %vm140_vm0, %v137_v55  ;;  %6704 = vmatprep.mubr.msk.f32.mxu1 %vm140_vm0, %v448_v56 }
  0x9f   :  { %388 = vmatmul.mubr.f32.gmra.mxu0 %v136_v57  ;;  %698 = vmatmul.mubr.f32.gmra.mxu1 %v447_v58 }
  0xa0   :  { %6681 = vmatprep.mubr.msk.f32.mxu0 %vm140_vm0, %v139_v59  ;;  %6705 = vmatprep.mubr.msk.f32.mxu1 %vm140_vm0, %v450_v60 }
  0xa3   :  { %393 = vmatmul.mubr.f32.gmra.mxu0 %v138_v61  ;;  %703 = vmatmul.mubr.f32.gmra.mxu1 %v449_v62 }
 0x107   :  { %v279_v63 = vpop.f32.mrf.mxu0  ;;  %v589_v29 = vpop.f32.mrf.mxu1 }
 0x108   :  { %7789 = vmatprep.mubr.msk.f32.mxu0 %vm713_vm2, %v589_v29  ;;  %7833 = vmatprep.mubr.msk.f32.mxu1 %vm713_vm2, %v279_v63 }
 0x109   :  { %v281_v30 = vpop.f32.mrf.mxu0  ;;  %v591_v31 = vpop.f32.mrf.mxu1 }
 0x10b   :  { %v284_v32 = vpop.f32.mrf.mxu0  ;;  %v594_v33 = vpop.f32.mrf.mxu1 }
 0x10c   :  { %7790 = vmatmul.mubr.msk.f32.vlgmr.msra.gmra.mxu0 %vm713_vm2, %v594_v33  ;;  %7834 = vmatmul.mubr.msk.f32.vlgmr.msra.gmra.mxu1 %vm713_vm2, %v284_v32 }
 0x10d   :  { %v286_v34 = vpop.f32.mrf.mxu0  ;;  %v596_v35 = vpop.f32.mrf.mxu1  ;;  %1357 = vmatpush1.msra.mxu0 %v8920_v1 }
 0x10e   :  { %1358 = vmatprep.subr.mxu0 %v11632_v0 }
 0x10f   :  { %v289_v36 = vpop.f32.mrf.mxu0  ;;  %v599_v37 = vpop.f32.mrf.mxu1  ;;  %1359 = vmatpush1.msra.mxu0 %v8925_v2 }
 0x110   :  { %7792 = vmatprep.mubr.msk.f32.mxu0 %vm713_vm2, %v599_v37  ;;  %7836 = vmatprep.mubr.msk.f32.mxu1 %vm713_vm2, %v289_v36 }
 0x111   :  { %v291_v38 = vpop.f32.mrf.mxu0  ;;  %v601_v39 = vpop.f32.mrf.mxu1  ;;  %1360 = vmatprep.subr.mxu0 %v11632_v0 }
 0x112   :  { %1361 = vmatpush1.msra.mxu0 %v8934_v3 }
 0x113   :  { %v294_v40 = vpop.f32.mrf.mxu0  ;;  %v604_v41 = vpop.f32.mrf.mxu1  ;;  %1362 = vmatprep.subr.mxu0 %v11632_v0 }
 0x114   :  { %7793 = vmatmul.mubr.msk.f32.gmra.mxu0 %vm713_vm2, %v604_v41  ;;  %7837 = vmatmul.mubr.msk.f32.gmra.mxu1 %vm713_vm2, %v294_v40 }
 0x115   :  { %v296_v1 = vpop.f32.mrf.mxu0  ;;  %v606_v2 = vpop.f32.mrf.mxu1  ;;  %1363 = vmatpush1.msra.mxu0 %v8943_v4 }
 0x116   :  { %1364 = vmatprep.subr.mxu0 %v11632_v0 }
 0x117   :  { %v299_v42 = vpop.f32.mrf.mxu0  ;;  %v609_v43 = vpop.f32.mrf.mxu1  ;;  %1365 = vmatpush1.msra.mxu0 %v8952_v5 }
 0x118   :  { %7795 = vmatprep.mubr.msk.f32.mxu0 %vm713_vm2, %v609_v43  ;;  %7839 = vmatprep.mubr.msk.f32.mxu1 %vm713_vm2, %v299_v42 }
 0x119   :  { %v301_v3 = vpop.f32.mrf.mxu0  ;;  %v611_v44 = vpop.f32.mrf.mxu1  ;;  %1366 = vmatprep.subr.mxu0 %v11632_v0 }
 0x11a   :  { %1367 = vmatpush1.msra.mxu0 %v8961_v6 }
 0x11b   :  { %v304_v45 = vpop.f32.mrf.mxu0  ;;  %v614_v46 = vpop.f32.mrf.mxu1  ;;  %1368 = vmatprep.subr.mxu0 %v11632_v0 }
 0x11c   :  { %7796 = vmatmul.mubr.msk.f32.gmra.mxu0 %vm713_vm2, %v614_v46  ;;  %7840 = vmatmul.mubr.msk.f32.gmra.mxu1 %vm713_vm2, %v304_v45 }
 0x11d   :  { %v306_v4 = vpop.f32.mrf.mxu0  ;;  %v616_v5 = vpop.f32.mrf.mxu1  ;;  %1369 = vmatpush1.msra.mxu0 %v8970_v7 }
 0x11e   :  { %1370 = vmatprep.subr.mxu0 %v11632_v0 }
 0x11f   :  { %v309_v47 = vpop.f32.mrf.mxu0  ;;  %v619_v48 = vpop.f32.mrf.mxu1  ;;  %1371 = vmatpush1.msra.mxu0 %v8979_v8 }
 0x120   :  { %7798 = vmatprep.mubr.msk.f32.mxu0 %vm713_vm2, %v619_v48  ;;  %7842 = vmatprep.mubr.msk.f32.mxu1 %vm713_vm2, %v309_v47 }
 0x121   :  { %v311_v6 = vpop.f32.mrf.mxu0  ;;  %v621_v49 = vpop.f32.mrf.mxu1  ;;  %1372 = vmatprep.subr.mxu0 %v11632_v0 }
 0x122   :  { %1373 = vmatpush1.msra.mxu0 %v8988_v9 }
 0x123   :  { %v314_v50 = vpop.f32.mrf.mxu0  ;;  %v624_v51 = vpop.f32.mrf.mxu1  ;;  %1374 = vmatprep.subr.mxu0 %v11632_v0 }
 0x124   :  { %7799 = vmatmul.mubr.msk.f32.gmra.mxu0 %vm713_vm2, %v624_v51  ;;  %7843 = vmatmul.mubr.msk.f32.gmra.mxu1 %vm713_vm2, %v314_v50  ;;  %v1237_v51 = vld [vmem:[#allocation2 + $0x308] sm:$0xff] }
 0x125   :  { %v316_v7 = vpop.f32.mrf.mxu0  ;;  %v626_v8 = vpop.f32.mrf.mxu1  ;;  %1375 = vmatpush1.msra.mxu0 %v8997_v10 }
 0x126   :  { %1376 = vmatprep.subr.mxu0 %v11632_v0 }
 0x127   :  { %v319_v52 = vpop.f32.mrf.mxu0  ;;  %v629_v53 = vpop.f32.mrf.mxu1  ;;  %1377 = vmatpush1.msra.mxu0 %v9006_v11 }
 0x128   :  { %7801 = vmatprep.mubr.msk.f32.mxu0 %vm713_vm2, %v629_v53  ;;  %7845 = vmatprep.mubr.msk.f32.mxu1 %vm713_vm2, %v319_v52  ;;  %v1236_v53 = vld [vmem:[#allocation2 + $0x300] sm:$0xff] }
 0x129   :  { %v321_v9 = vpop.f32.mrf.mxu0  ;;  %v631_v54 = vpop.f32.mrf.mxu1  ;;  %1378 = vmatprep.subr.mxu0 %v11632_v0 }
 0x12a   :  { %1379 = vmatpush1.msra.mxu0 %v9015_v12  ;;  %v1239_v54 = vld [vmem:[#allocation2 + $0x318] sm:$0xff] }
 0x12b   :  { %v324_v55 = vpop.f32.mrf.mxu0  ;;  %v634_v56 = vpop.f32.mrf.mxu1  ;;  %1380 = vmatprep.subr.mxu0 %v11632_v0 }
 0x12c   :  { %7802 = vmatmul.mubr.msk.f32.gmra.mxu0 %vm713_vm2, %v634_v56  ;;  %7846 = vmatmul.mubr.msk.f32.gmra.mxu1 %vm713_vm2, %v324_v55  ;;  %v1238_v55 = vld [vmem:[#allocation2 + $0x310] sm:$0xff]  ;;  %v1241_v56 = vld [vmem:[#allocation2 + $0x328] sm:$0xff] }
 0x12d   :  { %v326_v10 = vpop.f32.mrf.mxu0  ;;  %v636_v11 = vpop.f32.mrf.mxu1  ;;  %1381 = vmatpush1.msra.mxu0 %v9024_v13 }
 0x12e   :  { %1382 = vmatprep.subr.mxu0 %v11632_v0  ;;  %v1240_v10 = vld [vmem:[#allocation2 + $0x320] sm:$0xff]  ;;  %v1243_v11 = vld [vmem:[#allocation2 + $0x338] sm:$0xff] }
 0x12f   :  { %v329_v57 = vpop.f32.mrf.mxu0  ;;  %v639_v58 = vpop.f32.mrf.mxu1  ;;  %1383 = vmatpush1.msra.mxu0 %v9033_v14 }
 0x130   :  { %7804 = vmatprep.mubr.msk.f32.mxu0 %vm713_vm2, %v639_v58  ;;  %7848 = vmatprep.mubr.msk.f32.mxu1 %vm713_vm2, %v329_v57  ;;  %v1242_v57 = vld [vmem:[#allocation2 + $0x330] sm:$0xff]  ;;  %v1245_v58 = vld [vmem:[#allocation2 + $0x348] sm:$0xff] }
 0x131   :  { %v331_v12 = vpop.f32.mrf.mxu0  ;;  %v641_v59 = vpop.f32.mrf.mxu1  ;;  %1384 = vmatprep.subr.mxu0 %v11632_v0 }
 0x132   :  { %1385 = vmatpush1.msra.mxu0 %v9042_v15  ;;  %v1244_v12 = vld [vmem:[#allocation2 + $0x340] sm:$0xff]  ;;  %v1247_v59 = vld [vmem:[#allocation2 + $0x358] sm:$0xff] }
 0x133   :  { %v334_v60 = vpop.f32.mrf.mxu0  ;;  %v644_v61 = vpop.f32.mrf.mxu1  ;;  %1386 = vmatprep.subr.mxu0 %v11632_v0 }
 0x134   :  { %7805 = vmatmul.mubr.msk.f32.gmra.mxu0 %vm713_vm2, %v644_v61  ;;  %7849 = vmatmul.mubr.msk.f32.gmra.mxu1 %vm713_vm2, %v334_v60  ;;  %v1246_v60 = vld [vmem:[#allocation2 + $0x350] sm:$0xff]  ;;  %v1249_v61 = vld [vmem:[#allocation2 + $0x368] sm:$0xff] }
 0x135   :  { %v336_v13 = vpop.f32.mrf.mxu0  ;;  %v646_v14 = vpop.f32.mrf.mxu1  ;;  %1387 = vmatpush1.msra.mxu0 %v9051_v16 }
 0x136   :  { %1396 = vmatprep.subr.mxu0 %v11632_v0  ;;  %v1248_v13 = vld [vmem:[#allocation2 + $0x360] sm:$0xff]  ;;  %v1251_v14 = vld [vmem:[#allocation2 + $0x378] sm:$0xff] }
 0x137   :  { %v339_v62 = vpop.f32.mrf.mxu0  ;;  %v649_v63 = vpop.f32.mrf.mxu1  ;;  %1397 = vmatpush2.msra.mxu0 %v9060_v17 }
 0x138   :  { %7807 = vmatprep.mubr.msk.f32.mxu0 %vm713_vm2, %v649_v63  ;;  %7851 = vmatprep.mubr.msk.f32.mxu1 %vm713_vm2, %v339_v62  ;;  %v1250_v62 = vld [vmem:[#allocation2 + $0x370] sm:$0xff]  ;;  %v1253_v63 = vld [vmem:[#allocation2 + $0x388] sm:$0xff] }
 0x139   :  { %v341_v15 = vpop.f32.mrf.mxu0  ;;  %v651_v29 = vpop.f32.mrf.mxu1  ;;  %1398 = vmatprep.subr.mxu0 %v11632_v0 }
 0x13a   :  { %1399 = vmatpush2.msra.mxu0 %v9069_v18  ;;  %v1252_v15 = vld [vmem:[#allocation2 + $0x380] sm:$0xff]  ;;  %v1255_v29 = vld [vmem:[#allocation2 + $0x398] sm:$0xff] }
 0x13b   :  { %v344_v30 = vpop.f32.mrf.mxu0  ;;  %v654_v31 = vpop.f32.mrf.mxu1  ;;  %1400 = vmatprep.subr.mxu0 %v11632_v0 }
 0x13c   :  { %7808 = vmatmul.mubr.msk.f32.gmra.mxu0 %vm713_vm2, %v654_v31  ;;  %7852 = vmatmul.mubr.msk.f32.gmra.mxu1 %vm713_vm2, %v344_v30  ;;  %v1254_v30 = vld [vmem:[#allocation2 + $0x390] sm:$0xff]  ;;  %v1257_v31 = vld [vmem:[#allocation2 + $0x3a8] sm:$0xff] }
 0x13d   :  { %v346_v16 = vpop.f32.mrf.mxu0  ;;  %v656_v17 = vpop.f32.mrf.mxu1  ;;  %1401 = vmatpush2.msra.mxu0 %v9078_v19 }
 0x13e   :  { %1402 = vmatprep.subr.mxu0 %v11632_v0  ;;  %v1256_v16 = vld [vmem:[#allocation2 + $0x3a0] sm:$0xff]  ;;  %v1259_v17 = vld [vmem:[#allocation2 + $0x3b8] sm:$0xff] }
 0x13f   :  { %v349_v32 = vpop.f32.mrf.mxu0  ;;  %v659_v33 = vpop.f32.mrf.mxu1  ;;  %1403 = vmatpush2.msra.mxu0 %v9087_v20 }
 0x140   :  { %7810 = vmatprep.mubr.msk.f32.mxu0 %vm713_vm2, %v659_v33  ;;  %7854 = vmatprep.mubr.msk.f32.mxu1 %vm713_vm2, %v349_v32  ;;  %v1258_v32 = vld [vmem:[#allocation2 + $0x3b0] sm:$0xff]  ;;  %v1261_v33 = vld [vmem:[#allocation2 + $0x3c8] sm:$0xff] }
 0x141   :  { %v351_v18 = vpop.f32.mrf.mxu0  ;;  %v661_v34 = vpop.f32.mrf.mxu1  ;;  %1404 = vmatprep.subr.mxu0 %v11632_v0 }
 0x142   :  { %1405 = vmatpush2.msra.mxu0 %v9096_v21  ;;  %v1260_v18 = vld [vmem:[#allocation2 + $0x3c0] sm:$0xff]  ;;  %v1263_v34 = vld [vmem:[#allocation2 + $0x3d8] sm:$0xff] }
 0x143   :  { %v354_v35 = vpop.f32.mrf.mxu0  ;;  %v664_v36 = vpop.f32.mrf.mxu1  ;;  %1406 = vmatprep.subr.mxu0 %v11632_v0 }
 0x144   :  { %7811 = vmatmul.mubr.msk.f32.gmra.mxu0 %vm713_vm2, %v664_v36  ;;  %7855 = vmatmul.mubr.msk.f32.gmra.mxu1 %vm713_vm2, %v354_v35  ;;  %v1262_v35 = vld [vmem:[#allocation2 + $0x3d0] sm:$0xff]  ;;  %v1265_v36 = vld [vmem:[#allocation2 + $0x3e8] sm:$0xff] }
 0x145   :  { %v356_v19 = vpop.f32.mrf.mxu0  ;;  %v666_v20 = vpop.f32.mrf.mxu1  ;;  %1407 = vmatpush2.msra.mxu0 %v9105_v22 }
 0x146   :  { %1408 = vmatprep.subr.mxu0 %v11632_v0  ;;  %v1264_v19 = vld [vmem:[#allocation2 + $0x3e0] sm:$0xff]  ;;  %v1267_v20 = vld [vmem:[#allocation2 + $0x3f8] sm:$0xff] }
 0x147   :  { %v359_v37 = vpop.f32.mrf.mxu0  ;;  %v669_v38 = vpop.f32.mrf.mxu1  ;;  %1409 = vmatpush2.msra.mxu0 %v9114_v23 }
 0x148   :  { %7813 = vmatprep.mubr.msk.f32.mxu0 %vm713_vm2, %v669_v38  ;;  %7857 = vmatprep.mubr.msk.f32.mxu1 %vm713_vm2, %v359_v37  ;;  %v1266_v37 = vld [vmem:[#allocation2 + $0x3f0] sm:$0xff]  ;;  %v1269_v38 = vld [vmem:[#allocation2 + $0x408] sm:$0xff] }
 0x149   :  { %v361_v21 = vpop.f32.mrf.mxu0  ;;  %v671_v39 = vpop.f32.mrf.mxu1  ;;  %1410 = vmatprep.subr.mxu0 %v11632_v0 }
 0x14a   :  { %1411 = vmatpush2.msra.mxu0 %v9123_v24  ;;  %v6787_v21 = vld [vmem:[%s11618_s2 + $0x58] sm:$0xf]  ;;  %v1268_v39 = vld [vmem:[#allocation2 + $0x400] sm:$0xff] }
 0x14b   :  { %v364_v40 = vpop.f32.mrf.mxu0  ;;  %v674_v41 = vpop.f32.mrf.mxu1  ;;  %1412 = vmatprep.subr.mxu0 %v11632_v0  ;;  %7869 = vmatprep.subr.msk.mxu1 %vm786_vm1, %v6787_v21 }
 0x14c   :  { %7814 = vmatmul.mubr.msk.f32.gmra.mxu0 %vm713_vm2, %v674_v41  ;;  %7858 = vmatmul.mubr.msk.f32.gmra.mxu1 %vm713_vm2, %v364_v40  ;;  %v1271_v40 = vld [vmem:[#allocation2 + $0x418] sm:$0xff]  ;;  %v6786_v41 = vld [vmem:[%s11618_s2 + $0x50] sm:$0xff] }
 0x14d   :  { %v366_v22 = vpop.f32.mrf.mxu0  ;;  %v676_v23 = vpop.f32.mrf.mxu1  ;;  %1413 = vmatpush2.msra.mxu0 %v9132_v25  ;;  %7870 = vmatpush3.msk.msra.mxu1 %vm786_vm1, %v6787_v21 }
 0x14e   :  { %1414 = vmatprep.subr.mxu0 %v11632_v0  ;;  %7871 = vmatprep.subr.mxu1 %v6786_v41  ;;  %v6785_v22 = vld [vmem:[%s11618_s2 + $0x48] sm:$0xff]  ;;  %v1270_v23 = vld [vmem:[#allocation2 + $0x410] sm:$0xff] }
 0x14f   :  { %v369_v1 = vpop.f32.mrf.mxu0  ;;  %v679_v2 = vpop.f32.mrf.mxu1  ;;  %1415 = vmatpush2.msra.mxu0 %v9141_v26  ;;  %7872 = vmatpush3.msra.mxu1 %v6786_v41 }
 0x150   :  { %7816 = vmatprep.mubr.msk.f32.mxu0 %vm713_vm2, %v679_v2  ;;  %7860 = vmatprep.mubr.msk.f32.mxu1 %vm713_vm2, %v369_v1  ;;  %v1273_v1 = vld [vmem:[#allocation2 + $0x428] sm:$0xff]  ;;  %v6784_v2 = vld [vmem:[%s11618_s2 + $0x40] sm:$0xff] }
 0x151   :  { %v371_v24 = vpop.f32.mrf.mxu0  ;;  %v681_v42 = vpop.f32.mrf.mxu1  ;;  %1416 = vmatprep.subr.mxu0 %v11632_v0  ;;  %7873 = vmatprep.subr.mxu1 %v6785_v22 }
 0x152   :  { %1417 = vmatpush2.msra.mxu0 %v9150_v27  ;;  %7874 = vmatpush3.msra.mxu1 %v6785_v22  ;;  %v1272_v24 = vld [vmem:[#allocation2 + $0x420] sm:$0xff]  ;;  %v1275_v42 = vld [vmem:[#allocation2 + $0x438] sm:$0xff] }
 0x153   :  { %v374_v43 = vpop.f32.mrf.mxu0  ;;  %v684_v3 = vpop.f32.mrf.mxu1  ;;  %1418 = vmatprep.subr.mxu0 %v11632_v0  ;;  %7875 = vmatprep.subr.mxu1 %v6784_v2 }
 0x154   :  { %7817 = vmatmul.mubr.msk.f32.gmra.mxu0 %vm713_vm2, %v684_v3  ;;  %7861 = vmatmul.mubr.msk.f32.gmra.mxu1 %vm713_vm2, %v374_v43  ;;  %v1274_v43 = vld [vmem:[#allocation2 + $0x430] sm:$0xff]  ;;  %v1277_v3 = vld [vmem:[#allocation2 + $0x448] sm:$0xff] }
 0x155   :  { %v376_v25 = vpop.f32.mrf.mxu0  ;;  %v686_v26 = vpop.f32.mrf.mxu1  ;;  %1419 = vmatpush2.msra.mxu0 %v9159_v28  ;;  %7876 = vmatpush3.msra.mxu1 %v6784_v2 }
 0x156   :  { %1951 = vmatprep.subr.mxu1 %v11632_v0  ;;  %v1276_v25 = vld [vmem:[#allocation2 + $0x440] sm:$0xff]  ;;  %v1279_v26 = vld [vmem:[#allocation2 + $0x458] sm:$0xff] }
 0x157   :  { %v379_v44 = vpop.f32.mrf.mxu0  ;;  %v689_v45 = vpop.f32.mrf.mxu1 }
 0x158   :  { %7819 = vmatprep.mubr.msk.f32.mxu0 %vm713_vm2, %v689_v45  ;;  %7863 = vmatprep.mubr.msk.f32.mxu1 %vm713_vm2, %v379_v44  ;;  %v1278_v44 = vld [vmem:[#allocation2 + $0x450] sm:$0xff]  ;;  %v1281_v45 = vld [vmem:[#allocation2 + $0x468] sm:$0xff] }
 0x159   :  { %v381_v46 = vpop.f32.mrf.mxu0  ;;  %v691_v27 = vpop.f32.mrf.mxu1 }
 0x15a   :  { %v1280_v46 = vld [vmem:[#allocation2 + $0x460] sm:$0xff]  ;;  %v1283_v27 = vld [vmem:[#allocation2 + $0x478] sm:$0xff] }
 0x15b   :  { %v384_v4 = vpop.f32.mrf.mxu0  ;;  %v694_v5 = vpop.f32.mrf.mxu1 }
 0x15c   :  { %7820 = vmatmul.mubr.msk.f32.gmra.mxu0 %vm713_vm2, %v694_v5  ;;  %7864 = vmatmul.mubr.msk.f32.gmra.mxu1 %vm713_vm2, %v384_v4  ;;  %v1282_v4 = vld [vmem:[#allocation2 + $0x470] sm:$0xff] }
 0x15d   :  { %v386_v47 = vpop.f32.mrf.mxu0  ;;  %v696_v48 = vpop.f32.mrf.mxu1 }
 0x15f   :  { %v389_v6 = vpop.f32.mrf.mxu0  ;;  %v699_v49 = vpop.f32.mrf.mxu1 }
 0x160   :  { %7822 = vmatprep.mubr.msk.f32.mxu0 %vm713_vm2, %v699_v49  ;;  %7866 = vmatprep.mubr.msk.f32.mxu1 %vm713_vm2, %v389_v6 }
 0x161   :  { %v391_v28 = vpop.f32.mrf.mxu0  ;;  %v701_v50 = vpop.f32.mrf.mxu1 }
 0x163   :  { %v394_v7 = vpop.f32.mrf.mxu0  ;;  %v704_v8 = vpop.f32.mrf.mxu1 }
 0x164   :  { %7823 = vmatmul.mubr.msk.f32.gmra.mxu0 %vm713_vm2, %v704_v8  ;;  %7867 = vmatmul.mubr.msk.f32.gmra.mxu1 %vm713_vm2, %v394_v7 }
 0x165   :  { %v706_v52 = vpop.f32.mrf.mxu1  ;;  %6760 = vmatprep.mubr.msk.f32.mxu0 %vm140_vm0, %v1237_v51  ;;  %v396_v9 = vpop.f32.mrf.mxu0 }
 0x168   :  { %1421 = vmatmul.mubr.f32.vlgmr.msra.gmra.mxu0 %v1236_v53 }
 0x169   :  { %6761 = vmatprep.mubr.msk.f32.mxu0 %vm140_vm0, %v1239_v54 }
 0x16c   :  { %1426 = vmatmul.mubr.f32.gmra.mxu0 %v1238_v55 }
 0x16d   :  { %6762 = vmatprep.mubr.msk.f32.mxu0 %vm140_vm0, %v1241_v56 }
 0x170   :  { %1431 = vmatmul.mubr.f32.gmra.mxu0 %v1240_v10 }
 0x171   :  { %6763 = vmatprep.mubr.msk.f32.mxu0 %vm140_vm0, %v1243_v11 }
 0x174   :  { %1436 = vmatmul.mubr.f32.gmra.mxu0 %v1242_v57 }
 0x175   :  { %6764 = vmatprep.mubr.msk.f32.mxu0 %vm140_vm0, %v1245_v58 }
 0x178   :  { %1441 = vmatmul.mubr.f32.gmra.mxu0 %v1244_v12 }
 0x179   :  { %6765 = vmatprep.mubr.msk.f32.mxu0 %vm140_vm0, %v1247_v59 }
 0x17c   :  { %1446 = vmatmul.mubr.f32.gmra.mxu0 %v1246_v60 }
 0x17d   :  { %6766 = vmatprep.mubr.msk.f32.mxu0 %vm140_vm0, %v1249_v61 }
 0x180   :  { %1451 = vmatmul.mubr.f32.gmra.mxu0 %v1248_v13 }
 0x181   :  { %6767 = vmatprep.mubr.msk.f32.mxu0 %vm140_vm0, %v1251_v14 }
 0x184   :  { %1456 = vmatmul.mubr.f32.gmra.mxu0 %v1250_v62 }
 0x185   :  { %6768 = vmatprep.mubr.msk.f32.mxu0 %vm140_vm0, %v1253_v63 }
 0x188   :  { %1461 = vmatmul.mubr.f32.gmra.mxu0 %v1252_v15 }
 0x189   :  { %6769 = vmatprep.mubr.msk.f32.mxu0 %vm140_vm0, %v1255_v29 }
 0x18c   :  { %1466 = vmatmul.mubr.f32.gmra.mxu0 %v1254_v30 }
 0x18d   :  { %6770 = vmatprep.mubr.msk.f32.mxu0 %vm140_vm0, %v1257_v31 }
 0x190   :  { %1471 = vmatmul.mubr.f32.gmra.mxu0 %v1256_v16 }
 0x191   :  { %6771 = vmatprep.mubr.msk.f32.mxu0 %vm140_vm0, %v1259_v17 }
 0x194   :  { %1476 = vmatmul.mubr.f32.gmra.mxu0 %v1258_v32 }
 0x195   :  { %6772 = vmatprep.mubr.msk.f32.mxu0 %vm140_vm0, %v1261_v33 }
 0x198   :  { %1481 = vmatmul.mubr.f32.gmra.mxu0 %v1260_v18 }
 0x199   :  { %6773 = vmatprep.mubr.msk.f32.mxu0 %vm140_vm0, %v1263_v34 }
 0x19c   :  { %1486 = vmatmul.mubr.f32.gmra.mxu0 %v1262_v35 }
 0x19d   :  { %6774 = vmatprep.mubr.msk.f32.mxu0 %vm140_vm0, %v1265_v36 }
 0x1a0   :  { %1491 = vmatmul.mubr.f32.gmra.mxu0 %v1264_v19 }
 0x1a1   :  { %6775 = vmatprep.mubr.msk.f32.mxu0 %vm140_vm0, %v1267_v20 }
 0x1a4   :  { %1496 = vmatmul.mubr.f32.gmra.mxu0 %v1266_v37 }
 0x1a5   :  { %6776 = vmatprep.mubr.msk.f32.mxu0 %vm140_vm0, %v1269_v38 }
 0x1a8   :  { %1501 = vmatmul.mubr.f32.gmra.mxu0 %v1268_v39 }
 0x1a9   :  { %6777 = vmatprep.mubr.msk.f32.mxu0 %vm140_vm0, %v1271_v40 }
 0x1ac   :  { %1506 = vmatmul.mubr.f32.gmra.mxu0 %v1270_v23 }
 0x1ad   :  { %6778 = vmatprep.mubr.msk.f32.mxu0 %vm140_vm0, %v1273_v1 }
 0x1b0   :  { %1511 = vmatmul.mubr.f32.gmra.mxu0 %v1272_v24 }
 0x1b1   :  { %6779 = vmatprep.mubr.msk.f32.mxu0 %vm140_vm0, %v1275_v42 }
 0x1b4   :  { %1516 = vmatmul.mubr.f32.gmra.mxu0 %v1274_v43 }
 0x1b5   :  { %6780 = vmatprep.mubr.msk.f32.mxu0 %vm140_vm0, %v1277_v3 }
 0x1b8   :  { %1521 = vmatmul.mubr.f32.gmra.mxu0 %v1276_v25 }
 0x1b9   :  { %6781 = vmatprep.mubr.msk.f32.mxu0 %vm140_vm0, %v1279_v26 }
 0x1bc   :  { %1526 = vmatmul.mubr.f32.gmra.mxu0 %v1278_v44 }
 0x1bd   :  { %6782 = vmatprep.mubr.msk.f32.mxu0 %vm140_vm0, %v1281_v45 }
 0x1c0   :  { %1531 = vmatmul.mubr.f32.gmra.mxu0 %v1280_v46 }
 0x1c1   :  { %6783 = vmatprep.mubr.msk.f32.mxu0 %vm140_vm0, %v1283_v27 }
 0x1c4   :  { %1536 = vmatmul.mubr.f32.gmra.mxu0 %v1282_v4 }
 0x1cc   :  { %v7791_v5 = vpop.f32.mrf.mxu0  ;;  %v7835_v47 = vpop.f32.mrf.mxu1 }
 0x1cd   :  { %v9386_v48 = vadd.f32 %v7835_v47, %v7791_v5  ;;  %v9461_v5 = vld [vmem:[%s11616_s0 + $0x78] sm:$0xff] }
 0x1ce   :  { %v9388_v6 = vpop.f32.mrf.mxu0  ;;  %v9390_v49 = vpop.f32.mrf.mxu1 }
 0x1d4   :  { %v7794_v28 = vpop.f32.mrf.mxu0  ;;  %v7838_v50 = vpop.f32.mrf.mxu1 }
 0x1d5   :  { %v9392_v51 = vadd.f32 %v7838_v50, %v7794_v28  ;;  %v9468_v28 = vld [vmem:[%s11616_s0 + $0x70] sm:$0xff] }
 0x1d6   :  { %v9394_v7 = vpop.f32.mrf.mxu0  ;;  %v9396_v8 = vpop.f32.mrf.mxu1 }
 0x1dc   :  { %v7797_v52 = vpop.f32.mrf.mxu0  ;;  %v7841_v53 = vpop.f32.mrf.mxu1 }
 0x1dd   :  { %v9398_v9 = vadd.f32 %v7841_v53, %v7797_v52  ;;  %v9476_v52 = vld [vmem:[%s11616_s0 + $0x68] sm:$0xff] }
 0x1de   :  { %v9400_v54 = vpop.f32.mrf.mxu0  ;;  %v9402_v55 = vpop.f32.mrf.mxu1 }
 0x1e4   :  { %v7800_v56 = vpop.f32.mrf.mxu0  ;;  %v7844_v10 = vpop.f32.mrf.mxu1 }
 0x1e5   :  { %v9404_v11 = vadd.f32 %v7844_v10, %v7800_v56  ;;  %v9483_v56 = vld [vmem:[%s11616_s0 + $0x60] sm:$0xff] }
 0x1e6   :  { %v9406_v57 = vpop.f32.mrf.mxu0  ;;  %v9408_v58 = vpop.f32.mrf.mxu1 }
 0x1ec   :  { %v7803_v12 = vpop.f32.mrf.mxu0  ;;  %v7847_v59 = vpop.f32.mrf.mxu1 }
 0x1ed   :  { %v9410_v60 = vadd.f32 %v7847_v59, %v7803_v12  ;;  %v9491_v12 = vld [vmem:[%s11616_s0 + $0x58] sm:$0xff] }
 0x1ee   :  { %v9412_v61 = vpop.f32.mrf.mxu0  ;;  %v9414_v13 = vpop.f32.mrf.mxu1 }
 0x1f4   :  { %v7806_v14 = vpop.f32.mrf.mxu0  ;;  %v7850_v62 = vpop.f32.mrf.mxu1 }
 0x1f5   :  { %v9416_v63 = vadd.f32 %v7850_v62, %v7806_v14  ;;  %v9498_v14 = vld [vmem:[%s11616_s0 + $0x50] sm:$0xff] }
 0x1f6   :  { %v9418_v15 = vpop.f32.mrf.mxu0  ;;  %v9420_v29 = vpop.f32.mrf.mxu1 }
 0x1fc   :  { %v7809_v30 = vpop.f32.mrf.mxu0  ;;  %v7853_v31 = vpop.f32.mrf.mxu1 }
 0x1fd   :  { %v9422_v16 = vadd.f32 %v7853_v31, %v7809_v30  ;;  %v9506_v30 = vld [vmem:[%s11616_s0 + $0x48] sm:$0xff] }
 0x1fe   :  { %v9424_v17 = vpop.f32.mrf.mxu0  ;;  %v9426_v32 = vpop.f32.mrf.mxu1 }
 0x1ff   :  { %11634 = vst [vmem:[#allocation5_spill] sm:$0xff] %v9424_v17  ;;  %11635 = vst [vmem:[#allocation6_spill] sm:$0xff] %v9426_v32 }
 0x204   :  { %v7812_v33 = vpop.f32.mrf.mxu0  ;;  %v7856_v18 = vpop.f32.mrf.mxu1 }
 0x205   :  { %v9428_v34 = vadd.f32 %v7856_v18, %v7812_v33  ;;  %v9513_v33 = vld [vmem:[%s11616_s0 + $0x40] sm:$0xff] }
 0x206   :  { %v9430_v35 = vpop.f32.mrf.mxu0  ;;  %v9432_v36 = vpop.f32.mrf.mxu1 }
 0x207   :  { %11636 = vst [vmem:[#allocation7_spill] sm:$0xff] %v9430_v35  ;;  %11637 = vst [vmem:[#allocation8_spill] sm:$0xff] %v9432_v36 }
 0x20c   :  { %v7815_v19 = vpop.f32.mrf.mxu0  ;;  %v7859_v20 = vpop.f32.mrf.mxu1 }
 0x20d   :  { %v9434_v37 = vadd.f32 %v7859_v20, %v7815_v19  ;;  %v9521_v19 = vld [vmem:[%s11616_s0 + $0x38] sm:$0xff] }
 0x20e   :  { %v9436_v38 = vpop.f32.mrf.mxu0  ;;  %v9438_v21 = vpop.f32.mrf.mxu1 }
 0x20f   :  { %11638 = vst [vmem:[#allocation9_spill] sm:$0xff] %v9436_v38  ;;  %11639 = vst [vmem:[#allocation10_spill] sm:$0xff] %v9438_v21 }
 0x214   :  { %v7818_v39 = vpop.f32.mrf.mxu0  ;;  %v7862_v40 = vpop.f32.mrf.mxu1 }
 0x215   :  { %v9440_v41 = vadd.f32 %v7862_v40, %v7818_v39  ;;  %v9528_v39 = vld [vmem:[%s11616_s0 + $0x30] sm:$0xff] }
 0x216   :  { %v9442_v22 = vpop.f32.mrf.mxu0  ;;  %v9444_v23 = vpop.f32.mrf.mxu1 }
 0x217   :  { %11640 = vst [vmem:[#allocation11_spill] sm:$0xff] %v9442_v22  ;;  %11641 = vst [vmem:[#allocation12_spill] sm:$0xff] %v9444_v23 }
 0x21c   :  { %v7821_v1 = vpop.f32.mrf.mxu0  ;;  %v7865_v2 = vpop.f32.mrf.mxu1 }
 0x21d   :  { %v9446_v24 = vadd.f32 %v7865_v2, %v7821_v1  ;;  %v9536_v1 = vld [vmem:[%s11616_s0 + $0x28] sm:$0xff] }
 0x21e   :  { %v9448_v42 = vpop.f32.mrf.mxu0  ;;  %v9450_v43 = vpop.f32.mrf.mxu1 }
 0x21f   :  { %11642 = vst [vmem:[#allocation13_spill] sm:$0xff] %v9448_v42  ;;  %11643 = vst [vmem:[#allocation14_spill] sm:$0xff] %v9450_v43  ;;  %v9663_v42 = vld [vmem:[%s11616_s0 + $0x80] sm:$0xff] }
 0x224   :  { %v7824_v3 = vpop.f32.mrf.mxu0  ;;  %v7868_v25 = vpop.f32.mrf.mxu1 }
 0x225   :  { %v9452_v26 = vadd.f32 %v7868_v25, %v7824_v3  ;;  %v9543_v3 = vld [vmem:[%s11616_s0 + $0x20] sm:$0xff] }
 0x226   :  { %v9454_v44 = vpop.f32.mrf.mxu0 }
 0x227   :  { %11644 = vst [vmem:[#allocation15_spill] sm:$0xff] %v9454_v44  ;;  %v9648_v44 = vld [vmem:[%s11616_s0 + $0x90] sm:$0xff] }
 0x228   :  { %v1422_v45 = vpop.f32.mrf.mxu0 }
 0x229   :  { %7877 = vmatprep.mubr.msk.f32.mxu1 %vm713_vm2, %v1422_v45  ;;  %v9551_v45 = vld [vmem:[%s11616_s0 + $0x18] sm:$0xff] }
 0x22a   :  { %v1424_v46 = vpop.f32.mrf.mxu0 }
 0x22c   :  { %v1427_v27 = vpop.f32.mrf.mxu0 }
 0x22d   :  { %7878 = vmatmul.mubr.msk.f32.vlgmr.msra.gmra.mxu1 %vm713_vm2, %v1427_v27  ;;  %v9558_v27 = vld [vmem:[%s11616_s0 + $0x10] sm:$0xff] }
 0x22e   :  { %v1429_v4 = vpop.f32.mrf.mxu0  ;;  %1952 = vmatpush1.msra.mxu1 %v9461_v5 }
 0x22f   :  { %1953 = vmatprep.subr.mxu1 %v11632_v0 }
 0x230   :  { %v1432_v47 = vpop.f32.mrf.mxu0  ;;  %1954 = vmatpush1.msra.mxu1 %v9468_v28 }
 0x231   :  { %7880 = vmatprep.mubr.msk.f32.mxu1 %vm713_vm2, %v1432_v47  ;;  %1955 = vmatprep.subr.mxu1 %v11632_v0  ;;  %v9566_v47 = vld [vmem:[%s11616_s0 + $0x8] sm:$0xff] }
 0x232   :  { %v1434_v50 = vpop.f32.mrf.mxu0  ;;  %1956 = vmatpush1.msra.mxu1 %v9476_v52 }
 0x233   :  { %1957 = vmatprep.subr.mxu1 %v11632_v0 }
 0x234   :  { %v1437_v53 = vpop.f32.mrf.mxu0  ;;  %1958 = vmatpush1.msra.mxu1 %v9483_v56 }
 0x235   :  { %7881 = vmatmul.mubr.msk.f32.gmra.mxu1 %vm713_vm2, %v1437_v53  ;;  %1959 = vmatprep.subr.mxu1 %v11632_v0  ;;  %v9573_v53 = vld [vmem:[%s11616_s0] sm:$0xff] }
 0x236   :  { %v1439_v10 = vpop.f32.mrf.mxu0  ;;  %1960 = vmatpush1.msra.mxu1 %v9491_v12 }
 0x237   :  { %1961 = vmatprep.subr.mxu1 %v11632_v0 }
 0x238   :  { %v1442_v59 = vpop.f32.mrf.mxu0  ;;  %1962 = vmatpush1.msra.mxu1 %v9498_v14 }
 0x239   :  { %7883 = vmatprep.mubr.msk.f32.mxu1 %vm713_vm2, %v1442_v59  ;;  %1963 = vmatprep.subr.mxu1 %v11632_v0  ;;  %v9581_v59 = vld [vmem:[%s11616_s0 + $0xd8] sm:$0xff] }
 0x23a   :  { %v1444_v62 = vpop.f32.mrf.mxu0  ;;  %1964 = vmatpush1.msra.mxu1 %v9506_v30 }
 0x23b   :  { %1965 = vmatprep.subr.mxu1 %v11632_v0 }
 0x23c   :  { %v1447_v31 = vpop.f32.mrf.mxu0  ;;  %1966 = vmatpush1.msra.mxu1 %v9513_v33 }
 0x23d   :  { %7884 = vmatmul.mubr.msk.f32.gmra.mxu1 %vm713_vm2, %v1447_v31  ;;  %1967 = vmatprep.subr.mxu1 %v11632_v0  ;;  %v9588_v31 = vld [vmem:[%s11616_s0 + $0xd0] sm:$0xff] }
 0x23e   :  { %v1449_v18 = vpop.f32.mrf.mxu0  ;;  %1968 = vmatpush1.msra.mxu1 %v9521_v19 }
 0x23f   :  { %1969 = vmatprep.subr.mxu1 %v11632_v0 }
 0x240   :  { %v1452_v20 = vpop.f32.mrf.mxu0  ;;  %1970 = vmatpush1.msra.mxu1 %v9528_v39 }
 0x241   :  { %7886 = vmatprep.mubr.msk.f32.mxu1 %vm713_vm2, %v1452_v20  ;;  %1971 = vmatprep.subr.mxu1 %v11632_v0  ;;  %v9596_v20 = vld [vmem:[%s11616_s0 + $0xc8] sm:$0xff] }
 0x242   :  { %v1454_v40 = vpop.f32.mrf.mxu0  ;;  %1972 = vmatpush1.msra.mxu1 %v9536_v1 }
 0x243   :  { %1973 = vmatprep.subr.mxu1 %v11632_v0 }
 0x244   :  { %v1457_v2 = vpop.f32.mrf.mxu0  ;;  %1974 = vmatpush1.msra.mxu1 %v9543_v3 }
 0x245   :  { %7887 = vmatmul.mubr.msk.f32.gmra.mxu1 %vm713_vm2, %v1457_v2  ;;  %1975 = vmatprep.subr.mxu1 %v11632_v0  ;;  %v9603_v2 = vld [vmem:[%s11616_s0 + $0xc0] sm:$0xff] }
 0x246   :  { %v1459_v25 = vpop.f32.mrf.mxu0  ;;  %1976 = vmatpush1.msra.mxu1 %v9551_v45 }
 0x247   :  { %1977 = vmatprep.subr.mxu1 %v11632_v0 }
 0x248   :  { %v1462_v46 = vpop.f32.mrf.mxu0  ;;  %1978 = vmatpush1.msra.mxu1 %v9558_v27 }
 0x249   :  { %7889 = vmatprep.mubr.msk.f32.mxu1 %vm713_vm2, %v1462_v46  ;;  %1979 = vmatprep.subr.mxu1 %v11632_v0  ;;  %v9611_v46 = vld [vmem:[%s11616_s0 + $0xb8] sm:$0xff] }
 0x24a   :  { %v1464_v4 = vpop.f32.mrf.mxu0  ;;  %1980 = vmatpush1.msra.mxu1 %v9566_v47 }
 0x24b   :  { %1981 = vmatprep.subr.mxu1 %v11632_v0 }
 0x24c   :  { %v1467_v50 = vpop.f32.mrf.mxu0  ;;  %1982 = vmatpush1.msra.mxu1 %v9573_v53 }
 0x24d   :  { %7890 = vmatmul.mubr.msk.f32.gmra.mxu1 %vm713_vm2, %v1467_v50  ;;  %1991 = vmatprep.subr.mxu1 %v11632_v0  ;;  %v9618_v50 = vld [vmem:[%s11616_s0 + $0xb0] sm:$0xff] }
 0x24e   :  { %v1469_v10 = vpop.f32.mrf.mxu0  ;;  %1992 = vmatpush2.msra.mxu1 %v9581_v59 }
 0x24f   :  { %1993 = vmatprep.subr.mxu1 %v11632_v0 }
 0x250   :  { %v1472_v62 = vpop.f32.mrf.mxu0  ;;  %1994 = vmatpush2.msra.mxu1 %v9588_v31 }
 0x251   :  { %7892 = vmatprep.mubr.msk.f32.mxu1 %vm713_vm2, %v1472_v62  ;;  %1995 = vmatprep.subr.mxu1 %v11632_v0  ;;  %v9626_v62 = vld [vmem:[%s11616_s0 + $0xa8] sm:$0xff] }
 0x252   :  { %v1474_v18 = vpop.f32.mrf.mxu0  ;;  %1996 = vmatpush2.msra.mxu1 %v9596_v20 }
 0x253   :  { %1997 = vmatprep.subr.mxu1 %v11632_v0 }
 0x254   :  { %v1477_v40 = vpop.f32.mrf.mxu0  ;;  %1998 = vmatpush2.msra.mxu1 %v9603_v2 }
 0x255   :  { %7893 = vmatmul.mubr.msk.f32.gmra.mxu1 %vm713_vm2, %v1477_v40  ;;  %1999 = vmatprep.subr.mxu1 %v11632_v0  ;;  %v9633_v40 = vld [vmem:[%s11616_s0 + $0xa0] sm:$0xff] }
 0x256   :  { %v1479_v25 = vpop.f32.mrf.mxu0  ;;  %2000 = vmatpush2.msra.mxu1 %v9611_v46 }
 0x257   :  { %2001 = vmatprep.subr.mxu1 %v11632_v0 }
 0x258   :  { %v1482_v4 = vpop.f32.mrf.mxu0  ;;  %2002 = vmatpush2.msra.mxu1 %v9618_v50 }
 0x259   :  { %7895 = vmatprep.mubr.msk.f32.mxu1 %vm713_vm2, %v1482_v4  ;;  %2003 = vmatprep.subr.mxu1 %v11632_v0  ;;  %v9641_v4 = vld [vmem:[%s11616_s0 + $0x98] sm:$0xff] }
 0x25a   :  { %v1484_v10 = vpop.f32.mrf.mxu0  ;;  %2004 = vmatpush2.msra.mxu1 %v9626_v62 }
 0x25b   :  { %2005 = vmatprep.subr.mxu1 %v11632_v0 }
 0x25c   :  { %v1487_v18 = vpop.f32.mrf.mxu0  ;;  %2006 = vmatpush2.msra.mxu1 %v9633_v40 }
 0x25d   :  { %7896 = vmatmul.mubr.msk.f32.gmra.mxu1 %vm713_vm2, %v1487_v18  ;;  %2007 = vmatprep.subr.mxu1 %v11632_v0 }
 0x25e   :  { %v1489_v25 = vpop.f32.mrf.mxu0  ;;  %2008 = vmatpush2.msra.mxu1 %v9641_v4 }
 0x25f   :  { %2009 = vmatprep.subr.mxu1 %v11632_v0  ;;  %v9656_v25 = vld [vmem:[%s11616_s0 + $0x88] sm:$0xff] }
 0x260   :  { %v1492_v10 = vpop.f32.mrf.mxu0  ;;  %2010 = vmatpush2.msra.mxu1 %v9648_v44 }
 0x261   :  { %7898 = vmatprep.mubr.msk.f32.mxu1 %vm713_vm2, %v1492_v10  ;;  %2011 = vmatprep.subr.mxu1 %v11632_v0 }
 0x262   :  { %v1494_v18 = vpop.f32.mrf.mxu0  ;;  %2012 = vmatpush2.msra.mxu1 %v9656_v25 }
 0x263   :  { %2013 = vmatprep.subr.mxu1 %v11632_v0 }
 0x264   :  { %v1497_v43 = vpop.f32.mrf.mxu0  ;;  %2014 = vmatpush2.msra.mxu1 %v9663_v42 }
 0x265   :  { %7899 = vmatmul.mubr.msk.f32.gmra.mxu1 %vm713_vm2, %v1497_v43  ;;  %2546 = vmatprep.subr.mxu1 %v11632_v0 }
 0x266   :  { %v1499_v10 = vpop.f32.mrf.mxu0 }
 0x268   :  { %v1502_v18 = vpop.f32.mrf.mxu0 }
 0x269   :  { %7901 = vmatprep.mubr.msk.f32.mxu1 %vm713_vm2, %v1502_v18 }
 0x26a   :  { %v1504_v23 = vpop.f32.mrf.mxu0 }
 0x26c   :  { %v1507_v22 = vpop.f32.mrf.mxu0 }
 0x26d   :  { %7902 = vmatmul.mubr.msk.f32.gmra.mxu1 %vm713_vm2, %v1507_v22  ;;  %v1832_v22 = vld [vmem:[#allocation2 + $0x488] sm:$0xff] }
 0x26e   :  { %v1509_v21 = vpop.f32.mrf.mxu0 }
 0x270   :  { %v1512_v38 = vpop.f32.mrf.mxu0 }
 0x271   :  { %7904 = vmatprep.mubr.msk.f32.mxu1 %vm713_vm2, %v1512_v38  ;;  %v1833_v38 = vld [vmem:[#allocation2 + $0x490] sm:$0xff] }
 0x272   :  { %v1514_v36 = vpop.f32.mrf.mxu0 }
 0x274   :  { %v1517_v35 = vpop.f32.mrf.mxu0 }
 0x275   :  { %7905 = vmatmul.mubr.msk.f32.gmra.mxu1 %vm713_vm2, %v1517_v35  ;;  %v1834_v35 = vld [vmem:[#allocation2 + $0x498] sm:$0xff] }
 0x276   :  { %v1519_v32 = vpop.f32.mrf.mxu0 }
 0x277   :  { %v1831_v32 = vld [vmem:[#allocation2 + $0x480] sm:$0xff] }
 0x278   :  { %v1522_v43 = vpop.f32.mrf.mxu0 }
 0x279   :  { %7907 = vmatprep.mubr.msk.f32.mxu1 %vm713_vm2, %v1522_v43  ;;  %v11645_v43 = vmov 0.0  }
 0x27a   :  { %v1524_v10 = vpop.f32.mrf.mxu0 }
 0x27b   :  { %v1838_v10 = vld [vmem:[#allocation2 + $0x4b8] sm:$0xff] }
 0x27c   :  { %v1527_v0 = vpop.f32.mrf.mxu0 }
 0x27d   :  { %7908 = vmatmul.mubr.msk.f32.gmra.mxu1 %vm713_vm2, %v1527_v0  ;;  %v1836_v0 = vld [vmem:[#allocation2 + $0x4a8] sm:$0xff] }
 0x27e   :  { %v1529_v23 = vpop.f32.mrf.mxu0 }
 0x27f   :  { %v6840_v23 = vld [vmem:[%s11618_s2 + $0x78] sm:$0xf] }
 0x280   :  { %v1532_v18 = vpop.f32.mrf.mxu0  ;;  %7913 = vmatprep.subr.msk.mxu0 %vm786_vm1, %v6840_v23 }
 0x281   :  { %7910 = vmatprep.mubr.msk.f32.mxu1 %vm713_vm2, %v1532_v18  ;;  %v1866_v18 = vld [vmem:[#allocation2 + $0x598] sm:$0xff]  ;;  %7914 = vmatpush3.msk.msra.mxu0 %vm786_vm1, %v6840_v23 }
 0x282   :  { %v1534_v21 = vpop.f32.mrf.mxu0 }
 0x283   :  { %v6838_v21 = vld [vmem:[%s11618_s2 + $0x68] sm:$0xff] }
 0x284   :  { %v1537_v17 = vpop.f32.mrf.mxu0 }
 0x285   :  { %7911 = vmatmul.mubr.msk.f32.gmra.mxu1 %vm713_vm2, %v1537_v17  ;;  %v1835_v17 = vld [vmem:[#allocation2 + $0x4a0] sm:$0xff] }
 0x286   :  { %v1539_v36 = vpop.f32.mrf.mxu0  ;;  %6813 = vmatprep.mubr.msk.f32.mxu1 %vm140_vm0, %v1832_v22  ;;  %v1865_v22 = vld [vmem:[#allocation2 + $0x590] sm:$0xff] }
 0x287   :  { %v1868_v36 = vld [vmem:[#allocation2 + $0x5a8] sm:$0xff] }
 0x289   :  { %2016 = vmatmul.mubr.f32.vlgmr.msra.gmra.mxu1 %v1831_v32  ;;  %v6837_v32 = vld [vmem:[%s11618_s2 + $0x60] sm:$0xff] }
 0x28a   :  { %6814 = vmatprep.mubr.msk.f32.mxu1 %vm140_vm0, %v1834_v35  ;;  %2547 = vmatpush1.msra.mxu1 %v9461_v5  ;;  %v1837_v5 = vld [vmem:[#allocation2 + $0x4b0] sm:$0xff]  ;;  %v1867_v35 = vld [vmem:[#allocation2 + $0x5a0] sm:$0xff] }
 0x28b   :  { %2548 = vmatprep.subr.mxu1 %v11645_v43 }
 0x28c   :  { %2549 = vmatpush1.msra.mxu1 %v9468_v28  ;;  %v1840_v28 = vld [vmem:[#allocation2 + $0x4c8] sm:$0xff] }
 0x28d   :  { %2021 = vmatmul.mubr.f32.gmra.mxu1 %v1833_v38  ;;  %2550 = vmatprep.subr.mxu1 %v11645_v43  ;;  %v1870_v38 = vld [vmem:[#allocation2 + $0x5b8] sm:$0xff] }
 0x28e   :  { %6815 = vmatprep.mubr.msk.f32.mxu1 %vm140_vm0, %v1836_v0  ;;  %2551 = vmatpush1.msra.mxu1 %v9476_v52  ;;  %v1839_v52 = vld [vmem:[#allocation2 + $0x4c0] sm:$0xff]  ;;  %v1869_v0 = vld [vmem:[#allocation2 + $0x5b0] sm:$0xff] }
 0x28f   :  { %2552 = vmatprep.subr.mxu1 %v11645_v43 }
 0x290   :  { %2553 = vmatpush1.msra.mxu1 %v9483_v56  ;;  %v1842_v56 = vld [vmem:[#allocation2 + $0x4d8] sm:$0xff] }
 0x291   :  { %2026 = vmatmul.mubr.f32.gmra.mxu1 %v1835_v17  ;;  %2554 = vmatprep.subr.mxu1 %v11645_v43  ;;  %v1872_v17 = vld [vmem:[#allocation2 + $0x5c8] sm:$0xff] }
 0x292   :  { %6816 = vmatprep.mubr.msk.f32.mxu1 %vm140_vm0, %v1838_v10  ;;  %2555 = vmatpush1.msra.mxu1 %v9491_v12  ;;  %v1841_v12 = vld [vmem:[#allocation2 + $0x4d0] sm:$0xff]  ;;  %v1871_v10 = vld [vmem:[#allocation2 + $0x5c0] sm:$0xff] }
 0x293   :  { %2556 = vmatprep.subr.mxu1 %v11645_v43 }
 0x294   :  { %2557 = vmatpush1.msra.mxu1 %v9498_v14  ;;  %v1844_v14 = vld [vmem:[#allocation2 + $0x4e8] sm:$0xff] }
 0x295   :  { %2031 = vmatmul.mubr.f32.gmra.mxu1 %v1837_v5  ;;  %2558 = vmatprep.subr.mxu1 %v11645_v43  ;;  %v1874_v5 = vld [vmem:[#allocation2 + $0x5d8] sm:$0xff] }
 0x296   :  { %6817 = vmatprep.mubr.msk.f32.mxu1 %vm140_vm0, %v1840_v28  ;;  %2559 = vmatpush1.msra.mxu1 %v9506_v30  ;;  %v1843_v30 = vld [vmem:[#allocation2 + $0x4e0] sm:$0xff]  ;;  %v1873_v28 = vld [vmem:[#allocation2 + $0x5d0] sm:$0xff] }
 0x297   :  { %2560 = vmatprep.subr.mxu1 %v11645_v43 }
 0x298   :  { %2561 = vmatpush1.msra.mxu1 %v9513_v33  ;;  %v1846_v33 = vld [vmem:[#allocation2 + $0x4f8] sm:$0xff] }
 0x299   :  { %2036 = vmatmul.mubr.f32.gmra.mxu1 %v1839_v52  ;;  %2562 = vmatprep.subr.mxu1 %v11645_v43  ;;  %v1876_v52 = vld [vmem:[#allocation2 + $0x5e8] sm:$0xff] }
 0x29a   :  { %6818 = vmatprep.mubr.msk.f32.mxu1 %vm140_vm0, %v1842_v56  ;;  %2563 = vmatpush1.msra.mxu1 %v9521_v19  ;;  %v1845_v19 = vld [vmem:[#allocation2 + $0x4f0] sm:$0xff]  ;;  %v1875_v56 = vld [vmem:[#allocation2 + $0x5e0] sm:$0xff] }
 0x29b   :  { %2564 = vmatprep.subr.mxu1 %v11645_v43 }
 0x29c   :  { %2565 = vmatpush1.msra.mxu1 %v9528_v39  ;;  %v1848_v39 = vld [vmem:[#allocation2 + $0x508] sm:$0xff] }
 0x29d   :  { %2041 = vmatmul.mubr.f32.gmra.mxu1 %v1841_v12  ;;  %2566 = vmatprep.subr.mxu1 %v11645_v43  ;;  %v1878_v12 = vld [vmem:[#allocation2 + $0x5f8] sm:$0xff] }
 0x29e   :  { %6819 = vmatprep.mubr.msk.f32.mxu1 %vm140_vm0, %v1844_v14  ;;  %2567 = vmatpush1.msra.mxu1 %v9536_v1  ;;  %v1847_v1 = vld [vmem:[#allocation2 + $0x500] sm:$0xff]  ;;  %v1877_v14 = vld [vmem:[#allocation2 + $0x5f0] sm:$0xff] }
 0x29f   :  { %2568 = vmatprep.subr.mxu1 %v11645_v43 }
 0x2a0   :  { %2569 = vmatpush1.msra.mxu1 %v9543_v3  ;;  %v1850_v3 = vld [vmem:[#allocation2 + $0x518] sm:$0xff] }
 0x2a1   :  { %2046 = vmatmul.mubr.f32.gmra.mxu1 %v1843_v30  ;;  %2570 = vmatprep.subr.mxu1 %v11645_v43  ;;  %v2427_v30 = vld [vmem:[#allocation2 + $0x608] sm:$0xff] }
 0x2a2   :  { %6820 = vmatprep.mubr.msk.f32.mxu1 %vm140_vm0, %v1846_v33  ;;  %2571 = vmatpush1.msra.mxu1 %v9551_v45  ;;  %v1849_v45 = vld [vmem:[#allocation2 + $0x510] sm:$0xff]  ;;  %v2426_v33 = vld [vmem:[#allocation2 + $0x600] sm:$0xff] }
 0x2a3   :  { %2572 = vmatprep.subr.mxu1 %v11645_v43 }
 0x2a4   :  { %2573 = vmatpush1.msra.mxu1 %v9558_v27  ;;  %v1852_v27 = vld [vmem:[#allocation2 + $0x528] sm:$0xff] }
 0x2a5   :  { %2051 = vmatmul.mubr.f32.gmra.mxu1 %v1845_v19  ;;  %2574 = vmatprep.subr.mxu1 %v11645_v43  ;;  %v2429_v19 = vld [vmem:[#allocation2 + $0x618] sm:$0xff] }
 0x2a6   :  { %6821 = vmatprep.mubr.msk.f32.mxu1 %vm140_vm0, %v1848_v39  ;;  %2575 = vmatpush1.msra.mxu1 %v9566_v47  ;;  %v1851_v47 = vld [vmem:[#allocation2 + $0x520] sm:$0xff]  ;;  %v2428_v39 = vld [vmem:[#allocation2 + $0x610] sm:$0xff] }
 0x2a7   :  { %2576 = vmatprep.subr.mxu1 %v11645_v43 }
 0x2a8   :  { %2577 = vmatpush1.msra.mxu1 %v9573_v53  ;;  %v1854_v53 = vld [vmem:[#allocation2 + $0x538] sm:$0xff] }
 0x2a9   :  { %2056 = vmatmul.mubr.f32.gmra.mxu1 %v1847_v1  ;;  %2586 = vmatprep.subr.mxu1 %v11645_v43  ;;  %v9772_v1 = vpop.f32.mrf.mxu1 }
 0x2aa   :  { %6822 = vmatprep.mubr.msk.f32.mxu1 %vm140_vm0, %v1850_v3  ;;  %2587 = vmatpush2.msra.mxu1 %v9581_v59  ;;  %v1853_v59 = vld [vmem:[#allocation2 + $0x530] sm:$0xff]  ;;  %v2431_v3 = vld [vmem:[#allocation2 + $0x628] sm:$0xff] }
 0x2ab   :  { %2588 = vmatprep.subr.mxu1 %v11645_v43 }
 0x2ac   :  { %2589 = vmatpush2.msra.mxu1 %v9588_v31  ;;  %v1856_v31 = vld [vmem:[#allocation2 + $0x548] sm:$0xff] }
 0x2ad   :  { %2061 = vmatmul.mubr.f32.gmra.mxu1 %v1849_v45  ;;  %2590 = vmatprep.subr.mxu1 %v11645_v43 }
 0x2ae   :  { %6823 = vmatprep.mubr.msk.f32.mxu1 %vm140_vm0, %v1852_v27  ;;  %2591 = vmatpush2.msra.mxu1 %v9596_v20  ;;  %v1855_v20 = vld [vmem:[#allocation2 + $0x540] sm:$0xff] }
 0x2af   :  { %2592 = vmatprep.subr.mxu1 %v11645_v43 }
 0x2b0   :  { %2593 = vmatpush2.msra.mxu1 %v9603_v2  ;;  %v1858_v2 = vld [vmem:[#allocation2 + $0x558] sm:$0xff] }
 0x2b1   :  { %2066 = vmatmul.mubr.f32.gmra.mxu1 %v1851_v47  ;;  %2594 = vmatprep.subr.mxu1 %v11645_v43  ;;  %v2430_v47 = vld [vmem:[#allocation2 + $0x620] sm:$0xff] }
 0x2b2   :  { %6824 = vmatprep.mubr.msk.f32.mxu1 %vm140_vm0, %v1854_v53  ;;  %2595 = vmatpush2.msra.mxu1 %v9611_v46  ;;  %v1857_v46 = vld [vmem:[#allocation2 + $0x550] sm:$0xff]  ;;  %v2433_v53 = vld [vmem:[#allocation2 + $0x638] sm:$0xff] }
 0x2b3   :  { %2596 = vmatprep.subr.mxu1 %v11645_v43 }
 0x2b4   :  { %2597 = vmatpush2.msra.mxu1 %v9618_v50  ;;  %v1860_v50 = vld [vmem:[#allocation2 + $0x568] sm:$0xff] }
 0x2b5   :  { %2071 = vmatmul.mubr.f32.gmra.mxu1 %v1853_v59  ;;  %2598 = vmatprep.subr.mxu1 %v11645_v43  ;;  %v2432_v59 = vld [vmem:[#allocation2 + $0x630] sm:$0xff] }
 0x2b6   :  { %6825 = vmatprep.mubr.msk.f32.mxu1 %vm140_vm0, %v1856_v31  ;;  %2599 = vmatpush2.msra.mxu1 %v9626_v62  ;;  %v1859_v62 = vld [vmem:[#allocation2 + $0x560] sm:$0xff] }
 0x2b7   :  { %2600 = vmatprep.subr.mxu1 %v11645_v43 }
 0x2b8   :  { %2601 = vmatpush2.msra.mxu1 %v9633_v40  ;;  %v1862_v40 = vld [vmem:[#allocation2 + $0x578] sm:$0xff] }
 0x2b9   :  { %2076 = vmatmul.mubr.f32.gmra.mxu1 %v1855_v20  ;;  %2602 = vmatprep.subr.mxu1 %v11645_v43  ;;  %v2435_v20 = vld [vmem:[#allocation2 + $0x648] sm:$0xff] }
 0x2ba   :  { %6826 = vmatprep.mubr.msk.f32.mxu1 %vm140_vm0, %v1858_v2  ;;  %2603 = vmatpush2.msra.mxu1 %v9641_v4  ;;  %v1861_v4 = vld [vmem:[#allocation2 + $0x570] sm:$0xff] }
 0x2bb   :  { %2604 = vmatprep.subr.mxu1 %v11645_v43 }
 0x2bc   :  { %2605 = vmatpush2.msra.mxu1 %v9648_v44  ;;  %v1864_v44 = vld [vmem:[#allocation2 + $0x588] sm:$0xff] }
 0x2bd   :  { %2081 = vmatmul.mubr.f32.gmra.mxu1 %v1857_v46  ;;  %2606 = vmatprep.subr.mxu1 %v11645_v43 }
 0x2be   :  { %6827 = vmatprep.mubr.msk.f32.mxu1 %vm140_vm0, %v1860_v50  ;;  %2607 = vmatpush2.msra.mxu1 %v9656_v25  ;;  %v1863_v25 = vld [vmem:[#allocation2 + $0x580] sm:$0xff]  ;;  %v2437_v50 = vld [vmem:[#allocation2 + $0x658] sm:$0xff] }
 0x2bf   :  { %2608 = vmatprep.subr.mxu1 %v11645_v43 }
 0x2c0   :  { %2609 = vmatpush2.msra.mxu1 %v9663_v42  ;;  %v6839_v42 = vld [vmem:[%s11618_s2 + $0x70] sm:$0xff] }
 0x2c1   :  { %2086 = vmatmul.mubr.f32.gmra.mxu1 %v1859_v62  ;;  %3627 = vmatprep.subr.mxu1 %v11645_v43  ;;  %v2436_v62 = vld [vmem:[#allocation2 + $0x650] sm:$0xff] }
 0x2c2   :  { %6828 = vmatprep.mubr.msk.f32.mxu1 %vm140_vm0, %v1862_v40  ;;  %7915 = vmatprep.subr.mxu0 %v6839_v42 }
 0x2c3   :  { %7916 = vmatpush3.msra.mxu0 %v6839_v42 }
 0x2c4   :  { %7917 = vmatprep.subr.mxu0 %v6838_v21 }
 0x2c5   :  { %2091 = vmatmul.mubr.f32.gmra.mxu1 %v1861_v4  ;;  %7918 = vmatpush3.msra.mxu0 %v6838_v21  ;;  %v2439_v4 = vld [vmem:[#allocation2 + $0x668] sm:$0xff] }
 0x2c6   :  { %6829 = vmatprep.mubr.msk.f32.mxu1 %vm140_vm0, %v1864_v44  ;;  %7919 = vmatprep.subr.mxu0 %v6837_v32  ;;  %v2443_v21 = vld [vmem:[#allocation2 + $0x688] sm:$0xff] }
 0x2c7   :  { %7920 = vmatpush3.msra.mxu0 %v6837_v32  ;;  %v2445_v32 = vld [vmem:[#allocation2 + $0x698] sm:$0xff] }
 0x2c9   :  { %2096 = vmatmul.mubr.f32.gmra.mxu1 %v1863_v25  ;;  %v2441_v25 = vld [vmem:[#allocation2 + $0x678] sm:$0xff] }
 0x2ca   :  { %6830 = vmatprep.mubr.msk.f32.mxu1 %vm140_vm0, %v1866_v18  ;;  %v2440_v18 = vld [vmem:[#allocation2 + $0x670] sm:$0xff] }
 0x2cd   :  { %2101 = vmatmul.mubr.f32.gmra.mxu1 %v1865_v22 }
 0x2ce   :  { %6831 = vmatprep.mubr.msk.f32.mxu1 %vm140_vm0, %v1868_v36 }
 0x2d1   :  { %2106 = vmatmul.mubr.f32.gmra.mxu1 %v1867_v35  ;;  %v2444_v35 = vld [vmem:[#allocation2 + $0x690] sm:$0xff] }
 0x2d2   :  { %6832 = vmatprep.mubr.msk.f32.mxu1 %vm140_vm0, %v1870_v38 }
 0x2d5   :  { %2111 = vmatmul.mubr.f32.gmra.mxu1 %v1869_v0  ;;  %v2447_v0 = vld [vmem:[#allocation2 + $0x6a8] sm:$0xff] }
 0x2d6   :  { %6833 = vmatprep.mubr.msk.f32.mxu1 %vm140_vm0, %v1872_v17 }
 0x2d9   :  { %2116 = vmatmul.mubr.f32.gmra.mxu1 %v1871_v10 }
 0x2da   :  { %6834 = vmatprep.mubr.msk.f32.mxu1 %vm140_vm0, %v1874_v5  ;;  %v2449_v5 = vld [vmem:[#allocation2 + $0x6b8] sm:$0xff] }
 0x2dd   :  { %2121 = vmatmul.mubr.f32.gmra.mxu1 %v1873_v28  ;;  %v2448_v28 = vld [vmem:[#allocation2 + $0x6b0] sm:$0xff] }
 0x2de   :  { %6835 = vmatprep.mubr.msk.f32.mxu1 %vm140_vm0, %v1876_v52 }
 0x2e1   :  { %2126 = vmatmul.mubr.f32.gmra.mxu1 %v1875_v56  ;;  %v2451_v56 = vld [vmem:[#allocation2 + $0x6c8] sm:$0xff] }
 0x2e2   :  { %6836 = vmatprep.mubr.msk.f32.mxu1 %vm140_vm0, %v1878_v12 }
 0x2e5   :  { %2131 = vmatmul.mubr.f32.gmra.mxu1 %v1877_v14 }
 0x2e6   :  { %6866 = vmatprep.mubr.msk.f32.mxu1 %vm140_vm0, %v2427_v30  ;;  %v2453_v30 = vld [vmem:[#allocation2 + $0x6d8] sm:$0xff] }
 0x2e9   :  { %2611 = vmatmul.mubr.f32.vlgmr.msra.gmra.mxu1 %v2426_v33  ;;  %v2452_v33 = vld [vmem:[#allocation2 + $0x6d0] sm:$0xff] }
 0x2ea   :  { %6867 = vmatprep.mubr.msk.f32.mxu1 %vm140_vm0, %v2429_v19 }
 0x2ed   :  { %v7879_v45 = vpop.f32.mrf.mxu1  ;;  %2616 = vmatmul.mubr.f32.gmra.mxu1 %v2428_v39  ;;  %v2455_v39 = vld [vmem:[#allocation2 + $0x6e8] sm:$0xff] }
 0x2ee   :  { %v9775_v27 = vadd.f32 %v7879_v45, %v9386_v48  ;;  %6868 = vmatprep.mubr.msk.f32.mxu1 %vm140_vm0, %v2431_v3  ;;  %v2434_v48 = vld [vmem:[#allocation2 + $0x640] sm:$0xff] }
 0x2ef   :  { %v9779_v31 = vpop.f32.mrf.mxu1 }
 0x2f1   :  { %2621 = vmatmul.mubr.f32.gmra.mxu1 %v2430_v47  ;;  %v2457_v47 = vld [vmem:[#allocation2 + $0x6f8] sm:$0xff] }
 0x2f2   :  { %6869 = vmatprep.mubr.msk.f32.mxu1 %vm140_vm0, %v2433_v53  ;;  %v2456_v53 = vld [vmem:[#allocation2 + $0x6f0] sm:$0xff] }
 0x2f5   :  { %v7882_v2 = vpop.f32.mrf.mxu1  ;;  %2626 = vmatmul.mubr.f32.gmra.mxu1 %v2432_v59 }
 0x2f6   :  { %v9782_v46 = vadd.f32 %v7882_v2, %v9392_v51  ;;  %6870 = vmatprep.mubr.msk.f32.mxu1 %vm140_vm0, %v2435_v20  ;;  %v2438_v51 = vld [vmem:[#allocation2 + $0x660] sm:$0xff]  ;;  %v2459_v20 = vld [vmem:[#allocation2 + $0x708] sm:$0xff] }
 0x2f7   :  { %v9786_v40 = vpop.f32.mrf.mxu1 }
 0x2f9   :  { %2631 = vmatmul.mubr.f32.gmra.mxu1 %v2434_v48  ;;  %v6893_v48 = vld [vmem:[%s11618_s2 + $0x98] sm:$0xf] }
 0x2fa   :  { %6871 = vmatprep.mubr.msk.f32.mxu1 %vm140_vm0, %v2437_v50  ;;  %v2458_v50 = vld [vmem:[#allocation2 + $0x700] sm:$0xff]  ;;  %7957 = vmatprep.subr.msk.mxu0 %vm786_vm1, %v6893_v48 }
 0x2fd   :  { %v7885_v44 = vpop.f32.mrf.mxu1  ;;  %2636 = vmatmul.mubr.f32.gmra.mxu1 %v2436_v62  ;;  %v2461_v62 = vld [vmem:[#allocation2 + $0x718] sm:$0xff] }
 0x2fe   :  { %v9789_v23 = vadd.f32 %v7885_v44, %v9398_v9  ;;  %6872 = vmatprep.mubr.msk.f32.mxu1 %vm140_vm0, %v2439_v4  ;;  %v2442_v9 = vld [vmem:[#allocation2 + $0x680] sm:$0xff]  ;;  %v2460_v4 = vld [vmem:[#allocation2 + $0x710] sm:$0xff] }
 0x2ff   :  { %v9793_v42 = vpop.f32.mrf.mxu1 }
 0x301   :  { %2641 = vmatmul.mubr.f32.gmra.mxu1 %v2438_v51  ;;  %v2463_v51 = vld [vmem:[#allocation2 + $0x728] sm:$0xff] }
 0x302   :  { %6873 = vmatprep.mubr.msk.f32.mxu1 %vm140_vm0, %v2441_v25 }
 0x305   :  { %v7888_v22 = vpop.f32.mrf.mxu1  ;;  %2646 = vmatmul.mubr.f32.gmra.mxu1 %v2440_v18 }
 0x306   :  { %v9796_v36 = vadd.f32 %v7888_v22, %v9404_v11  ;;  %6874 = vmatprep.mubr.msk.f32.mxu1 %vm140_vm0, %v2443_v21  ;;  %v2446_v11 = vld [vmem:[#allocation2 + $0x6a0] sm:$0xff]  ;;  %v2465_v21 = vld [vmem:[#allocation2 + $0x738] sm:$0xff]  ;;  %v2464_v22 = vld [vmem:[#allocation2 + $0x730] sm:$0xff] }
 0x307   :  { %v9800_v38 = vpop.f32.mrf.mxu1 }
 0x309   :  { %2651 = vmatmul.mubr.f32.gmra.mxu1 %v2442_v9 }
 0x30a   :  { %6875 = vmatprep.mubr.msk.f32.mxu1 %vm140_vm0, %v2445_v32  ;;  %v2467_v32 = vld [vmem:[#allocation2 + $0x748] sm:$0xff] }
 0x30d   :  { %v7891_v17 = vpop.f32.mrf.mxu1  ;;  %2656 = vmatmul.mubr.f32.gmra.mxu1 %v2444_v35 }
 0x30e   :  { %v9803_v10 = vadd.f32 %v7891_v17, %v9410_v60  ;;  %6876 = vmatprep.mubr.msk.f32.mxu1 %vm140_vm0, %v2447_v0  ;;  %v2450_v60 = vld [vmem:[#allocation2 + $0x6c0] sm:$0xff]  ;;  %v2469_v17 = vld [vmem:[#allocation2 + $0x758] sm:$0xff] }
 0x30f   :  { %v9807_v52 = vpop.f32.mrf.mxu1 }
 0x311   :  { %2661 = vmatmul.mubr.f32.gmra.mxu1 %v2446_v11  ;;  %v2468_v11 = vld [vmem:[#allocation2 + $0x750] sm:$0xff] }
 0x312   :  { %6877 = vmatprep.mubr.msk.f32.mxu1 %vm140_vm0, %v2449_v5 }
 0x315   :  { %v7894_v12 = vpop.f32.mrf.mxu1  ;;  %2666 = vmatmul.mubr.f32.gmra.mxu1 %v2448_v28  ;;  %v2471_v28 = vld [vmem:[#allocation2 + $0x768] sm:$0xff] }
 0x316   :  { %v9810_v14 = vadd.f32 %v7894_v12, %v9416_v63  ;;  %6878 = vmatprep.mubr.msk.f32.mxu1 %vm140_vm0, %v2451_v56  ;;  %v2454_v63 = vld [vmem:[#allocation2 + $0x6e0] sm:$0xff] }
 0x317   :  { %v9814_v19 = vpop.f32.mrf.mxu1 }
 0x319   :  { %2671 = vmatmul.mubr.f32.gmra.mxu1 %v2450_v60  ;;  %v2473_v60 = vld [vmem:[#allocation2 + $0x778] sm:$0xff] }
 0x31a   :  { %6879 = vmatprep.mubr.msk.f32.mxu1 %vm140_vm0, %v2453_v30  ;;  %v2472_v30 = vld [vmem:[#allocation2 + $0x770] sm:$0xff] }
 0x31d   :  { %v7897_v3 = vpop.f32.mrf.mxu1  ;;  %2676 = vmatmul.mubr.f32.gmra.mxu1 %v2452_v33 }
 0x31e   :  { %v9817_v45 = vadd.f32 %v7897_v3, %v9422_v16  ;;  %6880 = vmatprep.mubr.msk.f32.mxu1 %vm140_vm0, %v2455_v39 }
 0x31f   :  { %v9821_v59 = vpop.f32.mrf.mxu1 }
 0x321   :  { %2681 = vmatmul.mubr.f32.gmra.mxu1 %v2454_v63 }
 0x322   :  { %6881 = vmatprep.mubr.msk.f32.mxu1 %vm140_vm0, %v2457_v47 }
 0x325   :  { %v7900_v2 = vpop.f32.mrf.mxu1  ;;  %2686 = vmatmul.mubr.f32.gmra.mxu1 %v2456_v53 }
 0x326   :  { %v9827_v16 = vadd.f32 %v7900_v2, %v9428_v34  ;;  %6882 = vmatprep.mubr.msk.f32.mxu1 %vm140_vm0, %v2459_v20  ;;  %v2462_v34 = vld [vmem:[#allocation2 + $0x720] sm:$0xff]  ;;  %v6892_v20 = vld [vmem:[%s11618_s2 + $0x90] sm:$0xff] }
 0x327   :  { %v9832_v44 = vpop.f32.mrf.mxu1 }
 0x329   :  { %2691 = vmatmul.mubr.f32.gmra.mxu1 %v2458_v50 }
 0x32a   :  { %6883 = vmatprep.mubr.msk.f32.mxu1 %vm140_vm0, %v2461_v62  ;;  %v6890_v62 = vld [vmem:[%s11618_s2 + $0x80] sm:$0xff] }
 0x32d   :  { %v7903_v25 = vpop.f32.mrf.mxu1  ;;  %2696 = vmatmul.mubr.f32.gmra.mxu1 %v2460_v4 }
 0x32e   :  { %v9835_v18 = vadd.f32 %v7903_v25, %v9434_v37  ;;  %6884 = vmatprep.mubr.msk.f32.mxu1 %vm140_vm0, %v2463_v51  ;;  %v2466_v37 = vld [vmem:[#allocation2 + $0x740] sm:$0xff] }
 0x32f   :  { %v9839_v9 = vpop.f32.mrf.mxu1 }
 0x331   :  { %2701 = vmatmul.mubr.f32.gmra.mxu1 %v2462_v34 }
 0x332   :  { %6885 = vmatprep.mubr.msk.f32.mxu1 %vm140_vm0, %v2465_v21 }
 0x335   :  { %v7906_v35 = vpop.f32.mrf.mxu1  ;;  %2706 = vmatmul.mubr.f32.gmra.mxu1 %v2464_v22 }
 0x336   :  { %v9842_v0 = vadd.f32 %v7906_v35, %v9440_v41  ;;  %6886 = vmatprep.mubr.msk.f32.mxu1 %vm140_vm0, %v2467_v32  ;;  %v2470_v41 = vld [vmem:[#allocation2 + $0x760] sm:$0xff] }
 0x337   :  { %v9846_v5 = vpop.f32.mrf.mxu1 }
 0x339   :  { %2711 = vmatmul.mubr.f32.gmra.mxu1 %v2466_v37 }
 0x33a   :  { %6887 = vmatprep.mubr.msk.f32.mxu1 %vm140_vm0, %v2469_v17 }
 0x33d   :  { %v7909_v56 = vpop.f32.mrf.mxu1  ;;  %2716 = vmatmul.mubr.f32.gmra.mxu1 %v2468_v11 }
 0x33e   :  { %v9849_v12 = vadd.f32 %v7909_v56, %v9446_v24  ;;  %6888 = vmatprep.mubr.msk.f32.mxu1 %vm140_vm0, %v2471_v28 }
 0x33f   :  { %v9853_v33 = vpop.f32.mrf.mxu1 }
 0x341   :  { %2721 = vmatmul.mubr.f32.gmra.mxu1 %v2470_v41 }
 0x342   :  { %6889 = vmatprep.mubr.msk.f32.mxu1 %vm140_vm0, %v2473_v60 }
 0x345   :  { %v7912_v39 = vpop.f32.mrf.mxu1  ;;  %2726 = vmatmul.mubr.f32.gmra.mxu1 %v2472_v30 }
 0x346   :  { %v9856_v3 = vadd.f32 %v7912_v39, %v9452_v26  ;;  %v6891_v26 = vld [vmem:[%s11618_s2 + $0x88] sm:$0xff] }
 0x347   :  { %v9858_v63 = vpop.f32.mrf.mxu1 }
 0x348   :  { %11646 = vst [vmem:[#allocation16_spill] sm:$0xff] %v9858_v63 }
 0x349   :  { %v2017_v47 = vpop.f32.mrf.mxu1 }
 0x34a   :  { %7921 = vmatprep.mubr.msk.f32.mxu0 %vm713_vm2, %v2017_v47 }
 0x34b   :  { %v2019_v24 = vpop.f32.mrf.mxu1 }
 0x34d   :  { %v2022_v53 = vpop.f32.mrf.mxu1 }
 0x34e   :  { %7922 = vmatmul.mubr.msk.f32.vlgmr.msra.gmra.mxu0 %vm713_vm2, %v2022_v53 }
 0x34f   :  { %v2024_v2 = vpop.f32.mrf.mxu1  ;;  %7958 = vmatpush3.msk.msra.mxu0 %vm786_vm1, %v6893_v48 }
 0x350   :  { %7959 = vmatprep.subr.mxu0 %v6892_v20 }
 0x351   :  { %v2027_v50 = vpop.f32.mrf.mxu1  ;;  %7960 = vmatpush3.msra.mxu0 %v6892_v20 }
 0x352   :  { %7924 = vmatprep.mubr.msk.f32.mxu0 %vm713_vm2, %v2027_v50  ;;  %7961 = vmatprep.subr.mxu0 %v6891_v26 }
 0x353   :  { %v2029_v4 = vpop.f32.mrf.mxu1  ;;  %7962 = vmatpush3.msra.mxu0 %v6891_v26 }
 0x354   :  { %7963 = vmatprep.subr.mxu0 %v6890_v62 }
 0x355   :  { %v2032_v51 = vpop.f32.mrf.mxu1  ;;  %7964 = vmatpush3.msra.mxu0 %v6890_v62 }
 0x356   :  { %7925 = vmatmul.mubr.msk.f32.gmra.mxu0 %vm713_vm2, %v2032_v51 }
 0x357   :  { %v2034_v48 = vpop.f32.mrf.mxu1 }
 0x359   :  { %v2037_v25 = vpop.f32.mrf.mxu1 }
 0x35a   :  { %7927 = vmatprep.mubr.msk.f32.mxu0 %vm713_vm2, %v2037_v25 }
 0x35b   :  { %v2039_v34 = vpop.f32.mrf.mxu1 }
 0x35d   :  { %v2042_v21 = vpop.f32.mrf.mxu1 }
 0x35e   :  { %7928 = vmatmul.mubr.msk.f32.gmra.mxu0 %vm713_vm2, %v2042_v21 }
 0x35f   :  { %v2044_v22 = vpop.f32.mrf.mxu1 }
 0x361   :  { %v2047_v32 = vpop.f32.mrf.mxu1 }
 0x362   :  { %7930 = vmatprep.mubr.msk.f32.mxu0 %vm713_vm2, %v2047_v32 }
 0x363   :  { %v2049_v35 = vpop.f32.mrf.mxu1 }
 0x365   :  { %v2052_v37 = vpop.f32.mrf.mxu1 }
 0x366   :  { %7931 = vmatmul.mubr.msk.f32.gmra.mxu0 %vm713_vm2, %v2052_v37 }
 0x367   :  { %v2054_v17 = vpop.f32.mrf.mxu1 }
 0x369   :  { %v2057_v11 = vpop.f32.mrf.mxu1 }
 0x36a   :  { %7933 = vmatprep.mubr.msk.f32.mxu0 %vm713_vm2, %v2057_v11 }
 0x36b   :  { %v2059_v28 = vpop.f32.mrf.mxu1 }
 0x36d   :  { %v2062_v56 = vpop.f32.mrf.mxu1 }
 0x36e   :  { %7934 = vmatmul.mubr.msk.f32.gmra.mxu0 %vm713_vm2, %v2062_v56 }
 0x36f   :  { %v2064_v41 = vpop.f32.mrf.mxu1 }
 0x371   :  { %v2067_v60 = vpop.f32.mrf.mxu1 }
 0x372   :  { %7936 = vmatprep.mubr.msk.f32.mxu0 %vm713_vm2, %v2067_v60 }
 0x373   :  { %v2069_v30 = vpop.f32.mrf.mxu1 }
 0x375   :  { %v2072_v39 = vpop.f32.mrf.mxu1 }
 0x376   :  { %7937 = vmatmul.mubr.msk.f32.gmra.mxu0 %vm713_vm2, %v2072_v39 }
 0x377   :  { %v2074_v47 = vpop.f32.mrf.mxu1 }
 0x379   :  { %v2077_v24 = vpop.f32.mrf.mxu1 }
 0x37a   :  { %7939 = vmatprep.mubr.msk.f32.mxu0 %vm713_vm2, %v2077_v24 }
 0x37b   :  { %v2079_v53 = vpop.f32.mrf.mxu1 }
 0x37d   :  { %v2082_v20 = vpop.f32.mrf.mxu1 }
 0x37e   :  { %7940 = vmatmul.mubr.msk.f32.gmra.mxu0 %vm713_vm2, %v2082_v20 }
 0x37f   :  { %v2084_v2 = vpop.f32.mrf.mxu1 }
 0x381   :  { %v2087_v26 = vpop.f32.mrf.mxu1 }
 0x382   :  { %7942 = vmatprep.mubr.msk.f32.mxu0 %vm713_vm2, %v2087_v26 }
 0x383   :  { %v2089_v50 = vpop.f32.mrf.mxu1 }
 0x385   :  { %v2092_v62 = vpop.f32.mrf.mxu1 }
 0x386   :  { %7943 = vmatmul.mubr.msk.f32.gmra.mxu0 %vm713_vm2, %v2092_v62 }
 0x387   :  { %v2094_v4 = vpop.f32.mrf.mxu1 }
 0x389   :  { %v2097_v51 = vpop.f32.mrf.mxu1 }
 0x38a   :  { %7945 = vmatprep.mubr.msk.f32.mxu0 %vm713_vm2, %v2097_v51 }
 0x38b   :  { %v2099_v48 = vpop.f32.mrf.mxu1 }
 0x38d   :  { %v2102_v25 = vpop.f32.mrf.mxu1 }
 0x38e   :  { %7946 = vmatmul.mubr.msk.f32.gmra.mxu0 %vm713_vm2, %v2102_v25 }
 0x38f   :  { %v2104_v34 = vpop.f32.mrf.mxu1 }
 0x391   :  { %v2107_v21 = vpop.f32.mrf.mxu1 }
 0x392   :  { %7948 = vmatprep.mubr.msk.f32.mxu0 %vm713_vm2, %v2107_v21 }
 0x393   :  { %v2109_v22 = vpop.f32.mrf.mxu1 }
 0x395   :  { %v2112_v32 = vpop.f32.mrf.mxu1 }
 0x396   :  { %7949 = vmatmul.mubr.msk.f32.gmra.mxu0 %vm713_vm2, %v2112_v32 }
 0x397   :  { %v2114_v35 = vpop.f32.mrf.mxu1 }
 0x399   :  { %v2117_v37 = vpop.f32.mrf.mxu1 }
 0x39a   :  { %7951 = vmatprep.mubr.msk.f32.mxu0 %vm713_vm2, %v2117_v37 }
 0x39b   :  { %v2119_v17 = vpop.f32.mrf.mxu1 }
 0x39d   :  { %v2122_v11 = vpop.f32.mrf.mxu1 }
 0x39e   :  { %7952 = vmatmul.mubr.msk.f32.gmra.mxu0 %vm713_vm2, %v2122_v11 }
 0x39f   :  { %v2124_v28 = vpop.f32.mrf.mxu1 }
 0x3a1   :  { %v2127_v56 = vpop.f32.mrf.mxu1 }
 0x3a2   :  { %7954 = vmatprep.mubr.msk.f32.mxu0 %vm713_vm2, %v2127_v56 }
 0x3a3   :  { %v2129_v41 = vpop.f32.mrf.mxu1 }
 0x3a5   :  { %v2132_v60 = vpop.f32.mrf.mxu1 }
 0x3a6   :  { %7955 = vmatmul.mubr.msk.f32.gmra.mxu0 %vm713_vm2, %v2132_v60 }
 0x3a7   :  { %v2134_v30 = vpop.f32.mrf.mxu1 }
 0x3a9   :  { %v2612_v39 = vpop.f32.mrf.mxu1 }
 0x3aa   :  { %7965 = vmatprep.mubr.msk.f32.mxu0 %vm713_vm2, %v2612_v39 }
 0x3ab   :  { %v2614_v47 = vpop.f32.mrf.mxu1 }
 0x3ad   :  { %v2617_v24 = vpop.f32.mrf.mxu1 }
 0x3ae   :  { %7966 = vmatmul.mubr.msk.f32.vlgmr.msra.gmra.mxu0 %vm713_vm2, %v2617_v24  ;;  %v3086_v24 = vld [vmem:[%s11620_s4 + $0x58] sm:$0xff] }
 0x3af   :  { %v2619_v53 = vpop.f32.mrf.mxu1  ;;  %8001 = vmatprep.subr.mxu0 %v3086_v24 }
 0x3b0   :  { %8002 = vmatpush3.msra.mxu0 %v3086_v24 }
 0x3b1   :  { %v2622_v20 = vpop.f32.mrf.mxu1 }
 0x3b2   :  { %7968 = vmatprep.mubr.msk.f32.mxu0 %vm713_vm2, %v2622_v20  ;;  %v3085_v20 = vld [vmem:[%s11620_s4 + $0x50] sm:$0xff] }
 0x3b3   :  { %v2624_v2 = vpop.f32.mrf.mxu1  ;;  %8003 = vmatprep.subr.mxu0 %v3085_v20 }
 0x3b4   :  { %v3084_v2 = vld [vmem:[%s11620_s4 + $0x48] sm:$0xff]  ;;  %8004 = vmatpush3.msra.mxu0 %v3085_v20 }
 0x3b5   :  { %v2627_v26 = vpop.f32.mrf.mxu1  ;;  %8005 = vmatprep.subr.mxu0 %v3084_v2 }
 0x3b6   :  { %7969 = vmatmul.mubr.msk.f32.gmra.mxu0 %vm713_vm2, %v2627_v26 }
 0x3b7   :  { %v2629_v50 = vpop.f32.mrf.mxu1  ;;  %8006 = vmatpush3.msra.mxu0 %v3084_v2 }
 0x3b9   :  { %v2632_v62 = vpop.f32.mrf.mxu1 }
 0x3ba   :  { %7971 = vmatprep.mubr.msk.f32.mxu0 %vm713_vm2, %v2632_v62  ;;  %v3083_v62 = vld [vmem:[%s11620_s4 + $0x40] sm:$0xff] }
 0x3bb   :  { %v2634_v4 = vpop.f32.mrf.mxu1  ;;  %8007 = vmatprep.subr.mxu0 %v3083_v62 }
 0x3bc   :  { %8008 = vmatpush3.msra.mxu0 %v3083_v62 }
 0x3bd   :  { %v2637_v51 = vpop.f32.mrf.mxu1 }
 0x3be   :  { %7972 = vmatmul.mubr.msk.f32.gmra.mxu0 %vm713_vm2, %v2637_v51  ;;  %v3082_v51 = vld [vmem:[%s11620_s4 + $0x38] sm:$0xff] }
 0x3bf   :  { %v2639_v48 = vpop.f32.mrf.mxu1  ;;  %8009 = vmatprep.subr.mxu0 %v3082_v51 }
 0x3c0   :  { %8010 = vmatpush3.msra.mxu0 %v3082_v51 }
 0x3c1   :  { %v2642_v25 = vpop.f32.mrf.mxu1 }
 0x3c2   :  { %7974 = vmatprep.mubr.msk.f32.mxu0 %vm713_vm2, %v2642_v25  ;;  %v3081_v25 = vld [vmem:[%s11620_s4 + $0x30] sm:$0xff] }
 0x3c3   :  { %v2644_v34 = vpop.f32.mrf.mxu1  ;;  %8011 = vmatprep.subr.mxu0 %v3081_v25 }
 0x3c4   :  { %v3080_v34 = vld [vmem:[%s11620_s4 + $0x28] sm:$0xff]  ;;  %8012 = vmatpush3.msra.mxu0 %v3081_v25 }
 0x3c5   :  { %v2647_v21 = vpop.f32.mrf.mxu1  ;;  %8013 = vmatprep.subr.mxu0 %v3080_v34 }
 0x3c6   :  { %7975 = vmatmul.mubr.msk.f32.gmra.mxu0 %vm713_vm2, %v2647_v21 }
 0x3c7   :  { %v2649_v22 = vpop.f32.mrf.mxu1  ;;  %8014 = vmatpush3.msra.mxu0 %v3080_v34 }
 0x3c9   :  { %v2652_v32 = vpop.f32.mrf.mxu1 }
 0x3ca   :  { %7977 = vmatprep.mubr.msk.f32.mxu0 %vm713_vm2, %v2652_v32  ;;  %v3079_v32 = vld [vmem:[%s11620_s4 + $0x20] sm:$0xff] }
 0x3cb   :  { %v2654_v35 = vpop.f32.mrf.mxu1  ;;  %8015 = vmatprep.subr.mxu0 %v3079_v32 }
 0x3cc   :  { %8016 = vmatpush3.msra.mxu0 %v3079_v32 }
 0x3cd   :  { %v2657_v37 = vpop.f32.mrf.mxu1 }
 0x3ce   :  { %7978 = vmatmul.mubr.msk.f32.gmra.mxu0 %vm713_vm2, %v2657_v37  ;;  %v3078_v37 = vld [vmem:[%s11620_s4 + $0x18] sm:$0xff] }
 0x3cf   :  { %v2659_v17 = vpop.f32.mrf.mxu1  ;;  %8017 = vmatprep.subr.mxu0 %v3078_v37 }
 0x3d0   :  { %8018 = vmatpush3.msra.mxu0 %v3078_v37 }
 0x3d1   :  { %v2662_v11 = vpop.f32.mrf.mxu1 }
 0x3d2   :  { %7980 = vmatprep.mubr.msk.f32.mxu0 %vm713_vm2, %v2662_v11  ;;  %v3077_v11 = vld [vmem:[%s11620_s4 + $0x10] sm:$0xff] }
 0x3d3   :  { %v2664_v28 = vpop.f32.mrf.mxu1  ;;  %8019 = vmatprep.subr.mxu0 %v3077_v11 }
 0x3d4   :  { %8020 = vmatpush3.msra.mxu0 %v3077_v11 }
 0x3d5   :  { %v2667_v56 = vpop.f32.mrf.mxu1 }
 0x3d6   :  { %7981 = vmatmul.mubr.msk.f32.gmra.mxu0 %vm713_vm2, %v2667_v56  ;;  %v3076_v56 = vld [vmem:[%s11620_s4 + $0x8] sm:$0xff] }
 0x3d7   :  { %v2669_v41 = vpop.f32.mrf.mxu1  ;;  %8021 = vmatprep.subr.mxu0 %v3076_v56 }
 0x3d8   :  { %8022 = vmatpush3.msra.mxu0 %v3076_v56 }
 0x3d9   :  { %v2672_v60 = vpop.f32.mrf.mxu1 }
 0x3da   :  { %7983 = vmatprep.mubr.msk.f32.mxu0 %vm713_vm2, %v2672_v60  ;;  %v3075_v60 = vld [vmem:[%s11620_s4] sm:$0xff] }
 0x3db   :  { %v2674_v30 = vpop.f32.mrf.mxu1  ;;  %8023 = vmatprep.subr.mxu0 %v3075_v60 }
 0x3dc   :  { %8024 = vmatpush3.msra.mxu0 %v3075_v60 }
 0x3dd   :  { %v2677_v39 = vpop.f32.mrf.mxu1 }
 0x3de   :  { %7984 = vmatmul.mubr.msk.f32.gmra.mxu0 %vm713_vm2, %v2677_v39 }
 0x3df   :  { %v2679_v47 = vpop.f32.mrf.mxu1 }
 0x3e1   :  { %v2682_v53 = vpop.f32.mrf.mxu1 }
 0x3e2   :  { %7986 = vmatprep.mubr.msk.f32.mxu0 %vm713_vm2, %v2682_v53 }
 0x3e3   :  { %v2684_v26 = vpop.f32.mrf.mxu1 }
 0x3e5   :  { %v2687_v50 = vpop.f32.mrf.mxu1 }
 0x3e6   :  { %7987 = vmatmul.mubr.msk.f32.gmra.mxu0 %vm713_vm2, %v2687_v50 }
 0x3e7   :  { %v2689_v4 = vpop.f32.mrf.mxu1 }
 0x3e9   :  { %v2692_v48 = vpop.f32.mrf.mxu1 }
 0x3ea   :  { %7989 = vmatprep.mubr.msk.f32.mxu0 %vm713_vm2, %v2692_v48 }
 0x3eb   :  { %v2694_v21 = vpop.f32.mrf.mxu1 }
 0x3ed   :  { %v2697_v22 = vpop.f32.mrf.mxu1 }
 0x3ee   :  { %7990 = vmatmul.mubr.msk.f32.gmra.mxu0 %vm713_vm2, %v2697_v22 }
 0x3ef   :  { %v2699_v35 = vpop.f32.mrf.mxu1 }
 0x3f1   :  { %v2702_v17 = vpop.f32.mrf.mxu1 }
 0x3f2   :  { %7992 = vmatprep.mubr.msk.f32.mxu0 %vm713_vm2, %v2702_v17 }
 0x3f3   :  { %v2704_v28 = vpop.f32.mrf.mxu1 }
 0x3f4   :  { %v6955_v28 = vld [vmem:[%s11620_s4 + $0xb8] sm:$0xff] }
 0x3f5   :  { %v2707_v41 = vpop.f32.mrf.mxu1  ;;  %8061 = vmatprep.subr.mxu0 %v6955_v28 }
 0x3f6   :  { %7993 = vmatmul.mubr.msk.f32.gmra.mxu0 %vm713_vm2, %v2707_v41 }
 0x3f7   :  { %v2709_v30 = vpop.f32.mrf.mxu1 }
 0x3f9   :  { %v2712_v39 = vpop.f32.mrf.mxu1 }
 0x3fa   :  { %7995 = vmatprep.mubr.msk.f32.mxu0 %vm713_vm2, %v2712_v39 }
 0x3fb   :  { %v2714_v47 = vpop.f32.mrf.mxu1 }
 0x3fd   :  { %v2717_v24 = vpop.f32.mrf.mxu1 }
 0x3fe   :  { %7996 = vmatmul.mubr.msk.f32.gmra.mxu0 %vm713_vm2, %v2717_v24 }
 0x3ff   :  { %v2719_v53 = vpop.f32.mrf.mxu1 }
 0x401   :  { %v2722_v20 = vpop.f32.mrf.mxu1 }
 0x402   :  { %7998 = vmatprep.mubr.msk.f32.mxu0 %vm713_vm2, %v2722_v20 }
 0x403   :  { %v2724_v2 = vpop.f32.mrf.mxu1 }
 0x405   :  { %v2727_v26 = vpop.f32.mrf.mxu1 }
 0x406   :  { %7999 = vmatmul.mubr.msk.f32.gmra.mxu0 %vm713_vm2, %v2727_v26 }
 0x407   :  { %v2729_v50 = vpop.f32.mrf.mxu1 }
 0x40e   :  { %v7923_v62 = vpop.f32.mrf.mxu0 }
 0x410   :  { %v2282_v4 = vpop.f32.mrf.mxu0 }
 0x416   :  { %v7926_v51 = vpop.f32.mrf.mxu0 }
 0x418   :  { %v2292_v48 = vpop.f32.mrf.mxu0 }
 0x41e   :  { %v9954_v25 = vpop.f32.mrf.mxu0 }
 0x420   :  { %v9956_v34 = vpop.f32.mrf.mxu0 }
 0x426   :  { %v9958_v21 = vpop.f32.mrf.mxu0 }
 0x428   :  { %v9960_v22 = vpop.f32.mrf.mxu0 }
 0x42e   :  { %v7935_v32 = vpop.f32.mrf.mxu0 }
 0x42f   :  { %v9963_v35 = vadd.f32 %v7935_v32, %v9803_v10 }
 0x430   :  { %v9965_v37 = vpop.f32.mrf.mxu0 }
 0x436   :  { %v7938_v17 = vpop.f32.mrf.mxu0 }
 0x437   :  { %v9968_v11 = vadd.f32 %v7938_v17, %v9810_v14 }
 0x438   :  { %v9973_v56 = vpop.f32.mrf.mxu0 }
 0x43e   :  { %v7941_v41 = vpop.f32.mrf.mxu0 }
 0x43f   :  { %v9976_v60 = vadd.f32 %v7941_v41, %v9817_v45 }
 0x440   :  { %v9978_v30 = vpop.f32.mrf.mxu0 }
 0x446   :  { %v7944_v10 = vpop.f32.mrf.mxu0 }
 0x447   :  { %v9981_v39 = vadd.f32 %v7944_v10, %v9827_v16  ;;  %v2402_v10 = vadd.f32 %v7923_v62, %v9775_v27 }
 0x448   :  { %v9983_v47 = vpop.f32.mrf.mxu0 }
 0x44e   :  { %v7947_v14 = vpop.f32.mrf.mxu0 }
 0x44f   :  { %v9986_v24 = vadd.f32 %v7947_v14, %v9835_v18  ;;  %v1117_v18 = vadd.f32 %v9390_v49, %v9388_v6  ;;  %v1127_v6 = vadd.f32 %v9396_v8, %v9394_v7  ;;  %v6954_v7 = vld [vmem:[%s11620_s4 + $0xb0] sm:$0xff] }
 0x450   :  { %v9988_v53 = vpop.f32.mrf.mxu0 }
 0x451   :  { %v1808_v27 = vadd.f32 %v9786_v40, %v1127_v6  ;;  %v6953_v40 = vld [vmem:[%s11620_s4 + $0xa8] sm:$0xff] }
 0x456   :  { %v7950_v20 = vpop.f32.mrf.mxu0 }
 0x457   :  { %v9991_v2 = vadd.f32 %v7950_v20, %v9842_v0  ;;  %v1806_v0 = vadd.f32 %v9779_v31, %v1117_v18  ;;  %v2404_v31 = vadd.f32 %v7926_v51, %v9782_v46  ;;  %v1137_v51 = vadd.f32 %v9402_v55, %v9400_v54  ;;  %v6951_v54 = vld [vmem:[%s11620_s4 + $0x98] sm:$0xff] }
 0x458   :  { %v9993_v45 = vpop.f32.mrf.mxu0 }
 0x459   :  { %v2401_v20 = vadd.f32 %v2282_v4, %v1806_v0  ;;  %v2403_v0 = vadd.f32 %v2292_v48, %v1808_v27 }
 0x45e   :  { %v7953_v26 = vpop.f32.mrf.mxu0 }
 0x45f   :  { %v9996_v50 = vadd.f32 %v7953_v26, %v9849_v12  ;;  %v10012_v12 = vld [vmem:[%s11619_s3] ss:$0 sm:$0xff] }
 0x460   :  { %v9998_v16 = vpop.f32.mrf.mxu0 }
 0x466   :  { %v7956_v32 = vpop.f32.mrf.mxu0 }
 0x467   :  { %v10001_v17 = vadd.f32 %v7956_v32, %v9856_v3 }
 0x468   :  { %v10005_v41 = vpop.f32.mrf.mxu0 }
 0x46e   :  { %v7967_v14 = vpop.f32.mrf.mxu0 }
 0x46f   :  { %v2997_v63 = vadd.f32 %v7967_v14, %v2402_v10  ;;  %v6952_v14 = vld [vmem:[%s11620_s4 + $0xa0] sm:$0xff] }
 0x470   :  { %v2877_v26 = vpop.f32.mrf.mxu0 }
 0x471   :  { %v2996_v3 = vadd.f32 %v2877_v26, %v2401_v20  ;;  %v10015_v32 = vadd.f32 %v10012_v12, %v2997_v63  ;;  %v2406_v20 = vadd.f32 %v9954_v25, %v9789_v23  ;;  %v6950_v23 = vld [vmem:[%s11620_s4 + $0x90] sm:$0xff] }
 0x473   :  { %v10020_v49 = vadd.f32 %v10012_v12, %v2996_v3  ;;  %v3052_v4 = vmax.f32 %v10015_v32, 0.0 }
 0x475   :  { %v3051_v62 = vmax.f32 %v10020_v49, 0.0 }
 0x476   :  { %v7970_v18 = vpop.f32.mrf.mxu0 }
 0x477   :  { %v2999_v10 = vadd.f32 %v7970_v18, %v2404_v31  ;;  %8025 = vmatprep.mubr.msk.f32.mxu0 %vm140_vm0, %v3051_v62  ;;  %v1147_v18 = vadd.f32 %v9408_v58, %v9406_v57  ;;  %v6947_v57 = vld [vmem:[%s11620_s4 + $0x78] sm:$0xff] }
 0x478   :  { %v2887_v8 = vpop.f32.mrf.mxu0  ;;  %8026 = vmatmul.mubr.msk.f32.vlgmr.msra.gmra.mxu0 %vm140_vm0, %v3052_v4 }
 0x479   :  { %v2998_v46 = vadd.f32 %v2887_v8, %v2403_v0  ;;  %8062 = vmatpush3.msra.mxu0 %v6955_v28  ;;  %v10039_v63 = vadd.f32 %v10012_v12, %v2999_v10  ;;  %v1810_v28 = vadd.f32 %v9793_v42, %v1137_v51  ;;  %v6948_v10 = vld [vmem:[%s11620_s4 + $0x80] sm:$0xff]  ;;  %v2408_v8 = vadd.f32 %v9958_v21, %v9796_v36  ;;  %v6946_v36 = vld [vmem:[%s11620_s4 + $0x70] sm:$0xff] }
 0x47a   :  { %8063 = vmatprep.subr.mxu0 %v6954_v7 }
 0x47b   :  { %v10044_v48 = vadd.f32 %v10012_v12, %v2998_v46  ;;  %8064 = vmatpush3.msra.mxu0 %v6954_v7  ;;  %v3054_v55 = vmax.f32 %v10039_v63, 0.0  ;;  %v2405_v6 = vadd.f32 %v9956_v34, %v1810_v28  ;;  %v6949_v34 = vld [vmem:[%s11620_s4 + $0x88] sm:$0xff]  ;;  %v1812_v7 = vadd.f32 %v9800_v38, %v1147_v18 }
 0x47c   :  { %8065 = vmatprep.subr.mxu0 %v6953_v40  ;;  %v3567_v63 = vld [vmem:[%s11621_s5 + $0x8] sm:$0xff] }
 0x47d   :  { %v3053_v26 = vmax.f32 %v10044_v48, 0.0  ;;  %8066 = vmatpush3.msra.mxu0 %v6953_v40  ;;  %v2407_v51 = vadd.f32 %v9960_v22, %v1812_v7  ;;  %v6945_v22 = vld [vmem:[%s11620_s4 + $0x68] sm:$0xff]  ;;  %6980 = vmatprep.mubr.msk.f32.mxu1 %vm3590_vm3, %v3567_v63 }
 0x47e   :  { %v7973_v3 = vpop.f32.mrf.mxu0  ;;  %8067 = vmatprep.subr.mxu0 %v6952_v14  ;;  %v6993_v48 = vld [vmem:[%s11621_s5 + $0xc8] sm:$0xff] }
 0x47f   :  { %v3001_v27 = vadd.f32 %v7973_v3, %v2406_v20  ;;  %8028 = vmatprep.mubr.msk.f32.mxu0 %vm140_vm0, %v3053_v26  ;;  %8068 = vmatpush3.msra.mxu0 %v6952_v14  ;;  %v1157_v20 = vadd.f32 %v9414_v13, %v9412_v61  ;;  %v6944_v3 = vld [vmem:[%s11620_s4 + $0x60] sm:$0xff] }
 0x480   :  { %v2897_v42 = vpop.f32.mrf.mxu0  ;;  %8029 = vmatmul.mubr.msk.f32.gmra.mxu0 %vm140_vm0, %v3054_v55  ;;  %8069 = vmatprep.subr.mxu0 %v6951_v54 }
 0x481   :  { %v3000_v25 = vadd.f32 %v2897_v42, %v2405_v6  ;;  %8070 = vmatpush3.msra.mxu0 %v6951_v54  ;;  %v10071_v31 = vadd.f32 %v10012_v12, %v3001_v27  ;;  %v1814_v6 = vadd.f32 %v9807_v52, %v1157_v20 }
 0x482   :  { %8071 = vmatprep.subr.mxu0 %v6950_v23 }
 0x483   :  { %v10076_v0 = vadd.f32 %v10012_v12, %v3000_v25  ;;  %8072 = vmatpush3.msra.mxu0 %v6950_v23  ;;  %v3056_v58 = vmax.f32 %v10071_v31, 0.0  ;;  %v2409_v61 = vadd.f32 %v9965_v37, %v1814_v6  ;;  %v1167_v37 = vadd.f32 %v9420_v29, %v9418_v15 }
 0x484   :  { %8073 = vmatprep.subr.mxu0 %v6949_v34 }
 0x485   :  { %v3055_v46 = vmax.f32 %v10076_v0, 0.0  ;;  %8074 = vmatpush3.msra.mxu0 %v6949_v34  ;;  %v1816_v18 = vadd.f32 %v9814_v19, %v1167_v37  ;;  %v11647_v19 = vld [vmem:[#allocation5_spill] sm:$0xff] }
 0x486   :  { %v7976_v40 = vpop.f32.mrf.mxu0  ;;  %8075 = vmatprep.subr.mxu0 %v6948_v10 }
 0x487   :  { %v3003_v14 = vadd.f32 %v7976_v40, %v2408_v8  ;;  %8031 = vmatprep.mubr.msk.f32.mxu0 %vm140_vm0, %v3055_v46  ;;  %8076 = vmatpush3.msra.mxu0 %v6948_v10 }
 0x488   :  { %v2907_v38 = vpop.f32.mrf.mxu0  ;;  %8032 = vmatmul.mubr.msk.f32.gmra.mxu0 %vm140_vm0, %v3056_v58  ;;  %8077 = vmatprep.subr.mxu0 %v6947_v57 }
 0x489   :  { %v3002_v21 = vadd.f32 %v2907_v38, %v2407_v51  ;;  %8078 = vmatpush3.msra.mxu0 %v6947_v57  ;;  %v10103_v28 = vadd.f32 %v10012_v12, %v3003_v14  ;;  %v2411_v57 = vadd.f32 %v9973_v56, %v1816_v18  ;;  %v11648_v14 = vld [vmem:[#allocation6_spill] sm:$0xff] }
 0x48a   :  { %8079 = vmatprep.subr.mxu0 %v6946_v36 }
 0x48b   :  { %v10108_v54 = vadd.f32 %v10012_v12, %v3002_v21  ;;  %8080 = vmatpush3.msra.mxu0 %v6946_v36  ;;  %v3058_v23 = vmax.f32 %v10103_v28, 0.0  ;;  %v1177_v36 = vadd.f32 %v11648_v14, %v11647_v19  ;;  %v11652_v19 = vld [vmem:[#allocation10_spill] sm:$0xff] }
 0x48c   :  { %8081 = vmatprep.subr.mxu0 %v6945_v22 }
 0x48d   :  { %v3057_v27 = vmax.f32 %v10108_v54, 0.0  ;;  %8082 = vmatpush3.msra.mxu0 %v6945_v22 }
 0x48e   :  { %v7979_v42 = vpop.f32.mrf.mxu0  ;;  %8083 = vmatprep.subr.mxu0 %v6944_v3 }
 0x48f   :  { %v3005_v13 = vadd.f32 %v7979_v42, %v9963_v35  ;;  %8034 = vmatprep.mubr.msk.f32.mxu0 %vm140_vm0, %v3057_v27  ;;  %8084 = vmatpush3.msra.mxu0 %v6944_v3 }
 0x490   :  { %v2917_v25 = vpop.f32.mrf.mxu0  ;;  %8035 = vmatmul.mubr.msk.f32.gmra.mxu0 %vm140_vm0, %v3058_v23  ;;  %3813 = vmatprep.subr.mxu0 %v11645_v43 }
 0x491   :  { %v3004_v52 = vadd.f32 %v2917_v25, %v2409_v61  ;;  %v10126_v34 = vadd.f32 %v10012_v12, %v3005_v13  ;;  %v11649_v61 = vld [vmem:[#allocation7_spill] sm:$0xff]  ;;  %v11650_v13 = vld [vmem:[#allocation8_spill] sm:$0xff] }
 0x492   :  { %v1187_v25 = vadd.f32 %v11650_v13, %v11649_v61  ;;  %v11653_v61 = vld [vmem:[#allocation11_spill] sm:$0xff]  ;;  %v11654_v13 = vld [vmem:[#allocation12_spill] sm:$0xff] }
 0x493   :  { %v10131_v35 = vadd.f32 %v10012_v12, %v3004_v52  ;;  %v3060_v7 = vmax.f32 %v10126_v34, 0.0 }
 0x495   :  { %v3059_v10 = vmax.f32 %v10131_v35, 0.0 }
 0x496   :  { %v7982_v8 = vpop.f32.mrf.mxu0 }
 0x497   :  { %v3007_v40 = vadd.f32 %v7982_v8, %v9968_v11  ;;  %8037 = vmatprep.mubr.msk.f32.mxu0 %vm140_vm0, %v3059_v10  ;;  %v1818_v11 = vadd.f32 %v9821_v59, %v1177_v36 }
 0x498   :  { %v2927_v51 = vpop.f32.mrf.mxu0  ;;  %8038 = vmatmul.mubr.msk.f32.gmra.mxu0 %vm140_vm0, %v3060_v7 }
 0x499   :  { %v3006_v15 = vadd.f32 %v2927_v51, %v2411_v57  ;;  %v10145_v29 = vadd.f32 %v10012_v12, %v3007_v40  ;;  %v2413_v20 = vadd.f32 %v9978_v30, %v1818_v11 }
 0x49b   :  { %v10150_v56 = vadd.f32 %v10012_v12, %v3006_v15  ;;  %v3062_v21 = vmax.f32 %v10145_v29, 0.0  ;;  %v11651_v15 = vld [vmem:[#allocation9_spill] sm:$0xff] }
 0x49c   :  { %v1197_v14 = vadd.f32 %v11652_v19, %v11651_v15 }
 0x49d   :  { %v3061_v38 = vmax.f32 %v10150_v56, 0.0 }
 0x49e   :  { %v7985_v22 = vpop.f32.mrf.mxu0 }
 0x49f   :  { %v3009_v3 = vadd.f32 %v7985_v22, %v9976_v60  ;;  %8040 = vmatprep.mubr.msk.f32.mxu0 %vm140_vm0, %v3061_v38  ;;  %v1820_v60 = vadd.f32 %v9832_v44, %v1187_v25  ;;  %v1207_v25 = vadd.f32 %v11654_v13, %v11653_v61 }
 0x4a0   :  { %v2937_v6 = vpop.f32.mrf.mxu0  ;;  %8041 = vmatmul.mubr.msk.f32.gmra.mxu0 %vm140_vm0, %v3062_v21 }
 0x4a1   :  { %v3008_v42 = vadd.f32 %v2937_v6, %v2413_v20  ;;  %v10164_v59 = vadd.f32 %v10012_v12, %v3009_v3  ;;  %v2415_v8 = vadd.f32 %v9983_v47, %v1820_v60 }
 0x4a3   :  { %v10169_v30 = vadd.f32 %v10012_v12, %v3008_v42  ;;  %v3064_v37 = vmax.f32 %v10164_v59, 0.0 }
 0x4a5   :  { %v3063_v52 = vmax.f32 %v10169_v30, 0.0 }
 0x4a6   :  { %v7988_v18 = vpop.f32.mrf.mxu0 }
 0x4a7   :  { %v3011_v57 = vadd.f32 %v7988_v18, %v9981_v39  ;;  %8043 = vmatprep.mubr.msk.f32.mxu0 %vm140_vm0, %v3063_v52  ;;  %v1822_v39 = vadd.f32 %v9839_v9, %v1197_v14  ;;  %v11655_v14 = vld [vmem:[#allocation13_spill] sm:$0xff] }
 0x4a8   :  { %v2947_v40 = vpop.f32.mrf.mxu0  ;;  %8044 = vmatmul.mubr.msk.f32.gmra.mxu0 %vm140_vm0, %v3064_v37 }
 0x4a9   :  { %v3010_v51 = vadd.f32 %v2947_v40, %v2415_v8  ;;  %v10183_v44 = vadd.f32 %v10012_v12, %v3011_v57  ;;  %v2417_v20 = vadd.f32 %v9988_v53, %v1822_v39  ;;  %v11656_v39 = vld [vmem:[#allocation14_spill] sm:$0xff] }
 0x4ab   :  { %v10188_v47 = vadd.f32 %v10012_v12, %v3010_v51  ;;  %v3066_v11 = vmax.f32 %v10183_v44, 0.0 }
 0x4ad   :  { %v3065_v36 = vmax.f32 %v10188_v47, 0.0 }
 0x4ae   :  { %v7991_v22 = vpop.f32.mrf.mxu0 }
 0x4af   :  { %v3013_v3 = vadd.f32 %v7991_v22, %v9986_v24  ;;  %8046 = vmatprep.mubr.msk.f32.mxu0 %vm140_vm0, %v3065_v36  ;;  %v1824_v24 = vadd.f32 %v9846_v5, %v1207_v25  ;;  %v1217_v22 = vadd.f32 %v11656_v39, %v11655_v14  ;;  %v11657_v25 = vld [vmem:[#allocation15_spill] sm:$0xff] }
 0x4b0   :  { %v2957_v6 = vpop.f32.mrf.mxu0  ;;  %8047 = vmatmul.mubr.msk.f32.gmra.mxu0 %vm140_vm0, %v3066_v11 }
 0x4b1   :  { %v3012_v42 = vadd.f32 %v2957_v6, %v2417_v20  ;;  %v10202_v9 = vadd.f32 %v10012_v12, %v3013_v3  ;;  %v2419_v57 = vadd.f32 %v9993_v45, %v1824_v24  ;;  %v1826_v20 = vadd.f32 %v9853_v33, %v1217_v22  ;;  %v11658_v24 = vld [vmem:[#allocation16_spill] sm:$0xff] }
 0x4b3   :  { %v3043_v53 = vadd.f32 %v10012_v12, %v3012_v42  ;;  %v3068_v18 = vmax.f32 %v10202_v9, 0.0 }
 0x4b5   :  { %v3067_v60 = vmax.f32 %v3043_v53, 0.0  ;;  %v1227_v53 = vadd.f32 %v9772_v1, %v11657_v25 }
 0x4b6   :  { %v7994_v8 = vpop.f32.mrf.mxu0 }
 0x4b7   :  { %v3015_v40 = vadd.f32 %v7994_v8, %v9991_v2  ;;  %8049 = vmatprep.mubr.msk.f32.mxu0 %vm140_vm0, %v3067_v60  ;;  %v2421_v2 = vadd.f32 %v9998_v16, %v1826_v20  ;;  %v1828_v8 = vadd.f32 %v11658_v24, %v1227_v53 }
 0x4b8   :  { %v2967_v51 = vpop.f32.mrf.mxu0  ;;  %8050 = vmatmul.mubr.msk.f32.gmra.mxu0 %vm140_vm0, %v3068_v18 }
 0x4b9   :  { %v3014_v15 = vadd.f32 %v2967_v51, %v2419_v57  ;;  %v3046_v19 = vadd.f32 %v10012_v12, %v3015_v40 }
 0x4bb   :  { %v3045_v5 = vadd.f32 %v10012_v12, %v3014_v15  ;;  %v3070_v6 = vmax.f32 %v3046_v19, 0.0 }
 0x4bd   :  { %v3069_v3 = vmax.f32 %v3045_v5, 0.0 }
 0x4be   :  { %v7997_v45 = vpop.f32.mrf.mxu0 }
 0x4bf   :  { %v3017_v42 = vadd.f32 %v7997_v45, %v9996_v50  ;;  %8052 = vmatprep.mubr.msk.f32.mxu0 %vm140_vm0, %v3069_v3  ;;  %v2423_v50 = vadd.f32 %v10005_v41, %v1828_v8 }
 0x4c0   :  { %v2977_v9 = vpop.f32.mrf.mxu0  ;;  %8053 = vmatmul.mubr.msk.f32.gmra.mxu0 %vm140_vm0, %v3070_v6 }
 0x4c1   :  { %v3016_v61 = vadd.f32 %v2977_v9, %v2421_v2  ;;  %v3048_v13 = vadd.f32 %v10012_v12, %v3017_v42 }
 0x4c3   :  { %v3047_v33 = vadd.f32 %v10012_v12, %v3016_v61  ;;  %v3072_v40 = vmax.f32 %v3048_v13, 0.0 }
 0x4c5   :  { %v3071_v57 = vmax.f32 %v3047_v33, 0.0 }
 0x4c6   :  { %v8000_v16 = vpop.f32.mrf.mxu0 }
 0x4c7   :  { %v3019_v51 = vadd.f32 %v8000_v16, %v10001_v17  ;;  %8055 = vmatprep.mubr.msk.f32.mxu0 %vm140_vm0, %v3071_v57 }
 0x4c8   :  { %v2987_v15 = vpop.f32.mrf.mxu0  ;;  %8056 = vmatmul.mubr.msk.f32.gmra.mxu0 %vm140_vm0, %v3072_v40 }
 0x4c9   :  { %v3018_v19 = vadd.f32 %v2987_v15, %v2423_v50  ;;  %v3050_v14 = vadd.f32 %v10012_v12, %v3019_v51 }
 0x4cb   :  { %v3049_v1 = vadd.f32 %v10012_v12, %v3018_v19  ;;  %v3074_v22 = vmax.f32 %v3050_v14, 0.0 }
 0x4cd   :  { %v3073_v39 = vmax.f32 %v3049_v1, 0.0 }
 0x4cf   :  { %8058 = vmatprep.mubr.msk.f32.mxu0 %vm140_vm0, %v3073_v39 }
 0x4d0   :  { %8059 = vmatmul.mubr.msk.f32.gmra.mxu0 %vm140_vm0, %v3074_v22 }
 0x4d1   :  { %8085 = vmatprep.mubr.msk.f32.mxu0 %vm140_vm0, %v3051_v62 }
 0x4d4   :  { %8086 = vmatmul.mubr.msk.f32.vlgmr.msra.gmra.mxu0 %vm140_vm0, %v3052_v4 }
 0x4d5   :  { %8088 = vmatprep.mubr.msk.f32.mxu0 %vm140_vm0, %v3053_v26 }
 0x4d8   :  { %8089 = vmatmul.mubr.msk.f32.gmra.mxu0 %vm140_vm0, %v3054_v55 }
 0x4d9   :  { %8091 = vmatprep.mubr.msk.f32.mxu0 %vm140_vm0, %v3055_v46 }
 0x4dc   :  { %8092 = vmatmul.mubr.msk.f32.gmra.mxu0 %vm140_vm0, %v3056_v58 }
 0x4dd   :  { %8094 = vmatprep.mubr.msk.f32.mxu0 %vm140_vm0, %v3057_v27 }
 0x4e0   :  { %8095 = vmatmul.mubr.msk.f32.gmra.mxu0 %vm140_vm0, %v3058_v23 }
 0x4e1   :  { %8097 = vmatprep.mubr.msk.f32.mxu0 %vm140_vm0, %v3059_v10 }
 0x4e4   :  { %8098 = vmatmul.mubr.msk.f32.gmra.mxu0 %vm140_vm0, %v3060_v7 }
 0x4e5   :  { %8100 = vmatprep.mubr.msk.f32.mxu0 %vm140_vm0, %v3061_v38 }
 0x4e8   :  { %8101 = vmatmul.mubr.msk.f32.gmra.mxu0 %vm140_vm0, %v3062_v21 }
 0x4e9   :  { %8103 = vmatprep.mubr.msk.f32.mxu0 %vm140_vm0, %v3063_v52 }
 0x4ec   :  { %8104 = vmatmul.mubr.msk.f32.gmra.mxu0 %vm140_vm0, %v3064_v37 }
 0x4ed   :  { %8106 = vmatprep.mubr.msk.f32.mxu0 %vm140_vm0, %v3065_v36 }
 0x4f0   :  { %8107 = vmatmul.mubr.msk.f32.gmra.mxu0 %vm140_vm0, %v3066_v11 }
 0x4f1   :  { %8109 = vmatprep.mubr.msk.f32.mxu0 %vm140_vm0, %v3067_v60 }
 0x4f4   :  { %8110 = vmatmul.mubr.msk.f32.gmra.mxu0 %vm140_vm0, %v3068_v18 }
 0x4f5   :  { %8112 = vmatprep.mubr.msk.f32.mxu0 %vm140_vm0, %v3069_v3 }
 0x4f8   :  { %8113 = vmatmul.mubr.msk.f32.gmra.mxu0 %vm140_vm0, %v3070_v6 }
 0x4f9   :  { %8115 = vmatprep.mubr.msk.f32.mxu0 %vm140_vm0, %v3071_v57 }
 0x4fc   :  { %8116 = vmatmul.mubr.msk.f32.gmra.mxu0 %vm140_vm0, %v3072_v40 }
 0x4fd   :  { %8118 = vmatprep.mubr.msk.f32.mxu0 %vm140_vm0, %v3073_v39 }
 0x500   :  { %8119 = vmatmul.mubr.msk.f32.gmra.mxu0 %vm140_vm0, %v3074_v22 }
 0x501   :  { %7016 = vmatprep.mubr.msk.f32.mxu0 %vm3590_vm3, %v6993_v48 }
 0x538   :  { %v10291_v17 = vpop.f32.mrf.mxu0 }
 0x53a   :  { %v10293_v41 = vpop.f32.mrf.mxu0 }
 0x540   :  { %v10295_v12 = vpop.f32.mrf.mxu0 }
 0x542   :  { %v10297_v32 = vpop.f32.mrf.mxu0 }
 0x548   :  { %v10299_v49 = vpop.f32.mrf.mxu0 }
 0x54a   :  { %v10301_v62 = vpop.f32.mrf.mxu0 }
 0x550   :  { %v10303_v4 = vpop.f32.mrf.mxu0 }
 0x552   :  { %v10313_v26 = vpop.f32.mrf.mxu0 }
 0x558   :  { %v8039_v55 = vpop.f32.mrf.mxu0 }
 0x55a   :  { %v10315_v31 = vpop.f32.mrf.mxu0 }
 0x560   :  { %v8042_v0 = vpop.f32.mrf.mxu0 }
 0x562   :  { %v3275_v46 = vpop.f32.mrf.mxu0 }
 0x568   :  { %v8045_v58 = vpop.f32.mrf.mxu0 }
 0x56a   :  { %v3285_v28 = vpop.f32.mrf.mxu0 }
 0x570   :  { %v8048_v54 = vpop.f32.mrf.mxu0 }
 0x572   :  { %v3295_v27 = vpop.f32.mrf.mxu0 }
 0x578   :  { %v10317_v23 = vpop.f32.mrf.mxu0 }
 0x57a   :  { %v10319_v34 = vpop.f32.mrf.mxu0 }
 0x580   :  { %v10321_v35 = vpop.f32.mrf.mxu0 }
 0x582   :  { %v10323_v10 = vpop.f32.mrf.mxu0 }
 0x588   :  { %v10325_v7 = vpop.f32.mrf.mxu0 }
 0x58a   :  { %v10327_v29 = vpop.f32.mrf.mxu0 }
 0x590   :  { %v10329_v56 = vpop.f32.mrf.mxu0 }
 0x592   :  { %v10331_v38 = vpop.f32.mrf.mxu0 }
 0x594   :  { %v10333_v21 = vpop.f32.mrf.mxu0 }
 0x596   :  { %v10335_v59 = vpop.f32.mrf.mxu0 }
 0x598   :  { %v10337_v30 = vpop.f32.mrf.mxu0 }
 0x599   :  { %v3545_v1 = vmax.f32 %v10295_v12, %v10337_v30  ;;  %v3542_v12 = vmax.f32 %v10293_v41, %v10335_v59  ;;  %v3574_v59 = vld [vmem:[%s11621_s5 + $0x40] sm:$0xff] }
 0x59a   :  { %v10339_v52 = vpop.f32.mrf.mxu0  ;;  %v7000_v30 = vld [vmem:[%s11621_s5 + $0x100] sm:$0xff] }
 0x59b   :  { %v3544_v39 = vmax.f32 %v10297_v32, %v10339_v52  ;;  %v3577_v52 = vld [vmem:[%s11621_s5 + $0x58] sm:$0xff] }
 0x59c   :  { %v10341_v37 = vpop.f32.mrf.mxu0 }
 0x59d   :  { %v3547_v15 = vmax.f32 %v10299_v49, %v10341_v37  ;;  %v3543_v49 = vmax.f32 %v10291_v17, %v10333_v21  ;;  %v7001_v21 = vld [vmem:[%s11621_s5 + $0x108] sm:$0xff]  ;;  %v7003_v37 = vld [vmem:[%s11621_s5 + $0x118] sm:$0xff] }
 0x59e   :  { %v10343_v44 = vpop.f32.mrf.mxu0 }
 0x59f   :  { %v3546_v19 = vmax.f32 %v10301_v62, %v10343_v44  ;;  %v3576_v44 = vld [vmem:[%s11621_s5 + $0x50] sm:$0xff] }
 0x5a0   :  { %v8096_v47 = vpop.f32.mrf.mxu0 }
 0x5a1   :  { %v3549_v16 = vmax.f32 %v10303_v4, %v8096_v47  ;;  %v7002_v47 = vld [vmem:[%s11621_s5 + $0x110] sm:$0xff] }
 0x5a2   :  { %v3453_v36 = vpop.f32.mrf.mxu0 }
 0x5a3   :  { %v3548_v50 = vmax.f32 %v10313_v26, %v3453_v36  ;;  %v3579_v36 = vld [vmem:[%s11621_s5 + $0x68] sm:$0xff] }
 0x5a4   :  { %v8099_v11 = vpop.f32.mrf.mxu0 }
 0x5a5   :  { %v3551_v8 = vmax.f32 %v8039_v55, %v8099_v11  ;;  %v7005_v11 = vld [vmem:[%s11621_s5 + $0x128] sm:$0xff] }
 0x5a6   :  { %v3463_v60 = vpop.f32.mrf.mxu0 }
 0x5a7   :  { %v3550_v57 = vmax.f32 %v10315_v31, %v3463_v60  ;;  %v3566_v31 = vld [vmem:[%s11621_s5] sm:$0xff] }
 0x5a8   :  { %v8102_v18 = vpop.f32.mrf.mxu0  ;;  %v3578_v60 = vld [vmem:[%s11621_s5 + $0x60] sm:$0xff] }
 0x5a9   :  { %v3553_v53 = vmax.f32 %v8042_v0, %v8102_v18  ;;  %v6992_v0 = vld [vmem:[%s11621_s5 + $0xc0] sm:$0xff] }
 0x5aa   :  { %v3473_v5 = vpop.f32.mrf.mxu0  ;;  %v7004_v18 = vld [vmem:[%s11621_s5 + $0x120] sm:$0xff] }
 0x5ab   :  { %v3552_v33 = vmax.f32 %v3275_v46, %v3473_v5  ;;  %v3569_v46 = vld [vmem:[%s11621_s5 + $0x18] sm:$0xff] }
 0x5ac   :  { %v8105_v20 = vpop.f32.mrf.mxu0  ;;  %v3581_v5 = vld [vmem:[%s11621_s5 + $0x78] sm:$0xff] }
 0x5ad   :  { %v3555_v61 = vmax.f32 %v8045_v58, %v8105_v20  ;;  %v6995_v58 = vld [vmem:[%s11621_s5 + $0xd8] sm:$0xff] }
 0x5ae   :  { %v3483_v3 = vpop.f32.mrf.mxu0  ;;  %v7007_v20 = vld [vmem:[%s11621_s5 + $0x138] sm:$0xff] }
 0x5af   :  { %v3554_v13 = vmax.f32 %v3285_v28, %v3483_v3  ;;  %v3568_v28 = vld [vmem:[%s11621_s5 + $0x10] sm:$0xff] }
 0x5b0   :  { %v8108_v6 = vpop.f32.mrf.mxu0  ;;  %v3580_v3 = vld [vmem:[%s11621_s5 + $0x70] sm:$0xff] }
 0x5b1   :  { %v3557_v45 = vmax.f32 %v8048_v54, %v8108_v6  ;;  %v6994_v54 = vld [vmem:[%s11621_s5 + $0xd0] sm:$0xff] }
 0x5b2   :  { %v3493_v2 = vpop.f32.mrf.mxu0  ;;  %v7006_v6 = vld [vmem:[%s11621_s5 + $0x130] sm:$0xff] }
 0x5b3   :  { %v3556_v42 = vmax.f32 %v3295_v27, %v3493_v2  ;;  %3628 = vmatpush1.msra.mxu1 %v3557_v45  ;;  %3814 = vmatpush1.msra.mxu0 %v3557_v45  ;;  %v3571_v27 = vld [vmem:[%s11621_s5 + $0x28] sm:$0xff] }
 0x5b4   :  { %v10345_v9 = vpop.f32.mrf.mxu0  ;;  %3629 = vmatprep.subr.mxu1 %v11645_v43  ;;  %3815 = vmatprep.subr.mxu0 %v11645_v43  ;;  %v3583_v45 = vld [vmem:[%s11621_s5 + $0x88] sm:$0xff] }
 0x5b5   :  { %3630 = vmatpush1.msra.mxu1 %v3556_v42  ;;  %3816 = vmatpush1.msra.mxu0 %v3556_v42  ;;  %v3559_v26 = vmax.f32 %v10317_v23, %v10345_v9  ;;  %v6997_v23 = vld [vmem:[%s11621_s5 + $0xe8] sm:$0xff]  ;;  %v3582_v42 = vld [vmem:[%s11621_s5 + $0x80] sm:$0xff] }
 0x5b6   :  { %3631 = vmatprep.subr.mxu1 %v11645_v43  ;;  %3817 = vmatprep.subr.mxu0 %v11645_v43  ;;  %v10351_v25 = vpop.f32.mrf.mxu0  ;;  %v7009_v2 = vld [vmem:[%s11621_s5 + $0x148] sm:$0xff]  ;;  %v7008_v9 = vld [vmem:[%s11621_s5 + $0x140] sm:$0xff] }
 0x5b7   :  { %3632 = vmatpush1.msra.mxu1 %v3555_v61  ;;  %3818 = vmatpush1.msra.mxu0 %v3555_v61  ;;  %v3558_v55 = vmax.f32 %v10319_v34, %v10351_v25  ;;  %v3570_v34 = vld [vmem:[%s11621_s5 + $0x20] sm:$0xff]  ;;  %v3585_v61 = vld [vmem:[%s11621_s5 + $0x98] sm:$0xff]  ;;  %v3584_v25 = vld [vmem:[%s11621_s5 + $0x90] sm:$0xff] }
 0x5b8   :  { %3633 = vmatprep.subr.mxu1 %v11645_v43  ;;  %3819 = vmatprep.subr.mxu0 %v11645_v43  ;;  %v10357_v24 = vpop.f32.mrf.mxu0 }
 0x5b9   :  { %3634 = vmatpush1.msra.mxu1 %v3554_v13  ;;  %3820 = vmatpush1.msra.mxu0 %v3554_v13  ;;  %v3561_v63 = vmax.f32 %v10321_v35, %v10357_v24  ;;  %v6996_v35 = vld [vmem:[%s11621_s5 + $0xe0] sm:$0xff]  ;;  %v7011_v13 = vld [vmem:[%s11621_s5 + $0x158] sm:$0xff]  ;;  %v7013_v24 = vld [vmem:[%s11621_s5 + $0x168] sm:$0xff] }
 0x5ba   :  { %3635 = vmatprep.subr.mxu1 %v11645_v43  ;;  %3821 = vmatprep.subr.mxu0 %v11645_v43  ;;  %v10364_v40 = vpop.f32.mrf.mxu0 }
 0x5bb   :  { %3636 = vmatpush1.msra.mxu1 %v3553_v53  ;;  %3822 = vmatpush1.msra.mxu0 %v3553_v53  ;;  %v3560_v48 = vmax.f32 %v10323_v10, %v10364_v40  ;;  %v3573_v10 = vld [vmem:[%s11621_s5 + $0x38] sm:$0xff]  ;;  %v7010_v53 = vld [vmem:[%s11621_s5 + $0x150] sm:$0xff] }
 0x5bc   :  { %3637 = vmatprep.subr.mxu1 %v11645_v43  ;;  %3823 = vmatprep.subr.mxu0 %v11645_v43  ;;  %v8117_v51 = vpop.f32.mrf.mxu0  ;;  %v3589_v40 = vld [vmem:[%s11621_s5 + $0xb8] sm:$0xff] }
 0x5bd   :  { %3638 = vmatpush1.msra.mxu1 %v3552_v33  ;;  %3824 = vmatpush1.msra.mxu0 %v3552_v33  ;;  %v3563_v41 = vmax.f32 %v10325_v7, %v8117_v51  ;;  %v6999_v7 = vld [vmem:[%s11621_s5 + $0xf8] sm:$0xff]  ;;  %v3587_v33 = vld [vmem:[%s11621_s5 + $0xa8] sm:$0xff]  ;;  %v7014_v51 = vld [vmem:[%s11621_s5 + $0x170] sm:$0xff] }
 0x5be   :  { %3639 = vmatprep.subr.mxu1 %v11645_v43  ;;  %3825 = vmatprep.subr.mxu0 %v11645_v43  ;;  %v3523_v14 = vpop.f32.mrf.mxu0 }
 0x5bf   :  { %3640 = vmatpush1.msra.mxu1 %v3551_v8  ;;  %3826 = vmatpush1.msra.mxu0 %v3551_v8  ;;  %v3562_v4 = vmax.f32 %v10327_v29, %v3523_v14  ;;  %v3572_v29 = vld [vmem:[%s11621_s5 + $0x30] sm:$0xff]  ;;  %v3586_v8 = vld [vmem:[%s11621_s5 + $0xa0] sm:$0xff]  ;;  %v7093_v14 = vld [vmem:[%s11623_s7 + $0x78] sm:$0xff] }
 0x5c0   :  { %3641 = vmatprep.subr.mxu1 %v11645_v43  ;;  %3827 = vmatprep.subr.mxu0 %v11645_v43  ;;  %v8120_v22 = vpop.f32.mrf.mxu0 }
 0x5c1   :  { %3642 = vmatpush1.msra.mxu1 %v3550_v57  ;;  %3828 = vmatpush1.msra.mxu0 %v3550_v57  ;;  %v3565_v62 = vmax.f32 %v10329_v56, %v8120_v22  ;;  %v6998_v56 = vld [vmem:[%s11621_s5 + $0xf0] sm:$0xff]  ;;  %v7012_v57 = vld [vmem:[%s11621_s5 + $0x160] sm:$0xff] }
 0x5c2   :  { %3643 = vmatprep.subr.mxu1 %v11645_v43  ;;  %3829 = vmatprep.subr.mxu0 %v11645_v43  ;;  %v3533_v32 = vpop.f32.mrf.mxu0  ;;  %v7090_v22 = vld [vmem:[%s11623_s7 + $0x60] sm:$0xff] }
 0x5c3   :  { %3644 = vmatpush1.msra.mxu1 %v3549_v16  ;;  %3830 = vmatpush1.msra.mxu0 %v3549_v16  ;;  %v3564_v17 = vmax.f32 %v10331_v38, %v3533_v32  ;;  %v3575_v38 = vld [vmem:[%s11621_s5 + $0x48] sm:$0xff]  ;;  %v7015_v16 = vld [vmem:[%s11621_s5 + $0x178] sm:$0xff] }
 0x5c4   :  { %3645 = vmatprep.subr.mxu1 %v11645_v43  ;;  %3831 = vmatprep.subr.mxu0 %v11645_v43 }
 0x5c5   :  { %3646 = vmatpush1.msra.mxu1 %v3548_v50  ;;  %3832 = vmatpush1.msra.mxu0 %v3548_v50  ;;  %v3588_v50 = vld [vmem:[%s11621_s5 + $0xb0] sm:$0xff] }
 0x5c6   :  { %3647 = vmatprep.subr.mxu1 %v11645_v43  ;;  %3833 = vmatprep.subr.mxu0 %v11645_v43 }
 0x5c7   :  { %3648 = vmatpush1.msra.mxu1 %v3547_v15  ;;  %3834 = vmatpush1.msra.mxu0 %v3547_v15  ;;  %v7095_v15 = vld [vmem:[%s11623_s7 + $0x88] sm:$0xff] }
 0x5c8   :  { %3649 = vmatprep.subr.mxu1 %v11645_v43  ;;  %3835 = vmatprep.subr.mxu0 %v11645_v43 }
 0x5c9   :  { %3650 = vmatpush1.msra.mxu1 %v3546_v19  ;;  %3836 = vmatpush1.msra.mxu0 %v3546_v19  ;;  %v7094_v19 = vld [vmem:[%s11623_s7 + $0x80] sm:$0xff] }
 0x5ca   :  { %3651 = vmatprep.subr.mxu1 %v11645_v43  ;;  %3837 = vmatprep.subr.mxu0 %v11645_v43 }
 0x5cb   :  { %3652 = vmatpush1.msra.mxu1 %v3545_v1  ;;  %3838 = vmatpush1.msra.mxu0 %v3545_v1  ;;  %v7092_v1 = vld [vmem:[%s11623_s7 + $0x70] sm:$0xff] }
 0x5cc   :  { %3653 = vmatprep.subr.mxu1 %v11645_v43  ;;  %3839 = vmatprep.subr.mxu0 %v11645_v43 }
 0x5cd   :  { %3654 = vmatpush1.msra.mxu1 %v3544_v39  ;;  %3840 = vmatpush1.msra.mxu0 %v3544_v39  ;;  %v7091_v39 = vld [vmem:[%s11623_s7 + $0x68] sm:$0xff] }
 0x5ce   :  { %3655 = vmatprep.subr.mxu1 %v11645_v43  ;;  %3841 = vmatprep.subr.mxu0 %v11645_v43 }
 0x5cf   :  { %3656 = vmatpush1.msra.mxu1 %v3543_v49  ;;  %3842 = vmatpush1.msra.mxu0 %v3543_v49  ;;  %v3950_v49 = vld [vmem:[%s11622_s6] sm:$0xff] }
 0x5d0   :  { %3657 = vmatprep.subr.mxu1 %v11645_v43  ;;  %3843 = vmatprep.subr.mxu0 %v11645_v43 }
 0x5d1   :  { %3658 = vmatpush1.msra.mxu1 %v3542_v12  ;;  %3844 = vmatpush1.msra.mxu0 %v3542_v12 }
 0x5d2   :  { %3675 = vmatprep.subr.mxu1 %v11645_v43  ;;  %3861 = vmatprep.subr.mxu0 %v11645_v43 }
 0x5d3   :  { %3676 = vmatpush2.msra.mxu1 %v3565_v62  ;;  %3862 = vmatpush2.msra.mxu0 %v3565_v62 }
 0x5d4   :  { %3677 = vmatprep.subr.mxu1 %v11645_v43  ;;  %3863 = vmatprep.subr.mxu0 %v11645_v43 }
 0x5d5   :  { %3678 = vmatpush2.msra.mxu1 %v3564_v17  ;;  %3864 = vmatpush2.msra.mxu0 %v3564_v17 }
 0x5d6   :  { %3679 = vmatprep.subr.mxu1 %v11645_v43  ;;  %3865 = vmatprep.subr.mxu0 %v11645_v43 }
 0x5d7   :  { %3680 = vmatpush2.msra.mxu1 %v3563_v41  ;;  %3866 = vmatpush2.msra.mxu0 %v3563_v41 }
 0x5d8   :  { %3681 = vmatprep.subr.mxu1 %v11645_v43  ;;  %3867 = vmatprep.subr.mxu0 %v11645_v43 }
 0x5d9   :  { %3682 = vmatpush2.msra.mxu1 %v3562_v4  ;;  %3868 = vmatpush2.msra.mxu0 %v3562_v4 }
 0x5da   :  { %3683 = vmatprep.subr.mxu1 %v11645_v43  ;;  %3869 = vmatprep.subr.mxu0 %v11645_v43 }
 0x5db   :  { %3684 = vmatpush2.msra.mxu1 %v3561_v63  ;;  %3870 = vmatpush2.msra.mxu0 %v3561_v63 }
 0x5dc   :  { %3685 = vmatprep.subr.mxu1 %v11645_v43  ;;  %3871 = vmatprep.subr.mxu0 %v11645_v43 }
 0x5dd   :  { %3686 = vmatpush2.msra.mxu1 %v3560_v48  ;;  %3872 = vmatpush2.msra.mxu0 %v3560_v48 }
 0x5de   :  { %3687 = vmatprep.subr.mxu1 %v11645_v43  ;;  %3873 = vmatprep.subr.mxu0 %v11645_v43 }
 0x5df   :  { %3688 = vmatpush2.msra.mxu1 %v3559_v26  ;;  %3874 = vmatpush2.msra.mxu0 %v3559_v26 }
 0x5e0   :  { %3689 = vmatprep.subr.mxu1 %v11645_v43  ;;  %3875 = vmatprep.subr.mxu0 %v11645_v43 }
 0x5e1   :  { %3690 = vmatpush2.msra.mxu1 %v3558_v55  ;;  %3876 = vmatpush2.msra.mxu0 %v3558_v55 }
 0x5e2   :  { %3692 = vmatmul.mubr.f32.vlgmr.msra.gmra.mxu1 %v3566_v31  ;;  %3878 = vmatmul.mubr.f32.vlgmr.msra.gmra.mxu0 %v6992_v0 }
 0x5e3   :  { %6981 = vmatprep.mubr.msk.f32.mxu1 %vm3590_vm3, %v3569_v46  ;;  %7017 = vmatprep.mubr.msk.f32.mxu0 %vm3590_vm3, %v6995_v58 }
 0x5e4   :  { %8277 = vmatprep.subr.mxu0 %v7095_v15 }
 0x5e5   :  { %8278 = vmatpush3.msra.mxu0 %v7095_v15 }
 0x5e6   :  { %3697 = vmatmul.mubr.f32.gmra.mxu1 %v3568_v28  ;;  %3883 = vmatmul.mubr.f32.gmra.mxu0 %v6994_v54 }
 0x5e7   :  { %6982 = vmatprep.mubr.msk.f32.mxu1 %vm3590_vm3, %v3571_v27  ;;  %7018 = vmatprep.mubr.msk.f32.mxu0 %vm3590_vm3, %v6997_v23 }
 0x5e8   :  { %8279 = vmatprep.subr.mxu0 %v7094_v19 }
 0x5e9   :  { %8280 = vmatpush3.msra.mxu0 %v7094_v19 }
 0x5ea   :  { %3702 = vmatmul.mubr.f32.gmra.mxu1 %v3570_v34  ;;  %3888 = vmatmul.mubr.f32.gmra.mxu0 %v6996_v35 }
 0x5eb   :  { %6983 = vmatprep.mubr.msk.f32.mxu1 %vm3590_vm3, %v3573_v10  ;;  %7019 = vmatprep.mubr.msk.f32.mxu0 %vm3590_vm3, %v6999_v7 }
 0x5ec   :  { %8281 = vmatprep.subr.mxu0 %v7093_v14 }
 0x5ed   :  { %8282 = vmatpush3.msra.mxu0 %v7093_v14 }
 0x5ee   :  { %3707 = vmatmul.mubr.f32.gmra.mxu1 %v3572_v29  ;;  %3893 = vmatmul.mubr.f32.gmra.mxu0 %v6998_v56 }
 0x5ef   :  { %6984 = vmatprep.mubr.msk.f32.mxu1 %vm3590_vm3, %v3575_v38  ;;  %7020 = vmatprep.mubr.msk.f32.mxu0 %vm3590_vm3, %v7001_v21 }
 0x5f0   :  { %8283 = vmatprep.subr.mxu0 %v7092_v1 }
 0x5f1   :  { %8284 = vmatpush3.msra.mxu0 %v7092_v1 }
 0x5f2   :  { %3712 = vmatmul.mubr.f32.gmra.mxu1 %v3574_v59  ;;  %3898 = vmatmul.mubr.f32.gmra.mxu0 %v7000_v30 }
 0x5f3   :  { %6985 = vmatprep.mubr.msk.f32.mxu1 %vm3590_vm3, %v3577_v52  ;;  %7021 = vmatprep.mubr.msk.f32.mxu0 %vm3590_vm3, %v7003_v37 }
 0x5f4   :  { %8285 = vmatprep.subr.mxu0 %v7091_v39 }
 0x5f5   :  { %8286 = vmatpush3.msra.mxu0 %v7091_v39  ;;  %v3951_v39 = vld [vmem:[%s11622_s6 + $0x8] sm:$0xff] }
 0x5f6   :  { %3717 = vmatmul.mubr.f32.gmra.mxu1 %v3576_v44  ;;  %3903 = vmatmul.mubr.f32.gmra.mxu0 %v7002_v47 }
 0x5f7   :  { %6986 = vmatprep.mubr.msk.f32.mxu1 %vm3590_vm3, %v3579_v36  ;;  %7022 = vmatprep.mubr.msk.f32.mxu0 %vm3590_vm3, %v7005_v11 }
 0x5f8   :  { %8287 = vmatprep.subr.mxu0 %v7090_v22 }
 0x5f9   :  { %8288 = vmatpush3.msra.mxu0 %v7090_v22  ;;  %v3952_v22 = vld [vmem:[%s11622_s6 + $0x10] sm:$0xff] }
 0x5fa   :  { %3722 = vmatmul.mubr.f32.gmra.mxu1 %v3578_v60  ;;  %3908 = vmatmul.mubr.f32.gmra.mxu0 %v7004_v18 }
 0x5fb   :  { %6987 = vmatprep.mubr.msk.f32.mxu1 %vm3590_vm3, %v3581_v5  ;;  %7023 = vmatprep.mubr.msk.f32.mxu0 %vm3590_vm3, %v7007_v20 }
 0x5fe   :  { %3727 = vmatmul.mubr.f32.gmra.mxu1 %v3580_v3  ;;  %3913 = vmatmul.mubr.f32.gmra.mxu0 %v7006_v6 }
 0x5ff   :  { %6988 = vmatprep.mubr.msk.f32.mxu1 %vm3590_vm3, %v3583_v45  ;;  %7024 = vmatprep.mubr.msk.f32.mxu0 %vm3590_vm3, %v7009_v2 }
 0x602   :  { %3732 = vmatmul.mubr.f32.gmra.mxu1 %v3582_v42  ;;  %3918 = vmatmul.mubr.f32.gmra.mxu0 %v7008_v9 }
 0x603   :  { %6989 = vmatprep.mubr.msk.f32.mxu1 %vm3590_vm3, %v3585_v61  ;;  %7025 = vmatprep.mubr.msk.f32.mxu0 %vm3590_vm3, %v7011_v13 }
 0x606   :  { %3737 = vmatmul.mubr.f32.gmra.mxu1 %v3584_v25  ;;  %3923 = vmatmul.mubr.f32.gmra.mxu0 %v7010_v53 }
 0x607   :  { %6990 = vmatprep.mubr.msk.f32.mxu1 %vm3590_vm3, %v3587_v33  ;;  %7026 = vmatprep.mubr.msk.f32.mxu0 %vm3590_vm3, %v7013_v24 }
 0x60a   :  { %3742 = vmatmul.mubr.f32.gmra.mxu1 %v3586_v8  ;;  %3928 = vmatmul.mubr.f32.gmra.mxu0 %v7012_v57 }
 0x60b   :  { %6991 = vmatprep.mubr.msk.f32.mxu1 %vm3590_vm3, %v3589_v40  ;;  %7027 = vmatprep.mubr.msk.f32.mxu0 %vm3590_vm3, %v7015_v16 }
 0x60e   :  { %3747 = vmatmul.mubr.f32.gmra.mxu1 %v3588_v50  ;;  %3933 = vmatmul.mubr.f32.gmra.mxu0 %v7014_v51 }
 0x60f   :  { %8145 = vmatprep.mubr.msk.f32.mxu1 %vm140_vm0, %v3950_v49  ;;  %v3953_v49 = vld [vmem:[%s11622_s6 + $0x18] sm:$0xff] }
 0x6a2   :  { %v3693_v12 = vpop.f32.mrf.mxu1  ;;  %v3879_v32 = vpop.f32.mrf.mxu0 }
 0x6a3   :  { %v10608_v62 = vmax.f32 %v3693_v12, %v3879_v32  ;;  %v3954_v12 = vld [vmem:[%s11622_s6 + $0x20] sm:$0xff]  ;;  %v3955_v32 = vld [vmem:[%s11622_s6 + $0x28] sm:$0xff] }
 0x6a4   :  { %v3695_v17 = vpop.f32.mrf.mxu1  ;;  %v3881_v41 = vpop.f32.mrf.mxu0 }
 0x6a5   :  { %v3956_v17 = vld [vmem:[%s11622_s6 + $0x30] sm:$0xff]  ;;  %v3957_v41 = vld [vmem:[%s11622_s6 + $0x38] sm:$0xff] }
 0x6a6   :  { %v10610_v4 = vpop.f32.mrf.mxu1  ;;  %v10612_v63 = vpop.f32.mrf.mxu0 }
 0x6a7   :  { %v10661_v1 = vmax.f32 %v10610_v4, %v10612_v63  ;;  %v7036_v4 = vld [vmem:[%s11622_s6 + $0x40] sm:$0xff]  ;;  %v7037_v63 = vld [vmem:[%s11622_s6 + $0x48] sm:$0xff] }
 0x6a8   :  { %v3700_v48 = vpop.f32.mrf.mxu1  ;;  %v3886_v26 = vpop.f32.mrf.mxu0 }
 0x6a9   :  { %v7038_v48 = vld [vmem:[%s11622_s6 + $0x50] sm:$0xff]  ;;  %v7039_v26 = vld [vmem:[%s11622_s6 + $0x58] sm:$0xff] }
 0x6aa   :  { %v10614_v55 = vpop.f32.mrf.mxu1  ;;  %v10616_v31 = vpop.f32.mrf.mxu0 }
 0x6ab   :  { %v10655_v14 = vmax.f32 %v10614_v55, %v10616_v31  ;;  %v7040_v55 = vld [vmem:[%s11622_s6 + $0x60] sm:$0xff]  ;;  %v7041_v31 = vld [vmem:[%s11622_s6 + $0x68] sm:$0xff] }
 0x6ac   :  { %v3705_v0 = vpop.f32.mrf.mxu1  ;;  %v3891_v46 = vpop.f32.mrf.mxu0 }
 0x6ad   :  { %v7042_v0 = vld [vmem:[%s11622_s6 + $0x70] sm:$0xff]  ;;  %v7043_v46 = vld [vmem:[%s11622_s6 + $0x78] sm:$0xff] }
 0x6ae   :  { %v3708_v58 = vpop.f32.mrf.mxu1  ;;  %v3894_v28 = vpop.f32.mrf.mxu0 }
 0x6af   :  { %v10649_v19 = vmax.f32 %v3708_v58, %v3894_v28  ;;  %v7057_v58 = vld [vmem:[%s11623_s7 + $0x58] sm:$0xff]  ;;  %v7056_v28 = vld [vmem:[%s11623_s7 + $0x50] sm:$0xff] }
 0x6b0   :  { %v3710_v54 = vpop.f32.mrf.mxu1  ;;  %v3896_v27 = vpop.f32.mrf.mxu0 }
 0x6b1   :  { %v7055_v54 = vld [vmem:[%s11623_s7 + $0x48] sm:$0xff]  ;;  %v7054_v27 = vld [vmem:[%s11623_s7 + $0x40] sm:$0xff] }
 0x6b2   :  { %v3713_v23 = vpop.f32.mrf.mxu1  ;;  %v3899_v34 = vpop.f32.mrf.mxu0 }
 0x6b3   :  { %v10645_v15 = vmax.f32 %v3713_v23, %v3899_v34  ;;  %v7053_v23 = vld [vmem:[%s11623_s7 + $0x38] sm:$0xff]  ;;  %v7052_v34 = vld [vmem:[%s11623_s7 + $0x30] sm:$0xff] }
 0x6b4   :  { %v3715_v35 = vpop.f32.mrf.mxu1  ;;  %v3901_v10 = vpop.f32.mrf.mxu0 }
 0x6b5   :  { %v4092_v35 = vld [vmem:[%s11623_s7 + $0x28] sm:$0xff] }
 0x6b6   :  { %v3718_v7 = vpop.f32.mrf.mxu1  ;;  %v3904_v29 = vpop.f32.mrf.mxu0 }
 0x6b7   :  { %v10641_v51 = vmax.f32 %v3718_v7, %v3904_v29 }
 0x6b8   :  { %v3720_v56 = vpop.f32.mrf.mxu1  ;;  %v3906_v38 = vpop.f32.mrf.mxu0 }
 0x6ba   :  { %v3723_v21 = vpop.f32.mrf.mxu1  ;;  %v3909_v59 = vpop.f32.mrf.mxu0 }
 0x6bb   :  { %v10637_v50 = vmax.f32 %v3723_v21, %v3909_v59 }
 0x6bc   :  { %v3725_v30 = vpop.f32.mrf.mxu1  ;;  %v3911_v52 = vpop.f32.mrf.mxu0 }
 0x6be   :  { %v3728_v37 = vpop.f32.mrf.mxu1  ;;  %v3914_v44 = vpop.f32.mrf.mxu0 }
 0x6bf   :  { %v10633_v16 = vmax.f32 %v3728_v37, %v3914_v44  ;;  %v4091_v44 = vld [vmem:[%s11623_s7 + $0x20] sm:$0xff] }
 0x6c0   :  { %v3730_v47 = vpop.f32.mrf.mxu1  ;;  %v3916_v36 = vpop.f32.mrf.mxu0 }
 0x6c1   :  { %v4090_v36 = vld [vmem:[%s11623_s7 + $0x18] sm:$0xff] }
 0x6c2   :  { %v3733_v11 = vpop.f32.mrf.mxu1  ;;  %v3919_v60 = vpop.f32.mrf.mxu0 }
 0x6c3   :  { %v10629_v40 = vmax.f32 %v3733_v11, %v3919_v60  ;;  %v4089_v60 = vld [vmem:[%s11623_s7 + $0x10] sm:$0xff] }
 0x6c4   :  { %v3735_v18 = vpop.f32.mrf.mxu1  ;;  %v3921_v5 = vpop.f32.mrf.mxu0 }
 0x6c5   :  { %v4088_v5 = vld [vmem:[%s11623_s7 + $0x8] sm:$0xff] }
 0x6c6   :  { %v3738_v20 = vpop.f32.mrf.mxu1  ;;  %v3924_v3 = vpop.f32.mrf.mxu0 }
 0x6c7   :  { %v10625_v57 = vmax.f32 %v3738_v20, %v3924_v3  ;;  %v4087_v3 = vld [vmem:[%s11623_s7] sm:$0xff] }
 0x6c8   :  { %v3740_v6 = vpop.f32.mrf.mxu1  ;;  %v3926_v45 = vpop.f32.mrf.mxu0 }
 0x6ca   :  { %v3743_v2 = vpop.f32.mrf.mxu1  ;;  %v3929_v42 = vpop.f32.mrf.mxu0 }
 0x6cb   :  { %v10620_v8 = vmax.f32 %v3743_v2, %v3929_v42  ;;  %v7074_v2 = vld [vmem:[%s11622_s6 + $0x80] sm:$0xff]  ;;  %v7075_v42 = vld [vmem:[%s11622_s6 + $0x88] sm:$0xff] }
 0x6cc   :  { %v3745_v9 = vpop.f32.mrf.mxu1  ;;  %v3931_v61 = vpop.f32.mrf.mxu0 }
 0x6cd   :  { %v7125_v9 = vld [vmem:[%s11623_s7 + $0xb8] sm:$0xff]  ;;  %v7076_v61 = vld [vmem:[%s11622_s6 + $0x90] sm:$0xff] }
 0x6ce   :  { %v3748_v13 = vpop.f32.mrf.mxu1  ;;  %v3934_v25 = vpop.f32.mrf.mxu0 }
 0x6cf   :  { %v10618_v53 = vmax.f32 %v3748_v13, %v3934_v25  ;;  %v7124_v13 = vld [vmem:[%s11623_s7 + $0xb0] sm:$0xff]  ;;  %v7077_v25 = vld [vmem:[%s11622_s6 + $0x98] sm:$0xff] }
 0x6d0   :  { %v3750_v33 = vpop.f32.mrf.mxu1  ;;  %v3936_v24 = vpop.f32.mrf.mxu0 }
 0x6d1   :  { %8121 = vmatprep.subr.mxu1 %v10618_v53  ;;  %8301 = vmatprep.subr.mxu0 %v10618_v53  ;;  %v7123_v33 = vld [vmem:[%s11623_s7 + $0xa8] sm:$0xff]  ;;  %v7078_v24 = vld [vmem:[%s11622_s6 + $0xa0] sm:$0xff] }
 0x6d2   :  { %8122 = vmatpush3.msra.mxu1 %v10618_v53 }
 0x6d3   :  { %8123 = vmatprep.subr.mxu1 %v10620_v8 }
 0x6d4   :  { %8124 = vmatpush3.msra.mxu1 %v10620_v8 }
 0x6d5   :  { %8125 = vmatprep.subr.mxu1 %v10625_v57 }
 0x6d6   :  { %8126 = vmatpush3.msra.mxu1 %v10625_v57 }
 0x6d7   :  { %8127 = vmatprep.subr.mxu1 %v10629_v40 }
 0x6d8   :  { %8128 = vmatpush3.msra.mxu1 %v10629_v40 }
 0x6d9   :  { %8129 = vmatprep.subr.mxu1 %v10633_v16 }
 0x6da   :  { %8130 = vmatpush3.msra.mxu1 %v10633_v16 }
 0x6db   :  { %8131 = vmatprep.subr.mxu1 %v10637_v50 }
 0x6dc   :  { %8132 = vmatpush3.msra.mxu1 %v10637_v50 }
 0x6dd   :  { %8133 = vmatprep.subr.mxu1 %v10641_v51 }
 0x6de   :  { %8134 = vmatpush3.msra.mxu1 %v10641_v51 }
 0x6df   :  { %8135 = vmatprep.subr.mxu1 %v10645_v15 }
 0x6e0   :  { %8136 = vmatpush3.msra.mxu1 %v10645_v15 }
 0x6e1   :  { %8137 = vmatprep.subr.mxu1 %v10649_v19 }
 0x6e2   :  { %8138 = vmatpush3.msra.mxu1 %v10649_v19 }
 0x6e3   :  { %8139 = vmatprep.subr.mxu1 %v10655_v14 }
 0x6e4   :  { %8140 = vmatpush3.msra.mxu1 %v10655_v14 }
 0x6e5   :  { %8141 = vmatprep.subr.mxu1 %v10661_v1 }
 0x6e6   :  { %8142 = vmatpush3.msra.mxu1 %v10661_v1 }
 0x6e7   :  { %8143 = vmatprep.subr.mxu1 %v10608_v62 }
 0x6e8   :  { %8144 = vmatpush3.msra.mxu1 %v10608_v62 }
 0x6e9   :  { %8157 = vmatprep.subr.mxu1 %v10618_v53  ;;  %8146 = vmatmul.mubr.msk.f32.vlgmr.msra.gmra.mxu1 %vm140_vm0, %v3951_v39  ;;  %v7122_v39 = vld [vmem:[%s11623_s7 + $0xa0] sm:$0xff] }
 0x6ea   :  { %8158 = vmatpush3.msra.mxu1 %v10618_v53  ;;  %8148 = vmatprep.mubr.msk.f32.mxu1 %vm140_vm0, %v3952_v22  ;;  %v7079_v22 = vld [vmem:[%s11622_s6 + $0xa8] sm:$0xff] }
 0x6eb   :  { %8159 = vmatprep.subr.mxu1 %v10620_v8 }
 0x6ec   :  { %8160 = vmatpush3.msra.mxu1 %v10620_v8 }
 0x6ed   :  { %8161 = vmatprep.subr.mxu1 %v10625_v57  ;;  %8149 = vmatmul.mubr.msk.f32.gmra.mxu1 %vm140_vm0, %v3953_v49  ;;  %v7121_v49 = vld [vmem:[%s11623_s7 + $0x98] sm:$0xff] }
 0x6ee   :  { %8162 = vmatpush3.msra.mxu1 %v10625_v57  ;;  %8151 = vmatprep.mubr.msk.f32.mxu1 %vm140_vm0, %v3954_v12  ;;  %v7080_v12 = vld [vmem:[%s11622_s6 + $0xb0] sm:$0xff] }
 0x6ef   :  { %8163 = vmatprep.subr.mxu1 %v10629_v40 }
 0x6f0   :  { %8164 = vmatpush3.msra.mxu1 %v10629_v40 }
 0x6f1   :  { %8165 = vmatprep.subr.mxu1 %v10633_v16  ;;  %8152 = vmatmul.mubr.msk.f32.gmra.mxu1 %vm140_vm0, %v3955_v32  ;;  %v7120_v32 = vld [vmem:[%s11623_s7 + $0x90] sm:$0xff] }
 0x6f2   :  { %8166 = vmatpush3.msra.mxu1 %v10633_v16  ;;  %8154 = vmatprep.mubr.msk.f32.mxu1 %vm140_vm0, %v3956_v17  ;;  %v7081_v17 = vld [vmem:[%s11622_s6 + $0xb8] sm:$0xff] }
 0x6f3   :  { %8167 = vmatprep.subr.mxu1 %v10637_v50 }
 0x6f4   :  { %8168 = vmatpush3.msra.mxu1 %v10637_v50 }
 0x6f5   :  { %8169 = vmatprep.subr.mxu1 %v10641_v51  ;;  %8155 = vmatmul.mubr.msk.f32.gmra.mxu1 %vm140_vm0, %v3957_v41 }
 0x6f6   :  { %8170 = vmatpush3.msra.mxu1 %v10641_v51  ;;  %8181 = vmatprep.mubr.msk.f32.mxu1 %vm140_vm0, %v7036_v4 }
 0x6f7   :  { %8171 = vmatprep.subr.mxu1 %v10645_v15 }
 0x6f8   :  { %8172 = vmatpush3.msra.mxu1 %v10645_v15 }
 0x6f9   :  { %8173 = vmatprep.subr.mxu1 %v10649_v19 }
 0x6fa   :  { %8174 = vmatpush3.msra.mxu1 %v10649_v19 }
 0x6fb   :  { %8175 = vmatprep.subr.mxu1 %v10655_v14 }
 0x6fc   :  { %8176 = vmatpush3.msra.mxu1 %v10655_v14 }
 0x6fd   :  { %8177 = vmatprep.subr.mxu1 %v10661_v1 }
 0x6fe   :  { %8178 = vmatpush3.msra.mxu1 %v10661_v1 }
 0x6ff   :  { %8179 = vmatprep.subr.mxu1 %v10608_v62 }
 0x700   :  { %8180 = vmatpush3.msra.mxu1 %v10608_v62 }
 0x701   :  { %8182 = vmatmul.mubr.msk.f32.vlgmr.msra.gmra.mxu1 %vm140_vm0, %v7037_v63  ;;  %8193 = vmatprep.subr.mxu1 %v7057_v58 }
 0x702   :  { %8184 = vmatprep.mubr.msk.f32.mxu1 %vm140_vm0, %v7038_v48  ;;  %8194 = vmatpush3.msra.mxu1 %v7057_v58 }
 0x703   :  { %8195 = vmatprep.subr.mxu1 %v7056_v28 }
 0x704   :  { %8196 = vmatpush3.msra.mxu1 %v7056_v28 }
 0x705   :  { %8185 = vmatmul.mubr.msk.f32.gmra.mxu1 %vm140_vm0, %v7039_v26  ;;  %8197 = vmatprep.subr.mxu1 %v7055_v54 }
 0x706   :  { %8187 = vmatprep.mubr.msk.f32.mxu1 %vm140_vm0, %v7040_v55  ;;  %8198 = vmatpush3.msra.mxu1 %v7055_v54 }
 0x707   :  { %8199 = vmatprep.subr.mxu1 %v7054_v27 }
 0x708   :  { %8200 = vmatpush3.msra.mxu1 %v7054_v27 }
 0x709   :  { %8188 = vmatmul.mubr.msk.f32.gmra.mxu1 %vm140_vm0, %v7041_v31  ;;  %8201 = vmatprep.subr.mxu1 %v7053_v23 }
 0x70a   :  { %8190 = vmatprep.mubr.msk.f32.mxu1 %vm140_vm0, %v7042_v0  ;;  %8202 = vmatpush3.msra.mxu1 %v7053_v23 }
 0x70b   :  { %8203 = vmatprep.subr.mxu1 %v7052_v34 }
 0x70c   :  { %8204 = vmatpush3.msra.mxu1 %v7052_v34 }
 0x70d   :  { %8191 = vmatmul.mubr.msk.f32.gmra.mxu1 %vm140_vm0, %v7043_v46  ;;  %8217 = vmatprep.subr.mxu1 %v4092_v35 }
 0x7a9   :  { %v8147_v10 = vpop.f32.mrf.mxu1 }
 0x7ab   :  { %v4048_v7 = vpop.f32.mrf.mxu1 }
 0x7ad   :  { %v8150_v29 = vpop.f32.mrf.mxu1 }
 0x7af   :  { %v4058_v56 = vpop.f32.mrf.mxu1 }
 0x7b1   :  { %v8153_v38 = vpop.f32.mrf.mxu1 }
 0x7b3   :  { %v4068_v21 = vpop.f32.mrf.mxu1 }
 0x7b5   :  { %v8156_v59 = vpop.f32.mrf.mxu1 }
 0x7b7   :  { %v4078_v30 = vpop.f32.mrf.mxu1 }
 0x7c1   :  { %v8183_v52 = vpop.f32.mrf.mxu1 }
 0x7c3   :  { %v4192_v37 = vpop.f32.mrf.mxu1 }
 0x7c4   :  { %8205 = vmatprep.mubr.msk.f32.mxu1 %vm4238_vm4, %v4192_v37 }
 0x7c5   :  { %v8186_v47 = vpop.f32.mrf.mxu1  ;;  %8206 = vmatmul.mubr.msk.f32.vlgmr.msra.gmra.mxu1 %vm4238_vm4, %v8183_v52 }
 0x7c6   :  { %8218 = vmatpush3.msra.mxu1 %v4092_v35 }
 0x7c7   :  { %8219 = vmatprep.subr.mxu1 %v4091_v44  ;;  %v4202_v11 = vpop.f32.mrf.mxu1 }
 0x7c8   :  { %8220 = vmatpush3.msra.mxu1 %v4091_v44  ;;  %8208 = vmatprep.mubr.msk.f32.mxu1 %vm4238_vm4, %v4202_v11 }
 0x7c9   :  { %8221 = vmatprep.subr.mxu1 %v4090_v36  ;;  %v8189_v18 = vpop.f32.mrf.mxu1  ;;  %8209 = vmatmul.mubr.msk.f32.gmra.mxu1 %vm4238_vm4, %v8186_v47 }
 0x7ca   :  { %8222 = vmatpush3.msra.mxu1 %v4090_v36 }
 0x7cb   :  { %8223 = vmatprep.subr.mxu1 %v4089_v60  ;;  %v4212_v20 = vpop.f32.mrf.mxu1 }
 0x7cc   :  { %8224 = vmatpush3.msra.mxu1 %v4089_v60  ;;  %8211 = vmatprep.mubr.msk.f32.mxu1 %vm4238_vm4, %v4212_v20  ;;  %v7105_v20 = vld [vmem:[%s11622_s6 + $0xc8] sm:$0xff] }
 0x7cd   :  { %8225 = vmatprep.subr.mxu1 %v4088_v5  ;;  %v8192_v6 = vpop.f32.mrf.mxu1  ;;  %8212 = vmatmul.mubr.msk.f32.gmra.mxu1 %vm4238_vm4, %v8189_v18 }
 0x7ce   :  { %8226 = vmatpush3.msra.mxu1 %v4088_v5  ;;  %v7104_v5 = vld [vmem:[%s11622_s6 + $0xc0] sm:$0xff] }
 0x7cf   :  { %8227 = vmatprep.subr.mxu1 %v4087_v3  ;;  %v4222_v45 = vpop.f32.mrf.mxu1 }
 0x7d0   :  { %8228 = vmatpush3.msra.mxu1 %v4087_v3  ;;  %8214 = vmatprep.mubr.msk.f32.mxu1 %vm4238_vm4, %v4222_v45  ;;  %v7106_v3 = vld [vmem:[%s11622_s6 + $0xd0] sm:$0xff]  ;;  %v7108_v45 = vld [vmem:[%s11622_s6 + $0xe0] sm:$0xff] }
 0x7d1   :  { %8241 = vmatprep.subr.mxu1 %v10618_v53  ;;  %8215 = vmatmul.mubr.msk.f32.gmra.mxu1 %vm4238_vm4, %v8192_v6  ;;  %v7107_v6 = vld [vmem:[%s11622_s6 + $0xd8] sm:$0xff] }
 0x7d2   :  { %8229 = vmatprep.mubr.msk.f32.mxu1 %vm4238_vm4, %v4048_v7 }
 0x7d5   :  { %8230 = vmatmul.mubr.msk.f32.vlgmr.msra.gmra.mxu1 %vm4238_vm4, %v8147_v10 }
 0x7d6   :  { %8242 = vmatpush3.msra.mxu1 %v10618_v53  ;;  %8232 = vmatprep.mubr.msk.f32.mxu1 %vm4238_vm4, %v4058_v56 }
 0x7d7   :  { %8243 = vmatprep.subr.mxu1 %v10620_v8 }
 0x7d8   :  { %8244 = vmatpush3.msra.mxu1 %v10620_v8 }
 0x7d9   :  { %8245 = vmatprep.subr.mxu1 %v10625_v57  ;;  %8233 = vmatmul.mubr.msk.f32.gmra.mxu1 %vm4238_vm4, %v8150_v29 }
 0x7da   :  { %8246 = vmatpush3.msra.mxu1 %v10625_v57  ;;  %8235 = vmatprep.mubr.msk.f32.mxu1 %vm4238_vm4, %v4068_v21 }
 0x7db   :  { %8247 = vmatprep.subr.mxu1 %v10629_v40 }
 0x7dc   :  { %8248 = vmatpush3.msra.mxu1 %v10629_v40 }
 0x7dd   :  { %8249 = vmatprep.subr.mxu1 %v10633_v16  ;;  %8236 = vmatmul.mubr.msk.f32.gmra.mxu1 %vm4238_vm4, %v8153_v38 }
 0x7de   :  { %8250 = vmatpush3.msra.mxu1 %v10633_v16  ;;  %8238 = vmatprep.mubr.msk.f32.mxu1 %vm4238_vm4, %v4078_v30 }
 0x7df   :  { %8251 = vmatprep.subr.mxu1 %v10637_v50 }
 0x7e0   :  { %8252 = vmatpush3.msra.mxu1 %v10637_v50 }
 0x7e1   :  { %8253 = vmatprep.subr.mxu1 %v10641_v51  ;;  %8239 = vmatmul.mubr.msk.f32.gmra.mxu1 %vm4238_vm4, %v8156_v59 }
 0x7e2   :  { %8254 = vmatpush3.msra.mxu1 %v10641_v51  ;;  %8265 = vmatprep.mubr.msk.f32.mxu1 %vm140_vm0, %v7074_v2  ;;  %v7109_v2 = vld [vmem:[%s11622_s6 + $0xe8] sm:$0xff] }
 0x7e3   :  { %8255 = vmatprep.subr.mxu1 %v10645_v15 }
 0x7e4   :  { %8256 = vmatpush3.msra.mxu1 %v10645_v15 }
 0x7e5   :  { %8257 = vmatprep.subr.mxu1 %v10649_v19 }
 0x7e6   :  { %8258 = vmatpush3.msra.mxu1 %v10649_v19 }
 0x7e7   :  { %8259 = vmatprep.subr.mxu1 %v10655_v14 }
 0x7e8   :  { %8260 = vmatpush3.msra.mxu1 %v10655_v14 }
 0x7e9   :  { %8261 = vmatprep.subr.mxu1 %v10661_v1 }
 0x7ea   :  { %8262 = vmatpush3.msra.mxu1 %v10661_v1 }
 0x7eb   :  { %8263 = vmatprep.subr.mxu1 %v10608_v62 }
 0x7ec   :  { %8264 = vmatpush3.msra.mxu1 %v10608_v62 }
 0x7ed   :  { %8266 = vmatmul.mubr.msk.f32.vlgmr.msra.gmra.mxu1 %vm140_vm0, %v7075_v42  ;;  %8337 = vmatprep.subr.mxu1 %v7125_v9  ;;  %v7110_v42 = vld [vmem:[%s11622_s6 + $0xf0] sm:$0xff] }
 0x7ee   :  { %8338 = vmatpush3.msra.mxu1 %v7125_v9  ;;  %8268 = vmatprep.mubr.msk.f32.mxu1 %vm140_vm0, %v7076_v61  ;;  %v7111_v9 = vld [vmem:[%s11622_s6 + $0xf8] sm:$0xff] }
 0x7ef   :  { %8339 = vmatprep.subr.mxu1 %v7124_v13 }
 0x7f0   :  { %8340 = vmatpush3.msra.mxu1 %v7124_v13 }
 0x7f1   :  { %8269 = vmatmul.mubr.msk.f32.gmra.mxu1 %vm140_vm0, %v7077_v25  ;;  %8341 = vmatprep.subr.mxu1 %v7123_v33 }
 0x7f2   :  { %8342 = vmatpush3.msra.mxu1 %v7123_v33  ;;  %8271 = vmatprep.mubr.msk.f32.mxu1 %vm140_vm0, %v7078_v24 }
 0x7f3   :  { %8343 = vmatprep.subr.mxu1 %v7122_v39 }
 0x7f4   :  { %8344 = vmatpush3.msra.mxu1 %v7122_v39 }
 0x7f5   :  { %8272 = vmatmul.mubr.msk.f32.gmra.mxu1 %vm140_vm0, %v7079_v22  ;;  %8345 = vmatprep.subr.mxu1 %v7121_v49 }
 0x7f6   :  { %8346 = vmatpush3.msra.mxu1 %v7121_v49  ;;  %8274 = vmatprep.mubr.msk.f32.mxu1 %vm140_vm0, %v7080_v12 }
 0x7f7   :  { %8347 = vmatprep.subr.mxu1 %v7120_v32 }
 0x7f8   :  { %8348 = vmatpush3.msra.mxu1 %v7120_v32 }
 0x7f9   :  { %8275 = vmatmul.mubr.msk.f32.gmra.mxu1 %vm140_vm0, %v7081_v17  ;;  %8361 = vmatprep.subr.mxu1 %v10618_v53 }
 0x885   :  { %v8207_v41 = vpop.f32.mrf.mxu1 }
 0x887   :  { %v4329_v4 = vpop.f32.mrf.mxu1 }
 0x889   :  { %v8210_v63 = vpop.f32.mrf.mxu1 }
 0x88b   :  { %v4339_v48 = vpop.f32.mrf.mxu1 }
 0x88d   :  { %v8213_v26 = vpop.f32.mrf.mxu1 }
 0x88f   :  { %v4349_v55 = vpop.f32.mrf.mxu1 }
 0x891   :  { %v8216_v31 = vpop.f32.mrf.mxu1 }
 0x893   :  { %v4359_v0 = vpop.f32.mrf.mxu1 }
 0x895   :  { %v8231_v46 = vpop.f32.mrf.mxu1 }
 0x896   :  { %v10880_v58 = vadd.f32 %v8231_v46, %v8207_v41 }
 0x897   :  { %v4458_v28 = vpop.f32.mrf.mxu1 }
 0x898   :  { %v10882_v54 = vadd.f32 %v4458_v28, %v4329_v4 }
 0x899   :  { %v8234_v27 = vpop.f32.mrf.mxu1 }
 0x89a   :  { %v10884_v23 = vadd.f32 %v8234_v27, %v8210_v63  ;;  %v7152_v27 = vld [vmem:[%s11623_s7 + $0xd0] sm:$0xff] }
 0x89b   :  { %v4468_v34 = vpop.f32.mrf.mxu1 }
 0x89c   :  { %v10886_v35 = vadd.f32 %v4468_v34, %v4339_v48  ;;  %v7150_v34 = vld [vmem:[%s11623_s7 + $0xc0] sm:$0xff] }
 0x89d   :  { %v8237_v10 = vpop.f32.mrf.mxu1 }
 0x89e   :  { %v10888_v7 = vadd.f32 %v8237_v10, %v8213_v26  ;;  %v7180_v10 = vld [vmem:[%s11625_s9 + $0xf8] sm:$0xff] }
 0x89f   :  { %v4478_v29 = vpop.f32.mrf.mxu1 }
 0x8a0   :  { %v10890_v56 = vadd.f32 %v4478_v29, %v4349_v55  ;;  %v7178_v29 = vld [vmem:[%s11625_s9 + $0xe8] sm:$0xff] }
 0x8a1   :  { %v8240_v38 = vpop.f32.mrf.mxu1 }
 0x8a2   :  { %v10892_v21 = vadd.f32 %v8240_v38, %v8216_v31  ;;  %v7176_v38 = vld [vmem:[%s11625_s9 + $0xd8] sm:$0xff] }
 0x8a3   :  { %v4488_v59 = vpop.f32.mrf.mxu1 }
 0x8a4   :  { %v10894_v30 = vadd.f32 %v4488_v59, %v4359_v0  ;;  %v7174_v59 = vld [vmem:[%s11625_s9 + $0xc8] sm:$0xff] }
 0x8ad   :  { %v8267_v52 = vpop.f32.mrf.mxu1 }
 0x8af   :  { %v4596_v37 = vpop.f32.mrf.mxu1 }
 0x8b0   :  { %8289 = vmatprep.mubr.msk.f32.mxu0 %vm4238_vm4, %v4596_v37  ;;  %v7171_v37 = vld [vmem:[%s11625_s9 + $0xb0] sm:$0xff] }
 0x8b1   :  { %v8270_v44 = vpop.f32.mrf.mxu1  ;;  %8290 = vmatmul.mubr.msk.f32.vlgmr.msra.gmra.mxu0 %vm4238_vm4, %v8267_v52  ;;  %v7172_v52 = vld [vmem:[%s11625_s9 + $0xb8] sm:$0xff] }
 0x8b2   :  { %8302 = vmatpush3.msra.mxu0 %v10618_v53 }
 0x8b3   :  { %8303 = vmatprep.subr.mxu0 %v10620_v8  ;;  %v4606_v47 = vpop.f32.mrf.mxu1 }
 0x8b4   :  { %8304 = vmatpush3.msra.mxu0 %v10620_v8  ;;  %8292 = vmatprep.mubr.msk.f32.mxu0 %vm4238_vm4, %v4606_v47 }
 0x8b5   :  { %8305 = vmatprep.subr.mxu0 %v10625_v57  ;;  %v8273_v36 = vpop.f32.mrf.mxu1  ;;  %8293 = vmatmul.mubr.msk.f32.gmra.mxu0 %vm4238_vm4, %v8270_v44  ;;  %v7170_v44 = vld [vmem:[%s11625_s9 + $0xa8] sm:$0xff] }
 0x8b6   :  { %8306 = vmatpush3.msra.mxu0 %v10625_v57 }
 0x8b7   :  { %8307 = vmatprep.subr.mxu0 %v10629_v40  ;;  %v4616_v11 = vpop.f32.mrf.mxu1 }
 0x8b8   :  { %8308 = vmatpush3.msra.mxu0 %v10629_v40  ;;  %8295 = vmatprep.mubr.msk.f32.mxu0 %vm4238_vm4, %v4616_v11 }
 0x8b9   :  { %8309 = vmatprep.subr.mxu0 %v10633_v16  ;;  %v8276_v60 = vpop.f32.mrf.mxu1  ;;  %8296 = vmatmul.mubr.msk.f32.gmra.mxu0 %vm4238_vm4, %v8273_v36 }
 0x8ba   :  { %8310 = vmatpush3.msra.mxu0 %v10633_v16 }
 0x8bb   :  { %8311 = vmatprep.subr.mxu0 %v10637_v50  ;;  %v4626_v18 = vpop.f32.mrf.mxu1 }
 0x8bc   :  { %8312 = vmatpush3.msra.mxu0 %v10637_v50  ;;  %8298 = vmatprep.mubr.msk.f32.mxu0 %vm4238_vm4, %v4626_v18 }
 0x8bd   :  { %8313 = vmatprep.subr.mxu0 %v10641_v51  ;;  %8299 = vmatmul.mubr.msk.f32.gmra.mxu0 %vm4238_vm4, %v8276_v60 }
 0x8be   :  { %8314 = vmatpush3.msra.mxu0 %v10641_v51  ;;  %8325 = vmatprep.mubr.msk.f32.mxu0 %vm140_vm0, %v7104_v5 }
 0x8bf   :  { %8315 = vmatprep.subr.mxu0 %v10645_v15 }
 0x8c0   :  { %8316 = vmatpush3.msra.mxu0 %v10645_v15 }
 0x8c1   :  { %8317 = vmatprep.subr.mxu0 %v10649_v19 }
 0x8c2   :  { %8318 = vmatpush3.msra.mxu0 %v10649_v19 }
 0x8c3   :  { %8319 = vmatprep.subr.mxu0 %v10655_v14 }
 0x8c4   :  { %8320 = vmatpush3.msra.mxu0 %v10655_v14 }
 0x8c5   :  { %8321 = vmatprep.subr.mxu0 %v10661_v1 }
 0x8c6   :  { %8322 = vmatpush3.msra.mxu0 %v10661_v1 }
 0x8c7   :  { %8323 = vmatprep.subr.mxu0 %v10608_v62 }
 0x8c8   :  { %8324 = vmatpush3.msra.mxu0 %v10608_v62 }
 0x8c9   :  { %8326 = vmatmul.mubr.msk.f32.vlgmr.msra.gmra.mxu0 %vm140_vm0, %v7105_v20 }
 0x8ca   :  { %8328 = vmatprep.mubr.msk.f32.mxu0 %vm140_vm0, %v7106_v3 }
 0x8cd   :  { %8329 = vmatmul.mubr.msk.f32.gmra.mxu0 %vm140_vm0, %v7107_v6 }
 0x8ce   :  { %8331 = vmatprep.mubr.msk.f32.mxu0 %vm140_vm0, %v7108_v45 }
 0x8d1   :  { %8332 = vmatmul.mubr.msk.f32.gmra.mxu0 %vm140_vm0, %v7109_v2 }
 0x8d2   :  { %8334 = vmatprep.mubr.msk.f32.mxu0 %vm140_vm0, %v7110_v42 }
 0x8d5   :  { %8335 = vmatmul.mubr.msk.f32.gmra.mxu0 %vm140_vm0, %v7111_v9 }
 0x971   :  { %v8291_v61 = vpop.f32.mrf.mxu0 }
 0x972   :  { %v10960_v13 = vadd.f32 %v8291_v61, %v10880_v58 }
 0x973   :  { %v4732_v25 = vpop.f32.mrf.mxu0 }
 0x974   :  { %v10963_v33 = vadd.f32 %v4732_v25, %v10882_v54  ;;  %v7153_v54 = vld [vmem:[%s11623_s7 + $0xd8] sm:$0xff] }
 0x975   :  { %v8294_v24 = vpop.f32.mrf.mxu0 }
 0x976   :  { %v10966_v39 = vadd.f32 %v8294_v24, %v10884_v23  ;;  %v7151_v23 = vld [vmem:[%s11623_s7 + $0xc8] sm:$0xff] }
 0x977   :  { %v4742_v22 = vpop.f32.mrf.mxu0 }
 0x978   :  { %v10969_v49 = vadd.f32 %v4742_v22, %v10886_v35  ;;  %v5381_v35 = vld [vmem:[%s11625_s9 + $0x78] sm:$0xff] }
 0x979   :  { %v8297_v12 = vpop.f32.mrf.mxu0 }
 0x97a   :  { %v10972_v32 = vadd.f32 %v8297_v12, %v10888_v7  ;;  %v7179_v7 = vld [vmem:[%s11625_s9 + $0xf0] sm:$0xff] }
 0x97b   :  { %v4752_v17 = vpop.f32.mrf.mxu0 }
 0x97c   :  { %v10975_v41 = vadd.f32 %v4752_v17, %v10890_v56  ;;  %v7177_v56 = vld [vmem:[%s11625_s9 + $0xe0] sm:$0xff] }
 0x97d   :  { %v8300_v4 = vpop.f32.mrf.mxu0 }
 0x97e   :  { %v10978_v63 = vadd.f32 %v8300_v4, %v10892_v21  ;;  %v7175_v21 = vld [vmem:[%s11625_s9 + $0xd0] sm:$0xff] }
 0x97f   :  { %v4762_v48 = vpop.f32.mrf.mxu0 }
 0x980   :  { %v10981_v26 = vadd.f32 %v4762_v48, %v10894_v30  ;;  %v7173_v30 = vld [vmem:[%s11625_s9 + $0xc0] sm:$0xff] }
 0x989   :  { %v8327_v55 = vpop.f32.mrf.mxu0 }
 0x98b   :  { %v4878_v31 = vpop.f32.mrf.mxu0 }
 0x98c   :  { %8349 = vmatprep.mubr.msk.f32.mxu1 %vm4238_vm4, %v4878_v31  ;;  %v5374_v31 = vld [vmem:[%s11625_s9 + $0x40] sm:$0xff] }
 0x98d   :  { %v8330_v0 = vpop.f32.mrf.mxu0  ;;  %8350 = vmatmul.mubr.msk.f32.vlgmr.msra.gmra.mxu1 %vm4238_vm4, %v8327_v55 }
 0x98e   :  { %8362 = vmatpush3.msra.mxu1 %v10618_v53 }
 0x98f   :  { %8363 = vmatprep.subr.mxu1 %v10620_v8  ;;  %v4888_v46 = vpop.f32.mrf.mxu0 }
 0x990   :  { %8364 = vmatpush3.msra.mxu1 %v10620_v8  ;;  %8352 = vmatprep.mubr.msk.f32.mxu1 %vm4238_vm4, %v4888_v46  ;;  %v5372_v46 = vld [vmem:[%s11625_s9 + $0x30] sm:$0xff] }
 0x991   :  { %8365 = vmatprep.subr.mxu1 %v10625_v57  ;;  %v8333_v58 = vpop.f32.mrf.mxu0  ;;  %8353 = vmatmul.mubr.msk.f32.gmra.mxu1 %vm4238_vm4, %v8330_v0  ;;  %v5373_v0 = vld [vmem:[%s11625_s9 + $0x38] sm:$0xff] }
 0x992   :  { %8366 = vmatpush3.msra.mxu1 %v10625_v57  ;;  %v7134_v57 = vld [vmem:[%s11622_s6 + $0x100] sm:$0xff] }
 0x993   :  { %8367 = vmatprep.subr.mxu1 %v10629_v40  ;;  %v4898_v28 = vpop.f32.mrf.mxu0 }
 0x994   :  { %8368 = vmatpush3.msra.mxu1 %v10629_v40  ;;  %8355 = vmatprep.mubr.msk.f32.mxu1 %vm4238_vm4, %v4898_v28  ;;  %v7135_v40 = vld [vmem:[%s11622_s6 + $0x108] sm:$0xff]  ;;  %v5370_v28 = vld [vmem:[%s11625_s9 + $0x20] sm:$0xff] }
 0x995   :  { %8369 = vmatprep.subr.mxu1 %v10633_v16  ;;  %v8336_v53 = vpop.f32.mrf.mxu0  ;;  %8356 = vmatmul.mubr.msk.f32.gmra.mxu1 %vm4238_vm4, %v8333_v58  ;;  %v5371_v58 = vld [vmem:[%s11625_s9 + $0x28] sm:$0xff] }
 0x996   :  { %8370 = vmatpush3.msra.mxu1 %v10633_v16  ;;  %v7136_v16 = vld [vmem:[%s11622_s6 + $0x110] sm:$0xff] }
 0x997   :  { %8371 = vmatprep.subr.mxu1 %v10637_v50  ;;  %v4908_v8 = vpop.f32.mrf.mxu0 }
 0x998   :  { %8372 = vmatpush3.msra.mxu1 %v10637_v50  ;;  %8358 = vmatprep.mubr.msk.f32.mxu1 %vm4238_vm4, %v4908_v8  ;;  %v7137_v50 = vld [vmem:[%s11622_s6 + $0x118] sm:$0xff] }
 0x999   :  { %8373 = vmatprep.subr.mxu1 %v10641_v51  ;;  %8359 = vmatmul.mubr.msk.f32.gmra.mxu1 %vm4238_vm4, %v8336_v53  ;;  %v7169_v53 = vld [vmem:[%s11625_s9 + $0xa0] sm:$0xff]  ;;  %v5369_v8 = vld [vmem:[%s11625_s9 + $0x18] sm:$0xff] }
 0x99a   :  { %8374 = vmatpush3.msra.mxu1 %v10641_v51  ;;  %8385 = vmatprep.mubr.msk.f32.mxu1 %vm140_vm0, %v7134_v57  ;;  %v7138_v51 = vld [vmem:[%s11622_s6 + $0x120] sm:$0xff]  ;;  %v7168_v57 = vld [vmem:[%s11625_s9 + $0x98] sm:$0xff] }
 0x99b   :  { %8375 = vmatprep.subr.mxu1 %v10645_v15 }
 0x99c   :  { %8376 = vmatpush3.msra.mxu1 %v10645_v15  ;;  %v7140_v15 = vld [vmem:[%s11622_s6 + $0x130] sm:$0xff] }
 0x99d   :  { %8377 = vmatprep.subr.mxu1 %v10649_v19 }
 0x99e   :  { %8378 = vmatpush3.msra.mxu1 %v10649_v19  ;;  %v7141_v19 = vld [vmem:[%s11622_s6 + $0x138] sm:$0xff] }
 0x99f   :  { %8379 = vmatprep.subr.mxu1 %v10655_v14 }
 0x9a0   :  { %8380 = vmatpush3.msra.mxu1 %v10655_v14  ;;  %v7155_v14 = vld [vmem:[%s11623_s7 + $0xe8] sm:$0xff] }
 0x9a1   :  { %8381 = vmatprep.subr.mxu1 %v10661_v1  ;;  %8397 = vmatprep.subr.mxu0 %v7155_v14 }
 0x9a2   :  { %8382 = vmatpush3.msra.mxu1 %v10661_v1  ;;  %v7154_v1 = vld [vmem:[%s11623_s7 + $0xe0] sm:$0xff]  ;;  %8398 = vmatpush3.msra.mxu0 %v7155_v14 }
 0x9a3   :  { %8383 = vmatprep.subr.mxu1 %v10608_v62  ;;  %8399 = vmatprep.subr.mxu0 %v7154_v1 }
 0x9a4   :  { %8384 = vmatpush3.msra.mxu1 %v10608_v62  ;;  %v7139_v62 = vld [vmem:[%s11622_s6 + $0x128] sm:$0xff]  ;;  %8400 = vmatpush3.msra.mxu0 %v7154_v1  ;;  %v7164_v1 = vld [vmem:[%s11624_s8] ss:$0 sm:$0xff] }
 0x9a5   :  { %8386 = vmatmul.mubr.msk.f32.vlgmr.msra.gmra.mxu1 %vm140_vm0, %v7135_v40  ;;  %8401 = vmatprep.subr.mxu0 %v7153_v54  ;;  %v5368_v40 = vld [vmem:[%s11625_s9 + $0x10] sm:$0xff] }
 0x9a6   :  { %8388 = vmatprep.mubr.msk.f32.mxu1 %vm140_vm0, %v7136_v16  ;;  %8402 = vmatpush3.msra.mxu0 %v7153_v54  ;;  %v7167_v16 = vld [vmem:[%s11625_s9 + $0x90] sm:$0xff] }
 0x9a7   :  { %8403 = vmatprep.subr.mxu0 %v7152_v27  ;;  %8465 = vmatprep.subr.mxu1 %v7180_v10 }
 0x9a8   :  { %8404 = vmatpush3.msra.mxu0 %v7152_v27  ;;  %8466 = vmatpush3.msra.mxu1 %v7180_v10 }
 0x9a9   :  { %8389 = vmatmul.mubr.msk.f32.gmra.mxu1 %vm140_vm0, %v7137_v50  ;;  %8405 = vmatprep.subr.mxu0 %v7151_v23  ;;  %v5367_v50 = vld [vmem:[%s11625_s9 + $0x8] sm:$0xff] }
 0x9aa   :  { %8391 = vmatprep.mubr.msk.f32.mxu1 %vm140_vm0, %v7138_v51  ;;  %8406 = vmatpush3.msra.mxu0 %v7151_v23  ;;  %v7166_v51 = vld [vmem:[%s11625_s9 + $0x88] sm:$0xff] }
 0x9ab   :  { %8407 = vmatprep.subr.mxu0 %v7150_v34  ;;  %8467 = vmatprep.subr.mxu1 %v7179_v7 }
 0x9ac   :  { %8408 = vmatpush3.msra.mxu0 %v7150_v34  ;;  %8468 = vmatpush3.msra.mxu1 %v7179_v7 }
 0x9ad   :  { %8392 = vmatmul.mubr.msk.f32.gmra.mxu1 %vm140_vm0, %v7139_v62  ;;  %8421 = vmatprep.subr.mxu0 %v5381_v35  ;;  %v5366_v62 = vld [vmem:[%s11625_s9] sm:$0xff] }
 0x9ae   :  { %8394 = vmatprep.mubr.msk.f32.mxu1 %vm140_vm0, %v7140_v15  ;;  %8469 = vmatprep.subr.mxu1 %v7178_v29  ;;  %v7165_v15 = vld [vmem:[%s11625_s9 + $0x80] sm:$0xff] }
 0x9af   :  { %8470 = vmatpush3.msra.mxu1 %v7178_v29 }
 0x9b0   :  { %8471 = vmatprep.subr.mxu1 %v7177_v56 }
 0x9b1   :  { %8395 = vmatmul.mubr.msk.f32.gmra.mxu1 %vm140_vm0, %v7141_v19 }
 0x9b2   :  { %8472 = vmatpush3.msra.mxu1 %v7177_v56 }
 0x9b3   :  { %8473 = vmatprep.subr.mxu1 %v7176_v38 }
 0x9b4   :  { %8474 = vmatpush3.msra.mxu1 %v7176_v38 }
 0x9b5   :  { %8475 = vmatprep.subr.mxu1 %v7175_v21 }
 0x9b6   :  { %8476 = vmatpush3.msra.mxu1 %v7175_v21 }
 0x9b7   :  { %8477 = vmatprep.subr.mxu1 %v7174_v59 }
 0x9b8   :  { %8478 = vmatpush3.msra.mxu1 %v7174_v59 }
 0x9b9   :  { %8479 = vmatprep.subr.mxu1 %v7173_v30 }
 0x9ba   :  { %8480 = vmatpush3.msra.mxu1 %v7173_v30 }
 0x9bb   :  { %8481 = vmatprep.subr.mxu1 %v7172_v52 }
 0x9bc   :  { %8482 = vmatpush3.msra.mxu1 %v7172_v52 }
 0x9bd   :  { %8483 = vmatprep.subr.mxu1 %v7171_v37 }
 0x9be   :  { %8484 = vmatpush3.msra.mxu1 %v7171_v37 }
 0x9bf   :  { %8485 = vmatprep.subr.mxu1 %v7170_v44 }
 0x9c0   :  { %8486 = vmatpush3.msra.mxu1 %v7170_v44 }
 0x9c1   :  { %8487 = vmatprep.subr.mxu1 %v7169_v53 }
 0x9c2   :  { %8488 = vmatpush3.msra.mxu1 %v7169_v53 }
 0x9c3   :  { %8489 = vmatprep.subr.mxu1 %v7168_v57 }
 0x9c4   :  { %8490 = vmatpush3.msra.mxu1 %v7168_v57 }
 0x9c5   :  { %8491 = vmatprep.subr.mxu1 %v7167_v16 }
 0x9c6   :  { %8492 = vmatpush3.msra.mxu1 %v7167_v16  ;;  %v7182_v16 = vld [vmem:[%s11626_s10 + $0x8] sm:$0xff] }
 0x9c7   :  { %8493 = vmatprep.subr.mxu1 %v7166_v51 }
 0x9c8   :  { %8494 = vmatpush3.msra.mxu1 %v7166_v51  ;;  %v5774_v51 = vld [vmem:[%s11627_s11 + $0x30] sm:$0xff] }
 0x9c9   :  { %8495 = vmatprep.subr.mxu1 %v7165_v15 }
 0x9ca   :  { %8496 = vmatpush3.msra.mxu1 %v7165_v15  ;;  %v5772_v15 = vld [vmem:[%s11627_s11 + $0x20] sm:$0xff] }
 0x9cb   :  { %8528 = vmatprep.subr.mxu1 %v11645_v43 }
 0xa4d   :  { %v8351_v47 = vpop.f32.mrf.mxu1 }
 0xa4e   :  { %v11101_v36 = vadd.f32 %v8351_v47, %v10960_v13 }
 0xa4f   :  { %v5014_v11 = vpop.f32.mrf.mxu1 }
 0xa50   :  { %v11104_v60 = vadd.f32 %v5014_v11, %v10963_v33 }
 0xa51   :  { %v8354_v18 = vpop.f32.mrf.mxu1 }
 0xa52   :  { %v11107_v5 = vadd.f32 %v8354_v18, %v10966_v39  ;;  %v5380_v39 = vld [vmem:[%s11625_s9 + $0x70] sm:$0xff] }
 0xa53   :  { %v5024_v20 = vpop.f32.mrf.mxu1 }
 0xa54   :  { %v11110_v3 = vadd.f32 %v5024_v20, %v10969_v49  ;;  %v5379_v49 = vld [vmem:[%s11625_s9 + $0x68] sm:$0xff] }
 0xa55   :  { %v8357_v6 = vpop.f32.mrf.mxu1 }
 0xa56   :  { %v11113_v45 = vadd.f32 %v8357_v6, %v10972_v32  ;;  %v5378_v32 = vld [vmem:[%s11625_s9 + $0x60] sm:$0xff] }
 0xa57   :  { %v5034_v2 = vpop.f32.mrf.mxu1 }
 0xa58   :  { %v11116_v42 = vadd.f32 %v5034_v2, %v10975_v41  ;;  %v5377_v41 = vld [vmem:[%s11625_s9 + $0x58] sm:$0xff] }
 0xa59   :  { %v8360_v9 = vpop.f32.mrf.mxu1 }
 0xa5a   :  { %v11119_v61 = vadd.f32 %v8360_v9, %v10978_v63  ;;  %v5376_v63 = vld [vmem:[%s11625_s9 + $0x50] sm:$0xff] }
 0xa5b   :  { %v5044_v13 = vpop.f32.mrf.mxu1 }
 0xa5c   :  { %v11122_v25 = vadd.f32 %v5044_v13, %v10981_v26  ;;  %v5375_v26 = vld [vmem:[%s11625_s9 + $0x48] sm:$0xff] }
 0xa65   :  { %v8387_v33 = vpop.f32.mrf.mxu1 }
 0xa67   :  { %v5160_v24 = vpop.f32.mrf.mxu1 }
 0xa68   :  { %8409 = vmatprep.mubr.msk.f32.mxu0 %vm4238_vm4, %v5160_v24 }
 0xa69   :  { %v8390_v22 = vpop.f32.mrf.mxu1  ;;  %8410 = vmatmul.mubr.msk.f32.vlgmr.msra.gmra.mxu0 %vm4238_vm4, %v8387_v33 }
 0xa6a   :  { %8422 = vmatpush3.msra.mxu0 %v5381_v35 }
 0xa6b   :  { %v5170_v12 = vpop.f32.mrf.mxu1  ;;  %8423 = vmatprep.subr.mxu0 %v5380_v39 }
 0xa6c   :  { %8412 = vmatprep.mubr.msk.f32.mxu0 %vm4238_vm4, %v5170_v12  ;;  %8424 = vmatpush3.msra.mxu0 %v5380_v39 }
 0xa6d   :  { %v8393_v17 = vpop.f32.mrf.mxu1  ;;  %8413 = vmatmul.mubr.msk.f32.gmra.mxu0 %vm4238_vm4, %v8390_v22  ;;  %8425 = vmatprep.subr.mxu0 %v5379_v49 }
 0xa6e   :  { %8426 = vmatpush3.msra.mxu0 %v5379_v49 }
 0xa6f   :  { %v5180_v4 = vpop.f32.mrf.mxu1  ;;  %8427 = vmatprep.subr.mxu0 %v5378_v32 }
 0xa70   :  { %8415 = vmatprep.mubr.msk.f32.mxu0 %vm4238_vm4, %v5180_v4  ;;  %8428 = vmatpush3.msra.mxu0 %v5378_v32 }
 0xa71   :  { %v8396_v48 = vpop.f32.mrf.mxu1  ;;  %8416 = vmatmul.mubr.msk.f32.gmra.mxu0 %vm4238_vm4, %v8393_v17  ;;  %8429 = vmatprep.subr.mxu0 %v5377_v41 }
 0xa72   :  { %8430 = vmatpush3.msra.mxu0 %v5377_v41 }
 0xa73   :  { %v5190_v55 = vpop.f32.mrf.mxu1  ;;  %8431 = vmatprep.subr.mxu0 %v5376_v63 }
 0xa74   :  { %8418 = vmatprep.mubr.msk.f32.mxu0 %vm4238_vm4, %v5190_v55  ;;  %8432 = vmatpush3.msra.mxu0 %v5376_v63 }
 0xa75   :  { %8419 = vmatmul.mubr.msk.f32.gmra.mxu0 %vm4238_vm4, %v8396_v48  ;;  %8433 = vmatprep.subr.mxu0 %v5375_v26 }
 0xa76   :  { %8434 = vmatpush3.msra.mxu0 %v5375_v26 }
 0xa77   :  { %8435 = vmatprep.subr.mxu0 %v5374_v31 }
 0xa78   :  { %8436 = vmatpush3.msra.mxu0 %v5374_v31 }
 0xa79   :  { %8437 = vmatprep.subr.mxu0 %v5373_v0 }
 0xa7a   :  { %8438 = vmatpush3.msra.mxu0 %v5373_v0 }
 0xa7b   :  { %8439 = vmatprep.subr.mxu0 %v5372_v46 }
 0xa7c   :  { %8440 = vmatpush3.msra.mxu0 %v5372_v46 }
 0xa7d   :  { %8441 = vmatprep.subr.mxu0 %v5371_v58 }
 0xa7e   :  { %8442 = vmatpush3.msra.mxu0 %v5371_v58 }
 0xa7f   :  { %8443 = vmatprep.subr.mxu0 %v5370_v28 }
 0xa80   :  { %8444 = vmatpush3.msra.mxu0 %v5370_v28 }
 0xa81   :  { %8445 = vmatprep.subr.mxu0 %v5369_v8 }
 0xa82   :  { %8446 = vmatpush3.msra.mxu0 %v5369_v8 }
 0xa83   :  { %8447 = vmatprep.subr.mxu0 %v5368_v40 }
 0xa84   :  { %8448 = vmatpush3.msra.mxu0 %v5368_v40  ;;  %v5618_v40 = vld [vmem:[%s11626_s10] sm:$0xff] }
 0xa85   :  { %8449 = vmatprep.subr.mxu0 %v5367_v50 }
 0xa86   :  { %8450 = vmatpush3.msra.mxu0 %v5367_v50  ;;  %v5775_v50 = vld [vmem:[%s11627_s11 + $0x38] sm:$0xff] }
 0xa87   :  { %8451 = vmatprep.subr.mxu0 %v5366_v62 }
 0xa88   :  { %8452 = vmatpush3.msra.mxu0 %v5366_v62  ;;  %v5773_v62 = vld [vmem:[%s11627_s11 + $0x28] sm:$0xff] }
 0xa89   :  { %8509 = vmatprep.subr.mxu0 %v11645_v43 }
 0xb29   :  { %v8411_v19 = vpop.f32.mrf.mxu0 }
 0xb2a   :  { %v5336_v14 = vadd.f32 %v8411_v19, %v11101_v36  ;;  %v5771_v19 = vld [vmem:[%s11627_s11 + $0x18] sm:$0xff] }
 0xb2b   :  { %v5296_v54 = vpop.f32.mrf.mxu0 }
 0xb2c   :  { %v5335_v27 = vadd.f32 %v5296_v54, %v11104_v60  ;;  %v5351_v23 = vadd.f32 %v7164_v1, %v5336_v14  ;;  %v5770_v14 = vld [vmem:[%s11627_s11 + $0x10] sm:$0xff]  ;;  %v5768_v54 = vld [vmem:[%s11627_s11] sm:$0xff] }
 0xb2d   :  { %v8414_v34 = vpop.f32.mrf.mxu0 }
 0xb2e   :  { %v5350_v35 = vadd.f32 %v7164_v1, %v5335_v27  ;;  %v5338_v10 = vadd.f32 %v8414_v34, %v11107_v5  ;;  %v5359_v38 = vmax.f32 %v5351_v23, 0.0  ;;  %v7186_v27 = vld [vmem:[%s11626_s10 + $0x10] sm:$0xff]  ;;  %v7197_v23 = vld [vmem:[%s11627_s11 + $0x78] sm:$0xff] }
 0xb2f   :  { %v5306_v7 = vpop.f32.mrf.mxu0  ;;  %v7196_v34 = vld [vmem:[%s11627_s11 + $0x70] sm:$0xff] }
 0xb30   :  { %v5358_v29 = vmax.f32 %v5350_v35, 0.0  ;;  %v5337_v56 = vadd.f32 %v5306_v7, %v11110_v3  ;;  %v5353_v21 = vadd.f32 %v7164_v1, %v5338_v10  ;;  %v7195_v35 = vld [vmem:[%s11627_s11 + $0x68] sm:$0xff]  ;;  %v7194_v10 = vld [vmem:[%s11627_s11 + $0x60] sm:$0xff]  ;;  %v7193_v7 = vld [vmem:[%s11627_s11 + $0x58] sm:$0xff] }
 0xb31   :  { %v8417_v59 = vpop.f32.mrf.mxu0 }
 0xb32   :  { %v5352_v30 = vadd.f32 %v7164_v1, %v5337_v56  ;;  %v5340_v52 = vadd.f32 %v8417_v59, %v11113_v45  ;;  %8453 = vmatprep.mubr.f32.mxu0 %v5358_v29  ;;  %8497 = vmatprep.mubr.f32.mxu1 %v5358_v29  ;;  %v5361_v36 = vmax.f32 %v5353_v21, 0.0 }
 0xb33   :  { %v5316_v37 = vpop.f32.mrf.mxu0  ;;  %8454 = vmatmul.mubr.f32.vlgmr.msra.gmra.mxu0 %v5359_v38  ;;  %8498 = vmatmul.mubr.f32.vlgmr.msra.gmra.mxu1 %v5359_v38 }
 0xb34   :  { %v5360_v44 = vmax.f32 %v5352_v30, 0.0  ;;  %v5339_v47 = vadd.f32 %v5316_v37, %v11116_v42  ;;  %v5355_v11 = vadd.f32 %v7164_v1, %v5340_v52  ;;  %v7188_v30 = vld [vmem:[%s11626_s10 + $0x18] sm:$0xff]  ;;  %v7192_v52 = vld [vmem:[%s11627_s11 + $0x50] sm:$0xff]  ;;  %v7191_v37 = vld [vmem:[%s11627_s11 + $0x48] sm:$0xff] }
 0xb35   :  { %v8420_v60 = vpop.f32.mrf.mxu0 }
 0xb36   :  { %v5354_v18 = vadd.f32 %v7164_v1, %v5339_v47  ;;  %v5342_v5 = vadd.f32 %v8420_v60, %v11119_v61  ;;  %8456 = vmatprep.mubr.f32.mxu0 %v5360_v44  ;;  %8500 = vmatprep.mubr.f32.mxu1 %v5360_v44  ;;  %v5363_v45 = vmax.f32 %v5355_v11, 0.0  ;;  %v7190_v47 = vld [vmem:[%s11627_s11 + $0x40] sm:$0xff] }
 0xb37   :  { %v5326_v20 = vpop.f32.mrf.mxu0  ;;  %8457 = vmatmul.mubr.f32.gmra.mxu0 %v5361_v36  ;;  %8501 = vmatmul.mubr.f32.gmra.mxu1 %v5361_v36  ;;  %v7199_v11 = vld [vmem:[%s11626_s10 + $0x20] sm:$0xff] }
 0xb38   :  { %v5362_v3 = vmax.f32 %v5354_v18, 0.0  ;;  %v5341_v6 = vadd.f32 %v5326_v20, %v11122_v25  ;;  %v5357_v2 = vadd.f32 %v7164_v1, %v5342_v5 }
 0xb3a   :  { %v5356_v9 = vadd.f32 %v7164_v1, %v5341_v6  ;;  %8459 = vmatprep.mubr.f32.mxu0 %v5362_v3  ;;  %8503 = vmatprep.mubr.f32.mxu1 %v5362_v3  ;;  %v5365_v13 = vmax.f32 %v5357_v2, 0.0  ;;  %v5769_v1 = vld [vmem:[%s11627_s11 + $0x8] sm:$0xff]  ;;  %v7209_v2 = vld [vmem:[%s11627_s11 + $0xb0] sm:$0xff] }
 0xb3b   :  { %8460 = vmatmul.mubr.f32.gmra.mxu0 %v5363_v45  ;;  %8504 = vmatmul.mubr.f32.gmra.mxu1 %v5363_v45  ;;  %v7201_v6 = vld [vmem:[%s11626_s10 + $0x28] sm:$0xff]  ;;  %v7210_v45 = vld [vmem:[%s11627_s11 + $0xb8] sm:$0xff] }
 0xb3c   :  { %v5364_v42 = vmax.f32 %v5356_v9, 0.0  ;;  %v7208_v9 = vld [vmem:[%s11627_s11 + $0xa8] sm:$0xff] }
 0xb3e   :  { %8462 = vmatprep.mubr.f32.mxu0 %v5364_v42  ;;  %8506 = vmatprep.mubr.f32.mxu1 %v5364_v42  ;;  %v7207_v42 = vld [vmem:[%s11627_s11 + $0xa0] sm:$0xff] }
 0xb3f   :  { %8463 = vmatmul.mubr.f32.gmra.mxu0 %v5365_v13  ;;  %8507 = vmatmul.mubr.f32.gmra.mxu1 %v5365_v13  ;;  %v7206_v13 = vld [vmem:[%s11627_s11 + $0x98] sm:$0xff] }
 0xb40   :  { %8525 = vmatprep.mubr.msk.f32.mxu0 %vm8831_vm5, %v11645_v43  ;;  %8544 = vmatprep.mubr.msk.f32.mxu1 %vm8831_vm5, %v11645_v43 }
 0xbf3   :  { %v8455_v61 = vpop.f32.mrf.mxu0  ;;  %v8499_v25 = vpop.f32.mrf.mxu1 }
 0xbf4   :  { %v11241_v8 = vmax.f32 %v8455_v61, %v8499_v25  ;;  %v7205_v61 = vld [vmem:[%s11627_s11 + $0x90] sm:$0xff]  ;;  %v7204_v25 = vld [vmem:[%s11627_s11 + $0x88] sm:$0xff] }
 0xbf5   :  { %v5448_v33 = vpop.f32.mrf.mxu0  ;;  %v5570_v24 = vpop.f32.mrf.mxu1 }
 0xbf6   :  { %v11247_v57 = vmax.f32 %v5448_v33, %v5570_v24  ;;  %v7203_v24 = vld [vmem:[%s11627_s11 + $0x80] sm:$0xff] }
 0xbf7   :  { %v8458_v39 = vpop.f32.mrf.mxu0  ;;  %v8502_v22 = vpop.f32.mrf.mxu1 }
 0xbf8   :  { %v11229_v28 = vmax.f32 %v8458_v39, %v8502_v22  ;;  %v7212_v22 = vld [vmem:[%s11626_s10 + $0x30] sm:$0xff] }
 0xbf9   :  { %v5458_v49 = vpop.f32.mrf.mxu0  ;;  %v5580_v12 = vpop.f32.mrf.mxu1 }
 0xbfa   :  { %v11235_v53 = vmax.f32 %v5458_v49, %v5580_v12  ;;  %v7185_v49 = vld [vmem:[%s11628_s12] ss:$0 sm:$0xff] }
 0xbfb   :  { %v8461_v32 = vpop.f32.mrf.mxu0  ;;  %v8505_v17 = vpop.f32.mrf.mxu1 }
 0xbfc   :  { %v11217_v46 = vmax.f32 %v8461_v32, %v8505_v17 }
 0xbfd   :  { %v5468_v41 = vpop.f32.mrf.mxu0  ;;  %v5590_v4 = vpop.f32.mrf.mxu1 }
 0xbfe   :  { %v11223_v58 = vmax.f32 %v5468_v41, %v5590_v4 }
 0xbff   :  { %v8464_v63 = vpop.f32.mrf.mxu0  ;;  %v8508_v48 = vpop.f32.mrf.mxu1 }
 0xc00   :  { %v11209_v26 = vmax.f32 %v8464_v63, %v8508_v48 }
 0xc01   :  { %v5478_v55 = vpop.f32.mrf.mxu0  ;;  %v5600_v31 = vpop.f32.mrf.mxu1 }
 0xc02   :  { %v11211_v0 = vmax.f32 %v5478_v55, %v5600_v31  ;;  %8510 = vmatpush3.msra.mxu0 %v11209_v26  ;;  %8529 = vmatpush3.msra.mxu1 %v11209_v26  ;;  %v7223_v55 = vld [vmem:[%s11627_s11 + $0xf8] sm:$0xff]  ;;  %v7222_v31 = vld [vmem:[%s11627_s11 + $0xf0] sm:$0xff] }
 0xc03   :  { %8511 = vmatprep.subr.mxu0 %v11645_v43  ;;  %8530 = vmatprep.subr.mxu1 %v11645_v43 }
 0xc04   :  { %8512 = vmatpush3.msra.mxu0 %v11211_v0  ;;  %8531 = vmatpush3.msra.mxu1 %v11211_v0 }
 0xc05   :  { %8513 = vmatprep.subr.mxu0 %v11645_v43  ;;  %8532 = vmatprep.subr.mxu1 %v11645_v43 }
 0xc06   :  { %8514 = vmatpush3.msra.mxu0 %v11217_v46  ;;  %8533 = vmatpush3.msra.mxu1 %v11217_v46 }
 0xc07   :  { %8515 = vmatprep.subr.mxu0 %v11645_v43  ;;  %8534 = vmatprep.subr.mxu1 %v11645_v43 }
 0xc08   :  { %8516 = vmatpush3.msra.mxu0 %v11223_v58  ;;  %8535 = vmatpush3.msra.mxu1 %v11223_v58 }
 0xc09   :  { %8517 = vmatprep.subr.mxu0 %v11645_v43  ;;  %8536 = vmatprep.subr.mxu1 %v11645_v43 }
 0xc0a   :  { %8518 = vmatpush3.msra.mxu0 %v11229_v28  ;;  %8537 = vmatpush3.msra.mxu1 %v11229_v28 }
 0xc0b   :  { %8519 = vmatprep.subr.mxu0 %v11645_v43  ;;  %8538 = vmatprep.subr.mxu1 %v11645_v43 }
 0xc0c   :  { %8520 = vmatpush3.msra.mxu0 %v11235_v53  ;;  %8539 = vmatpush3.msra.mxu1 %v11235_v53 }
 0xc0d   :  { %8521 = vmatprep.subr.mxu0 %v11645_v43  ;;  %8540 = vmatprep.subr.mxu1 %v11645_v43 }
 0xc0e   :  { %8522 = vmatpush3.msra.mxu0 %v11241_v8  ;;  %8541 = vmatpush3.msra.mxu1 %v11241_v8 }
 0xc0f   :  { %8523 = vmatprep.subr.mxu0 %v11645_v43  ;;  %8542 = vmatprep.subr.mxu1 %v11645_v43 }
 0xc10   :  { %8524 = vmatpush3.msra.mxu0 %v11247_v57  ;;  %8543 = vmatpush3.msra.mxu1 %v11247_v57 }
 0xc11   :  { %8526 = vmatmul.mubr.msk.f32.vlgmr.msra.gmra.mxu0 %vm3590_vm3, %v5618_v40  ;;  %8545 = vmatmul.mubr.msk.f32.vlgmr.msra.gmra.mxu1 %vm3590_vm3, %v7182_v16  ;;  %v7216_v40 = vld [vmem:[%s11627_s11 + $0xc0] sm:$0xff]  ;;  %v6574_v16 = vld [vmem:[%s11629_s13 + $0x78] sm:$0xff] }
 0xc12   :  { %8566 = vmatprep.subr.mxu1 %v11645_v43  ;;  %8547 = vmatprep.subr.mxu0 %v11645_v43 }
 0xc13   :  { %8567 = vmatpush3.msra.mxu1 %v11209_v26  ;;  %8548 = vmatpush3.msra.mxu0 %v5775_v50  ;;  %v6573_v50 = vld [vmem:[%s11629_s13 + $0x70] sm:$0xff] }
 0xc14   :  { %8568 = vmatprep.subr.mxu1 %v11645_v43  ;;  %8549 = vmatprep.subr.mxu0 %v11645_v43 }
 0xc15   :  { %8569 = vmatpush3.msra.mxu1 %v11211_v0  ;;  %8550 = vmatpush3.msra.mxu0 %v5774_v51  ;;  %v6572_v51 = vld [vmem:[%s11629_s13 + $0x68] sm:$0xff] }
 0xc16   :  { %8570 = vmatprep.subr.mxu1 %v11645_v43  ;;  %8551 = vmatprep.subr.mxu0 %v11645_v43 }
 0xc17   :  { %8571 = vmatpush3.msra.mxu1 %v11217_v46  ;;  %8552 = vmatpush3.msra.mxu0 %v5773_v62  ;;  %v6571_v62 = vld [vmem:[%s11629_s13 + $0x60] sm:$0xff] }
 0xc18   :  { %8572 = vmatprep.subr.mxu1 %v11645_v43  ;;  %8553 = vmatprep.subr.mxu0 %v11645_v43 }
 0xc19   :  { %8573 = vmatpush3.msra.mxu1 %v11223_v58  ;;  %8554 = vmatpush3.msra.mxu0 %v5772_v15  ;;  %v6570_v15 = vld [vmem:[%s11629_s13 + $0x58] sm:$0xff] }
 0xc1a   :  { %8574 = vmatprep.subr.mxu1 %v11645_v43  ;;  %8555 = vmatprep.subr.mxu0 %v11645_v43 }
 0xc1b   :  { %8575 = vmatpush3.msra.mxu1 %v11229_v28  ;;  %8556 = vmatpush3.msra.mxu0 %v5771_v19  ;;  %v6569_v19 = vld [vmem:[%s11629_s13 + $0x50] sm:$0xff] }
 0xc1c   :  { %8576 = vmatprep.subr.mxu1 %v11645_v43  ;;  %8557 = vmatprep.subr.mxu0 %v11645_v43 }
 0xc1d   :  { %8577 = vmatpush3.msra.mxu1 %v11235_v53  ;;  %8558 = vmatpush3.msra.mxu0 %v5770_v14  ;;  %v6568_v14 = vld [vmem:[%s11629_s13 + $0x48] sm:$0xff] }
 0xc1e   :  { %8578 = vmatprep.subr.mxu1 %v11645_v43  ;;  %8559 = vmatprep.subr.mxu0 %v11645_v43 }
 0xc1f   :  { %8579 = vmatpush3.msra.mxu1 %v11241_v8  ;;  %8560 = vmatpush3.msra.mxu0 %v5769_v1  ;;  %v6567_v1 = vld [vmem:[%s11629_s13 + $0x40] sm:$0xff] }
 0xc20   :  { %8580 = vmatprep.subr.mxu1 %v11645_v43  ;;  %8561 = vmatprep.subr.mxu0 %v11645_v43 }
 0xc21   :  { %8581 = vmatpush3.msra.mxu1 %v11247_v57  ;;  %8563 = vmatprep.mubr.msk.f32.mxu0 %vm8831_vm5, %v11645_v43 }
 0xc22   :  { %8582 = vmatprep.mubr.msk.f32.mxu1 %vm8831_vm5, %v11645_v43  ;;  %8604 = vmatprep.subr.mxu1 %v11645_v43 }
 0xc23   :  { %8562 = vmatpush3.msra.mxu0 %v5768_v54  ;;  %8583 = vmatmul.mubr.msk.f32.vlgmr.msra.gmra.mxu1 %vm3590_vm3, %v7186_v27  ;;  %v6566_v54 = vld [vmem:[%s11629_s13 + $0x38] sm:$0xff]  ;;  %v6565_v27 = vld [vmem:[%s11629_s13 + $0x30] sm:$0xff] }
 0xc24   :  { %8585 = vmatprep.subr.mxu0 %v11645_v43  ;;  %8620 = vmatprep.mubr.msk.f32.mxu1 %vm8831_vm5, %v11645_v43 }
 0xc25   :  { %8605 = vmatpush3.msra.mxu1 %v7197_v23  ;;  %v6564_v23 = vld [vmem:[%s11629_s13 + $0x28] sm:$0xff] }
 0xc26   :  { %8606 = vmatprep.subr.mxu1 %v11645_v43 }
 0xc27   :  { %8607 = vmatpush3.msra.mxu1 %v7196_v34  ;;  %v6563_v34 = vld [vmem:[%s11629_s13 + $0x20] sm:$0xff] }
 0xc28   :  { %8608 = vmatprep.subr.mxu1 %v11645_v43 }
 0xc29   :  { %8609 = vmatpush3.msra.mxu1 %v7195_v35  ;;  %v6562_v35 = vld [vmem:[%s11629_s13 + $0x18] sm:$0xff] }
 0xc2a   :  { %8610 = vmatprep.subr.mxu1 %v11645_v43 }
 0xc2b   :  { %8611 = vmatpush3.msra.mxu1 %v7194_v10 }
 0xc2c   :  { %8612 = vmatprep.subr.mxu1 %v11645_v43 }
 0xc2d   :  { %8613 = vmatpush3.msra.mxu1 %v7193_v7 }
 0xc2e   :  { %8614 = vmatprep.subr.mxu1 %v11645_v43 }
 0xc2f   :  { %8615 = vmatpush3.msra.mxu1 %v7192_v52  ;;  %v6559_v52 = vld [vmem:[%s11629_s13] sm:$0xff] }
 0xc30   :  { %8616 = vmatprep.subr.mxu1 %v11645_v43 }
 0xc31   :  { %8617 = vmatpush3.msra.mxu1 %v7191_v37 }
 0xc32   :  { %8618 = vmatprep.subr.mxu1 %v11645_v43 }
 0xc33   :  { %8619 = vmatpush3.msra.mxu1 %v7190_v47 }
 0xc34   :  { %8642 = vmatprep.subr.mxu1 %v11645_v43 }
 0xcd1   :  { %v5688_v29 = vpop.f32.mrf.mxu0  ;;  %v5763_v56 = vpop.f32.mrf.mxu1 }
 0xcd2   :  { %v5767_v38 = vmax.f32 %v5688_v29, %v5763_v56 }
 0xcd3   :  { %v8527_v21 = vpop.f32.mrf.mxu0  ;;  %v8546_v59 = vpop.f32.mrf.mxu1 }
 0xcd4   :  { %8564 = vmatmul.mubr.msk.f32.vlgmr.msra.gmra.mxu0 %vm3590_vm3, %v5767_v38  ;;  %v6561_v59 = vld [vmem:[%s11629_s13 + $0x10] sm:$0xff] }
 0xcd5   :  { %8586 = vmatpush3.msra.mxu0 %v11209_v26  ;;  %8601 = vmatprep.mubr.msk.f32.mxu0 %vm8831_vm5, %v11645_v43 }
 0xcd6   :  { %8587 = vmatprep.subr.mxu0 %v11645_v43 }
 0xcd7   :  { %8588 = vmatpush3.msra.mxu0 %v11211_v0 }
 0xcd8   :  { %8589 = vmatprep.subr.mxu0 %v11645_v43 }
 0xcd9   :  { %8590 = vmatpush3.msra.mxu0 %v11217_v46 }
 0xcda   :  { %8591 = vmatprep.subr.mxu0 %v11645_v43 }
 0xcdb   :  { %8592 = vmatpush3.msra.mxu0 %v11223_v58 }
 0xcdc   :  { %8593 = vmatprep.subr.mxu0 %v11645_v43 }
 0xcdd   :  { %8594 = vmatpush3.msra.mxu0 %v11229_v28 }
 0xcde   :  { %8595 = vmatprep.subr.mxu0 %v11645_v43 }
 0xcdf   :  { %8596 = vmatpush3.msra.mxu0 %v11235_v53 }
 0xce0   :  { %8597 = vmatprep.subr.mxu0 %v11645_v43 }
 0xce1   :  { %8598 = vmatpush3.msra.mxu0 %v11241_v8 }
 0xce2   :  { %8599 = vmatprep.subr.mxu0 %v11645_v43 }
 0xce3   :  { %8600 = vmatpush3.msra.mxu0 %v11247_v57  ;;  %v5927_v44 = vpop.f32.mrf.mxu1 }
 0xce4   :  { %8602 = vmatmul.mubr.msk.f32.vlgmr.msra.gmra.mxu0 %vm3590_vm3, %v7188_v30  ;;  %8623 = vmatprep.subr.mxu0 %v11645_v43  ;;  %v6560_v30 = vld [vmem:[%s11629_s13 + $0x8] sm:$0xff] }
 0xce5   :  { %8624 = vmatpush3.msra.mxu0 %v11209_v26  ;;  %8639 = vmatprep.mubr.msk.f32.mxu0 %vm8831_vm5, %v11645_v43  ;;  %v8584_v36 = vpop.f32.mrf.mxu1 }
 0xce6   :  { %8625 = vmatprep.subr.mxu0 %v11645_v43 }
 0xce7   :  { %8626 = vmatpush3.msra.mxu0 %v11211_v0 }
 0xce8   :  { %8627 = vmatprep.subr.mxu0 %v11645_v43 }
 0xce9   :  { %8628 = vmatpush3.msra.mxu0 %v11217_v46 }
 0xcea   :  { %8629 = vmatprep.subr.mxu0 %v11645_v43 }
 0xceb   :  { %8630 = vmatpush3.msra.mxu0 %v11223_v58 }
 0xcec   :  { %8631 = vmatprep.subr.mxu0 %v11645_v43 }
 0xced   :  { %8632 = vmatpush3.msra.mxu0 %v11229_v28 }
 0xcee   :  { %8633 = vmatprep.subr.mxu0 %v11645_v43 }
 0xcef   :  { %8634 = vmatpush3.msra.mxu0 %v11235_v53 }
 0xcf0   :  { %8635 = vmatprep.subr.mxu0 %v11645_v43 }
 0xcf1   :  { %8636 = vmatpush3.msra.mxu0 %v11241_v8 }
 0xcf2   :  { %8637 = vmatprep.subr.mxu0 %v11645_v43 }
 0xcf3   :  { %8638 = vmatpush3.msra.mxu0 %v11247_v57 }
 0xcf4   :  { %8661 = vmatprep.subr.mxu0 %v11645_v43  ;;  %8640 = vmatmul.mubr.msk.f32.vlgmr.msra.gmra.mxu0 %vm3590_vm3, %v7199_v11  ;;  %v7225_v11 = vld [vmem:[%s11630_s14] ss:$0 sm:$0xff] }
 0xcf5   :  { %8677 = vmatprep.mubr.msk.f32.mxu0 %vm8831_vm5, %v11645_v43  ;;  %8662 = vmatpush3.msra.mxu0 %v7210_v45 }
 0xcf6   :  { %8663 = vmatprep.subr.mxu0 %v11645_v43 }
 0xcf7   :  { %8664 = vmatpush3.msra.mxu0 %v7209_v2 }
 0xcf8   :  { %8665 = vmatprep.subr.mxu0 %v11645_v43 }
 0xcf9   :  { %8666 = vmatpush3.msra.mxu0 %v7208_v9 }
 0xcfa   :  { %8667 = vmatprep.subr.mxu0 %v11645_v43 }
 0xcfb   :  { %8668 = vmatpush3.msra.mxu0 %v7207_v42 }
 0xcfc   :  { %8669 = vmatprep.subr.mxu0 %v11645_v43 }
 0xcfd   :  { %8670 = vmatpush3.msra.mxu0 %v7206_v13 }
 0xcfe   :  { %8671 = vmatprep.subr.mxu0 %v11645_v43 }
 0xcff   :  { %8672 = vmatpush3.msra.mxu0 %v7205_v61 }
 0xd00   :  { %8673 = vmatprep.subr.mxu0 %v11645_v43 }
 0xd01   :  { %8674 = vmatpush3.msra.mxu0 %v7204_v25 }
 0xd02   :  { %8675 = vmatprep.subr.mxu0 %v11645_v43 }
 0xd03   :  { %8676 = vmatpush3.msra.mxu0 %v7203_v24 }
 0xd04   :  { %8699 = vmatprep.subr.mxu0 %v11645_v43 }
 0xd94   :  { %v11402_v60 = vpop.f32.mrf.mxu0 }
 0xd95   :  { %v5855_v12 = vadd.f32 %v7185_v49, %v11402_v60 }
 0xd96   :  { %v8565_v18 = vpop.f32.mrf.mxu0 }
 0xda4   :  { %v6002_v5 = vpop.f32.mrf.mxu0 }
 0xda5   :  { %v6006_v20 = vmax.f32 %v5927_v44, %v6002_v5 }
 0xda6   :  { %v8603_v3 = vpop.f32.mrf.mxu0 }
 0xda7   :  { %8621 = vmatmul.mubr.msk.f32.vlgmr.msra.gmra.mxu1 %vm3590_vm3, %v6006_v20 }
 0xda8   :  { %8643 = vmatpush3.msra.mxu1 %v11209_v26  ;;  %8658 = vmatprep.mubr.msk.f32.mxu1 %vm8831_vm5, %v11645_v43 }
 0xda9   :  { %8644 = vmatprep.subr.mxu1 %v11645_v43 }
 0xdaa   :  { %8645 = vmatpush3.msra.mxu1 %v11211_v0 }
 0xdab   :  { %8646 = vmatprep.subr.mxu1 %v11645_v43 }
 0xdac   :  { %8647 = vmatpush3.msra.mxu1 %v11217_v46 }
 0xdad   :  { %8648 = vmatprep.subr.mxu1 %v11645_v43 }
 0xdae   :  { %8649 = vmatpush3.msra.mxu1 %v11223_v58 }
 0xdaf   :  { %8650 = vmatprep.subr.mxu1 %v11645_v43 }
 0xdb0   :  { %8651 = vmatpush3.msra.mxu1 %v11229_v28 }
 0xdb1   :  { %8652 = vmatprep.subr.mxu1 %v11645_v43 }
 0xdb2   :  { %8653 = vmatpush3.msra.mxu1 %v11235_v53 }
 0xdb3   :  { %8654 = vmatprep.subr.mxu1 %v11645_v43 }
 0xdb4   :  { %8655 = vmatpush3.msra.mxu1 %v11241_v8  ;;  %v6161_v33 = vpop.f32.mrf.mxu0 }
 0xdb5   :  { %8656 = vmatprep.subr.mxu1 %v11645_v43 }
 0xdb6   :  { %8657 = vmatpush3.msra.mxu1 %v11247_v57  ;;  %v8641_v39 = vpop.f32.mrf.mxu0 }
 0xdb7   :  { %8659 = vmatmul.mubr.msk.f32.vlgmr.msra.gmra.mxu1 %vm3590_vm3, %v7201_v6  ;;  %8680 = vmatprep.subr.mxu1 %v11645_v43 }
 0xdb8   :  { %8681 = vmatpush3.msra.mxu1 %v11209_v26  ;;  %8696 = vmatprep.mubr.msk.f32.mxu1 %vm8831_vm5, %v11645_v43 }
 0xdb9   :  { %8682 = vmatprep.subr.mxu1 %v11645_v43 }
 0xdba   :  { %8683 = vmatpush3.msra.mxu1 %v11211_v0 }
 0xdbb   :  { %8684 = vmatprep.subr.mxu1 %v11645_v43 }
 0xdbc   :  { %8685 = vmatpush3.msra.mxu1 %v11217_v46 }
 0xdbd   :  { %8686 = vmatprep.subr.mxu1 %v11645_v43 }
 0xdbe   :  { %8687 = vmatpush3.msra.mxu1 %v11223_v58 }
 0xdbf   :  { %8688 = vmatprep.subr.mxu1 %v11645_v43 }
 0xdc0   :  { %8689 = vmatpush3.msra.mxu1 %v11229_v28 }
 0xdc1   :  { %8690 = vmatprep.subr.mxu1 %v11645_v43 }
 0xdc2   :  { %8691 = vmatpush3.msra.mxu1 %v11235_v53 }
 0xdc3   :  { %8692 = vmatprep.subr.mxu1 %v11645_v43 }
 0xdc4   :  { %8693 = vmatpush3.msra.mxu1 %v11241_v8 }
 0xdc5   :  { %8694 = vmatprep.subr.mxu1 %v11645_v43 }
 0xdc6   :  { %8695 = vmatpush3.msra.mxu1 %v11247_v57 }
 0xdc7   :  { %8718 = vmatprep.subr.mxu1 %v11645_v43  ;;  %8697 = vmatmul.mubr.msk.f32.vlgmr.msra.gmra.mxu1 %vm3590_vm3, %v7212_v22 }
 0xdc8   :  { %8734 = vmatprep.mubr.msk.f32.mxu1 %vm8831_vm5, %v11645_v43  ;;  %8719 = vmatpush3.msra.mxu1 %v7223_v55 }
 0xdc9   :  { %8720 = vmatprep.subr.mxu1 %v11645_v43 }
 0xdca   :  { %8721 = vmatpush3.msra.mxu1 %v7222_v31 }
 0xdcb   :  { %8722 = vmatprep.subr.mxu1 %v11645_v43 }
 0xe67   :  { %v6085_v32 = vpop.f32.mrf.mxu1 }
 0xe68   :  { %v11487_v17 = vadd.f32 %v6085_v32, %v5855_v12 }
 0xe69   :  { %v8622_v41 = vpop.f32.mrf.mxu1 }
 0xe77   :  { %v6236_v4 = vpop.f32.mrf.mxu1 }
 0xe78   :  { %v6240_v63 = vmax.f32 %v6161_v33, %v6236_v4 }
 0xe79   :  { %v8660_v48 = vpop.f32.mrf.mxu1 }
 0xe7a   :  { %8678 = vmatmul.mubr.msk.f32.vlgmr.msra.gmra.mxu0 %vm3590_vm3, %v6240_v63 }
 0xe7b   :  { %8700 = vmatpush3.msra.mxu0 %v11209_v26  ;;  %8715 = vmatprep.mubr.msk.f32.mxu0 %vm8831_vm5, %v11645_v43  ;;  %v7214_v26 = vld [vmem:[%s11626_s10 + $0x38] sm:$0xff] }
 0xe7c   :  { %8701 = vmatprep.subr.mxu0 %v11645_v43 }
 0xe7d   :  { %8702 = vmatpush3.msra.mxu0 %v11211_v0  ;;  %v7221_v0 = vld [vmem:[%s11627_s11 + $0xe8] sm:$0xff] }
 0xe7e   :  { %8703 = vmatprep.subr.mxu0 %v11645_v43  ;;  %8723 = vmatpush3.msra.mxu1 %v7221_v0 }
 0xe7f   :  { %8704 = vmatpush3.msra.mxu0 %v11217_v46  ;;  %v7220_v46 = vld [vmem:[%s11627_s11 + $0xe0] sm:$0xff]  ;;  %8724 = vmatprep.subr.mxu1 %v11645_v43 }
 0xe80   :  { %8705 = vmatprep.subr.mxu0 %v11645_v43  ;;  %8725 = vmatpush3.msra.mxu1 %v7220_v46 }
 0xe81   :  { %8706 = vmatpush3.msra.mxu0 %v11223_v58  ;;  %v7219_v58 = vld [vmem:[%s11627_s11 + $0xd8] sm:$0xff]  ;;  %8726 = vmatprep.subr.mxu1 %v11645_v43 }
 0xe82   :  { %8707 = vmatprep.subr.mxu0 %v11645_v43  ;;  %8727 = vmatpush3.msra.mxu1 %v7219_v58 }
 0xe83   :  { %8708 = vmatpush3.msra.mxu0 %v11229_v28  ;;  %v7218_v28 = vld [vmem:[%s11627_s11 + $0xd0] sm:$0xff]  ;;  %8728 = vmatprep.subr.mxu1 %v11645_v43 }
 0xe84   :  { %8709 = vmatprep.subr.mxu0 %v11645_v43  ;;  %8729 = vmatpush3.msra.mxu1 %v7218_v28 }
 0xe85   :  { %8710 = vmatpush3.msra.mxu0 %v11235_v53  ;;  %8730 = vmatprep.subr.mxu1 %v11645_v43 }
 0xe86   :  { %8711 = vmatprep.subr.mxu0 %v11645_v43 }
 0xe87   :  { %8712 = vmatpush3.msra.mxu0 %v11241_v8  ;;  %v6395_v53 = vpop.f32.mrf.mxu1  ;;  %v7217_v8 = vld [vmem:[%s11627_s11 + $0xc8] sm:$0xff] }
 0xe88   :  { %8713 = vmatprep.subr.mxu0 %v11645_v43  ;;  %8731 = vmatpush3.msra.mxu1 %v7217_v8 }
 0xe89   :  { %8714 = vmatpush3.msra.mxu0 %v11247_v57  ;;  %v8698_v57 = vpop.f32.mrf.mxu1  ;;  %8732 = vmatprep.subr.mxu1 %v11645_v43 }
 0xe8a   :  { %8716 = vmatmul.mubr.msk.f32.vlgmr.msra.gmra.mxu0 %vm3590_vm3, %v7214_v26  ;;  %8737 = vmatprep.subr.mxu0 %v11645_v43 }
 0xe8b   :  { %8769 = vmatprep.mubr.msk.f32.mxu0 %vm8831_vm5, %v11645_v43  ;;  %8733 = vmatpush3.msra.mxu1 %v7216_v40 }
 0xe8c   :  { %8738 = vmatpush3.msra.mxu0 %v6574_v16 }
 0xe8d   :  { %8739 = vmatprep.subr.mxu0 %v11645_v43 }
 0xe8e   :  { %8740 = vmatpush3.msra.mxu0 %v6573_v50 }
 0xe8f   :  { %8741 = vmatprep.subr.mxu0 %v11645_v43 }
 0xe90   :  { %8742 = vmatpush3.msra.mxu0 %v6572_v51 }
 0xe91   :  { %8743 = vmatprep.subr.mxu0 %v11645_v43 }
 0xe92   :  { %8744 = vmatpush3.msra.mxu0 %v6571_v62 }
 0xe93   :  { %8745 = vmatprep.subr.mxu0 %v11645_v43 }
 0xe94   :  { %8746 = vmatpush3.msra.mxu0 %v6570_v15 }
 0xe95   :  { %8747 = vmatprep.subr.mxu0 %v11645_v43 }
 0xe96   :  { %8748 = vmatpush3.msra.mxu0 %v6569_v19 }
 0xe97   :  { %8749 = vmatprep.subr.mxu0 %v11645_v43 }
 0xe98   :  { %8750 = vmatpush3.msra.mxu0 %v6568_v14 }
 0xe99   :  { %8751 = vmatprep.subr.mxu0 %v11645_v43 }
 0xe9a   :  { %8752 = vmatpush3.msra.mxu0 %v6567_v1 }
 0xe9b   :  { %8753 = vmatprep.subr.mxu0 %v11645_v43 }
 0xe9c   :  { %8754 = vmatpush3.msra.mxu0 %v6566_v54 }
 0xe9d   :  { %8755 = vmatprep.subr.mxu0 %v11645_v43 }
 0xe9e   :  { %8756 = vmatpush3.msra.mxu0 %v6565_v27 }
 0xe9f   :  { %8757 = vmatprep.subr.mxu0 %v11645_v43 }
 0xea0   :  { %8758 = vmatpush3.msra.mxu0 %v6564_v23 }
 0xea1   :  { %8759 = vmatprep.subr.mxu0 %v11645_v43 }
 0xea2   :  { %8760 = vmatpush3.msra.mxu0 %v6563_v34 }
 0xea3   :  { %8761 = vmatprep.subr.mxu0 %v11645_v43 }
 0xea4   :  { %8762 = vmatpush3.msra.mxu0 %v6562_v35 }
 0xea5   :  { %8763 = vmatprep.subr.mxu0 %v11645_v43 }
 0xea6   :  { %8764 = vmatpush3.msra.mxu0 %v6561_v59 }
 0xea7   :  { %8765 = vmatprep.subr.mxu0 %v11645_v43 }
 0xea8   :  { %8766 = vmatpush3.msra.mxu0 %v6560_v30 }
 0xea9   :  { %8767 = vmatprep.subr.mxu0 %v11645_v43 }
 0xeaa   :  { %8768 = vmatpush3.msra.mxu0 %v6559_v52 }
 0xf3a   :  { %v6319_v10 = vpop.f32.mrf.mxu0 }
 0xf3b   :  { %v6323_v7 = vadd.f32 %v6319_v10, %v11487_v17 }
 0xf3c   :  { %v8679_v29 = vpop.f32.mrf.mxu0 }
 0xf4a   :  { %v6470_v56 = vpop.f32.mrf.mxu0 }
 0xf4b   :  { %v6474_v38 = vmax.f32 %v6395_v53, %v6470_v56 }
 0xf4c   :  { %v8717_v21 = vpop.f32.mrf.mxu0 }
 0xf4d   :  { %8735 = vmatmul.mubr.msk.f32.vlgmr.msra.gmra.mxu1 %vm3590_vm3, %v6474_v38 }
0x100d   :  { %v6553_v37 = vpop.f32.mrf.mxu1 }
0x100e   :  { %v6557_v44 = vadd.f32 %v6553_v37, %v6323_v7 }
0x100f   :  { %v8736_v47 = vpop.f32.mrf.mxu1 }
0x1010   :  { %v6558_v36 = vmax.f32 %v6557_v44, 0.0 }
0x1012   :  { %8770 = vmatmul.mubr.f32.vlgmr.msra.gmra.mxu0 %v6558_v36 }
0x10d2   :  { %v6648_v60 = vpop.f32.mrf.mxu0 }
0x10d3   :  { %v6649_v18 = vadd.f32 %v7225_v11, %v6648_v60 }
0x10d4   :  { %v8771_v5 = vpop.f32.mrf.mxu0 }
0x10d5   :  { %6652 = vst [vmem:[%s11631_s15] sm:$0xff] %v6649_v18 }
0x10d6   :  { %6657 = vsyncpa [#allocation3], 1 }

</bundles_post_ra>
